<compile_context>
chip_gen: v7x
topology: tpu7x:2x2x1
jax: 0.10.0
libtpu: 0.0.40
codegen_flags: <defaults>
</compile_context>

<pallas_src>
import functools

import numpy as np
import jax
import jax.numpy as jnp
from jax import lax
from jax.experimental import pallas as pl
from jax.experimental.pallas import tpu as pltpu

SHIFTS = (1, 3, 5, 9)
DILATIONS = tuple(s // 2 + 1 for s in SHIFTS)   # (1, 2, 3, 5)
PMAX = max(DILATIONS)                           # common H-padding = 5
NS = len(SHIFTS)


# ----------------------------------------------------------------------------
# Fused MCAF kernel (per batch element), fully lane-dense (H, W*C) domain.
# ----------------------------------------------------------------------------
def _mcaf_kernel(h_ref, l_ref, dbig_ref, dbt_ref, obig_ref, obt_ref,
                 w1_ref, b1_ref, w2_ref, b2_ref, wc_ref, bc_ref,
                 out_ref, xpad_ref, opad_ref, *, H, W, C):
    # h_ref/l_ref : (1, H, W*C)          activations, lane-dense
    # dbig/obig   : (2*NS, 3*W*C, W*C)   block-banded dconv/oconv weights
    # dbt/obt     : (2*NS, 1, W*C)       biases tiled across W
    # w1/b1,w2/b2 : block-diag 1x1 convs of pix_conv (tiled across W)
    # wc/bc       : block-diag 1x1 conv of Max_channel (tiled across W)
    # xpad/opad   : (H + 2*PMAX, W*C)    VMEM scratch, H-padded activations
    WC = W * C

    # Zero only the PMAX-row halos; the interior is fully overwritten before
    # every use.  (Unconditional so it is safe under "parallel" core sharding.)
    zero_halo = jnp.zeros((PMAX, WC), jnp.float32)
    xpad_ref[0:PMAX, :] = zero_halo
    xpad_ref[PMAX + H:PMAX + H + PMAX, :] = zero_halo
    opad_ref[0:PMAX, :] = zero_halo
    opad_ref[PMAX + H:PMAX + H + PMAX, :] = zero_halo

    def dilated_conv(pad_ref, big_ref, bias_ref, widx, d):
        # Three sublane-aligned row slices (kh = -1, 0, +1 taps) concatenated on
        # the lane axis, then a single MXU matmul against the banded weights.
        rows = jnp.concatenate(
            [pad_ref[PMAX + (kh - 1) * d: PMAX + (kh - 1) * d + H, :]
             for kh in range(3)], axis=1)                       # (H, 3*WC)
        return (jnp.dot(rows, big_ref[widx],
                        preferred_element_type=jnp.float32)
                + bias_ref[widx])                               # (H, WC)

    def malc(x2d, m):
        # x2d: (H, WC) dense.  Returns the MALC output in the same layout.
        xpad_ref[PMAX:PMAX + H, :] = x2d
        acc = jnp.zeros((H, WC), jnp.float32)
        for s, d in enumerate(DILATIONS):
            widx = m * NS + s
            out1 = x2d - dilated_conv(xpad_ref, dbig_ref, dbt_ref, widx, d)
            opad_ref[PMAX:PMAX + H, :] = out1
            out2 = jax.nn.sigmoid(
                dilated_conv(opad_ref, obig_ref, obt_ref, widx, d)) + 1e-05
            acc = acc + out1 / out2
        mean = acc * (1.0 / NS)
        return jax.nn.sigmoid(mean) * x2d + x2d

    h1 = malc(h_ref[0], 0)          # (H, WC)
    l1 = malc(l_ref[0], 1)          # (H, WC)

    # pix_conv(h1): two 1x1 convs (block-diagonal weights) + sigmoid.
    t = jnp.dot(h1, w1_ref[...], preferred_element_type=jnp.float32) + b1_ref[...]
    t = jnp.dot(t, w2_ref[...], preferred_element_type=jnp.float32) + b2_ref[...]
    hmask = jax.nn.sigmoid(t)                                   # (H, WC)

    # Max_channel(l1): sigmoid -> global per-channel max -> 1x1 conv -> scale.
    s = jax.nn.sigmoid(l1)
    shift = C
    while shift < WC:               # lane-rotate tree-max over the W groups
        s = jnp.maximum(s, pltpu.roll(s, shift=shift, axis=1))
        shift *= 2
    mx = jnp.max(s, axis=0, keepdims=True)      # (1, WC): per-chan max, tiled
    mc = jnp.dot(mx, wc_ref[...], preferred_element_type=jnp.float32) + bc_ref[...]
    lcen_m = l1 * mc

    out_ref[0] = hmask * lcen_m + l1            # lane-dense (H, WC) store


def mcaf_pallas(h2d, l2d, kp, *, H, W, C):
    B = h2d.shape[0]
    WC = W * C
    WH = kp["w1big"].shape[1]                   # = W * hidden_channels
    Hp = H + 2 * PMAX

    kernel = functools.partial(_mcaf_kernel, H=H, W=W, C=C)
    return pl.pallas_call(
        kernel,
        out_shape=jax.ShapeDtypeStruct((B, H, WC), jnp.float32),
        grid_spec=pltpu.PrefetchScalarGridSpec(
            num_scalar_prefetch=0,
            grid=(B,),
            in_specs=[
                pl.BlockSpec((1, H, WC), lambda b: (b, 0, 0)),
                pl.BlockSpec((1, H, WC), lambda b: (b, 0, 0)),
                pl.BlockSpec((2 * NS, 3 * WC, WC), lambda b: (0, 0, 0)),
                pl.BlockSpec((2 * NS, 1, WC), lambda b: (0, 0, 0)),
                pl.BlockSpec((2 * NS, 3 * WC, WC), lambda b: (0, 0, 0)),
                pl.BlockSpec((2 * NS, 1, WC), lambda b: (0, 0, 0)),
                pl.BlockSpec((WC, WH), lambda b: (0, 0)),
                pl.BlockSpec((1, WH), lambda b: (0, 0)),
                pl.BlockSpec((WH, WC), lambda b: (0, 0)),
                pl.BlockSpec((1, WC), lambda b: (0, 0)),
                pl.BlockSpec((WC, WC), lambda b: (0, 0)),
                pl.BlockSpec((1, WC), lambda b: (0, 0)),
            ],
            out_specs=pl.BlockSpec((1, H, WC), lambda b: (b, 0, 0)),
            scratch_shapes=[pltpu.VMEM((Hp, WC), jnp.float32),
                            pltpu.VMEM((Hp, WC), jnp.float32)],
        ),
        compiler_params=pltpu.CompilerParams(
            dimension_semantics=("parallel",)),
    )(h2d, l2d, kp["dbig"], kp["dbt"], kp["obig"], kp["obt"],
      kp["w1big"], kp["b1t"], kp["w2big"], kp["b2t"], kp["wcbig"], kp["bct"])


# ----------------------------------------------------------------------------
# Host-side (one-time) weight expansion into banded / block-diagonal matrices.
# ----------------------------------------------------------------------------
def _expand_malc_weights(dw, ow, db, ob, W):
    # dw/ow: (NS, 3, 3, Cin, Cout) HWIO; db/ob: (NS, C)
    ns, _, _, C, _ = dw.shape
    WC = W * C
    dw = np.asarray(dw, np.float32)
    ow = np.asarray(ow, np.float32)
    dbig = np.zeros((ns, 3 * WC, WC), np.float32)
    obig = np.zeros((ns, 3 * WC, WC), np.float32)
    for s, d in enumerate(DILATIONS):
        for kh in range(3):
            for kw in range(3):
                # ones at (w_in, w_out) with w_in = w_out + (kw-1)*d, clipped
                shift_mat = np.eye(W, k=-(kw - 1) * d, dtype=np.float32)
                dbig[s, kh * WC:(kh + 1) * WC, :] += np.kron(shift_mat, dw[s, kh, kw])
                obig[s, kh * WC:(kh + 1) * WC, :] += np.kron(shift_mat, ow[s, kh, kw])
    dbt = np.tile(np.asarray(db, np.float32), (1, W)).reshape(ns, 1, WC)
    obt = np.tile(np.asarray(ob, np.float32), (1, W)).reshape(ns, 1, WC)
    return dbig, dbt, obig, obt


def prepare_mcaf_params(params, W):
    dw1, db1, ow1, ob1 = params["malc1"]
    dw2, db2, ow2, ob2 = params["malc2"]
    e1 = _expand_malc_weights(dw1, ow1, db1, ob1, W)
    e2 = _expand_malc_weights(dw2, ow2, db2, ob2, W)

    eye = np.eye(W, dtype=np.float32)
    w1big = np.kron(eye, np.asarray(params["pix_w1"], np.float32))
    w2big = np.kron(eye, np.asarray(params["pix_w2"], np.float32))
    wcbig = np.kron(eye, np.asarray(params["max_w"], np.float32))
    b1t = np.tile(np.asarray(params["pix_b1"], np.float32), (1, W))
    b2t = np.tile(np.asarray(params["pix_b2"], np.float32), (1, W))
    bct = np.tile(np.asarray(params["max_b"], np.float32), (1, W))

    return dict(
        dbig=jnp.asarray(np.concatenate([e1[0], e2[0]], axis=0)),
        dbt=jnp.asarray(np.concatenate([e1[1], e2[1]], axis=0)),
        obig=jnp.asarray(np.concatenate([e1[2], e2[2]], axis=0)),
        obt=jnp.asarray(np.concatenate([e1[3], e2[3]], axis=0)),
        w1big=jnp.asarray(w1big), b1t=jnp.asarray(b1t),
        w2big=jnp.asarray(w2big), b2t=jnp.asarray(b2t),
        wcbig=jnp.asarray(wcbig), bct=jnp.asarray(bct),
    )


# ----------------------------------------------------------------------------
# Full MCAF forward (NCHW in / NCHW out)
# ----------------------------------------------------------------------------
def mcaf_forward(hcen_nchw, lcen_nchw, kparams):
    B, C, H, W = hcen_nchw.shape
    h = jnp.transpose(hcen_nchw, (0, 2, 3, 1)).astype(jnp.float32).reshape(B, H, W * C)
    l = jnp.transpose(lcen_nchw, (0, 2, 3, 1)).astype(jnp.float32).reshape(B, H, W * C)
    out = mcaf_pallas(h, l, kparams, H=H, W=W, C=C)
    return jnp.transpose(out.reshape(B, H, W, C), (0, 3, 1, 2))


# ----------------------------------------------------------------------------
# Pure-JAX reference (for correctness verification)
# ----------------------------------------------------------------------------
def _conv3x3_ref(x, w, b, d):
    y = lax.conv_general_dilated(
        x, w, window_strides=(1, 1), padding=[(d, d), (d, d)],
        rhs_dilation=(d, d), dimension_numbers=("NHWC", "HWIO", "NHWC"))
    return y + b


def _malc_ref(x, dw, db, ow, ob):
    outs = []
    for i, d in enumerate(DILATIONS):
        out1 = x - _conv3x3_ref(x, dw[i], db[i], d)
        out2 = jax.nn.sigmoid(_conv3x3_ref(out1, ow[i], ob[i], d)) + 1e-05
        outs.append(out1 / out2)
    mean = jnp.mean(jnp.stack(outs, axis=-1), axis=-1)
    return jax.nn.sigmoid(mean) * x + x


def mcaf_ref(hcen_nchw, lcen_nchw, params):
    h = jnp.transpose(hcen_nchw, (0, 2, 3, 1)).astype(jnp.float32)
    l = jnp.transpose(lcen_nchw, (0, 2, 3, 1)).astype(jnp.float32)
    h1 = _malc_ref(h, *params["malc1"])
    l1 = _malc_ref(l, *params["malc2"])

    hmask = jax.nn.sigmoid(
        jnp.einsum("bhwc,cd->bhwd",
                   jnp.einsum("bhwc,cd->bhwd", h1, params["pix_w1"])
                   + params["pix_b1"][0],
                   params["pix_w2"]) + params["pix_b2"][0])

    s = jax.nn.sigmoid(l1)
    m = jnp.max(s, axis=(1, 2))                                 # (B, C)
    mc = m @ params["max_w"] + params["max_b"][0]               # (B, C)
    lcen_m = l1 * mc[:, None, None, :]
    out = hmask * lcen_m + l1
    return jnp.transpose(out, (0, 3, 1, 2))


# ----------------------------------------------------------------------------
def make_params(key, C):
    HID = int(0.5 * C)
    keys = jax.random.split(key, 12)

    def conv_stack(k1, k2):
        dw = jax.random.normal(k1, (NS, 3, 3, C, C), jnp.float32) * 0.1
        db = jax.random.normal(k2, (NS, C), jnp.float32) * 0.1
        return dw, db

    dw1, db1 = conv_stack(keys[0], keys[1])
    ow1, ob1 = conv_stack(keys[2], keys[3])
    dw2, db2 = conv_stack(keys[4], keys[5])
    ow2, ob2 = conv_stack(keys[6], keys[7])

    return {
        "malc1": (dw1, db1, ow1, ob1),
        "malc2": (dw2, db2, ow2, ob2),
        "pix_w1": jax.random.normal(keys[8], (C, HID), jnp.float32) * 0.1,
        "pix_b1": jnp.zeros((1, HID), jnp.float32) + 0.01,
        "pix_w2": jax.random.normal(keys[9], (HID, C), jnp.float32) * 0.1,
        "pix_b2": jnp.zeros((1, C), jnp.float32) + 0.01,
        "max_w": jax.random.normal(keys[10], (C, C), jnp.float32) * 0.1,
        "max_b": jnp.zeros((1, C), jnp.float32) + 0.01,
    }


if __name__ == "__main__":
    B, C, H, W = 2, 8, 16, 16
    key = jax.random.PRNGKey(0)
    k1, k2, k3 = jax.random.split(key, 3)

    hcen = jax.random.normal(k1, (B, C, H, W), jnp.float32)   # NCHW like PyTorch
    lcen = jax.random.normal(k2, (B, C, H, W), jnp.float32)
    params = make_params(k3, C)
    kparams = prepare_mcaf_params(params, W)                  # host-side, once

    out = jax.block_until_ready(mcaf_forward(hcen, lcen, kparams))
    ref = jax.block_until_ready(mcaf_ref(hcen, lcen, params))

    assert out.shape == (B, C, H, W)
    max_err = float(jnp.max(jnp.abs(out - ref)))
    assert max_err < 1e-3, f"mismatch vs reference: {max_err}"

    print("KERNEL_OK")
</pallas_src>

<mosaic_0001>
module attributes {stable_mosaic.version = 11 : i64} {
  func.func @_mcaf_kernel(%arg0: i32, %arg1: memref<1x16x128xf32, #tpu.memory_space<vmem>>, %arg2: memref<1x16x128xf32, #tpu.memory_space<vmem>>, %arg3: memref<8x384x128xf32, #tpu.memory_space<vmem>>, %arg4: memref<8x1x128xf32, #tpu.memory_space<vmem>>, %arg5: memref<8x384x128xf32, #tpu.memory_space<vmem>>, %arg6: memref<8x1x128xf32, #tpu.memory_space<vmem>>, %arg7: memref<128x64xf32, #tpu.memory_space<vmem>>, %arg8: memref<1x64xf32, #tpu.memory_space<vmem>>, %arg9: memref<64x128xf32, #tpu.memory_space<vmem>>, %arg10: memref<1x128xf32, #tpu.memory_space<vmem>>, %arg11: memref<128x128xf32, #tpu.memory_space<vmem>>, %arg12: memref<1x128xf32, #tpu.memory_space<vmem>>, %arg13: memref<1x16x128xf32, #tpu.memory_space<vmem>>, %arg14: memref<26x128xf32, #tpu.memory_space<vmem>>, %arg15: memref<26x128xf32, #tpu.memory_space<vmem>>) attributes {dimension_semantics = [#tpu.dimension_semantics<parallel>], iteration_bounds = array<i64: 2>, scalar_prefetch = 0 : i64, scratch_operands = 2 : i64, tpu.core_type = #tpu.core_type<tc>, window_params = [{transform_indices = @transform_0, window_bounds = array<i64: 1, 16, 128>}, {transform_indices = @transform_1, window_bounds = array<i64: 1, 16, 128>}, {pipeline_mode = #tpu.pipeline_mode<synchronous>, transform_indices = @transform_2, window_bounds = array<i64: 8, 384, 128>}, {pipeline_mode = #tpu.pipeline_mode<synchronous>, transform_indices = @transform_3, window_bounds = array<i64: 8, 1, 128>}, {pipeline_mode = #tpu.pipeline_mode<synchronous>, transform_indices = @transform_4, window_bounds = array<i64: 8, 384, 128>}, {pipeline_mode = #tpu.pipeline_mode<synchronous>, transform_indices = @transform_5, window_bounds = array<i64: 8, 1, 128>}, {pipeline_mode = #tpu.pipeline_mode<synchronous>, transform_indices = @transform_6, window_bounds = array<i64: 128, 64>}, {pipeline_mode = #tpu.pipeline_mode<synchronous>, transform_indices = @transform_7, window_bounds = array<i64: 1, 64>}, {pipeline_mode = #tpu.pipeline_mode<synchronous>, transform_indices = @transform_8, window_bounds = array<i64: 64, 128>}, {pipeline_mode = #tpu.pipeline_mode<synchronous>, transform_indices = @transform_9, window_bounds = array<i64: 1, 128>}, {pipeline_mode = #tpu.pipeline_mode<synchronous>, transform_indices = @transform_10, window_bounds = array<i64: 128, 128>}, {pipeline_mode = #tpu.pipeline_mode<synchronous>, transform_indices = @transform_11, window_bounds = array<i64: 1, 128>}, {transform_indices = @transform_12, window_bounds = array<i64: 1, 16, 128>}]} {
    %cst = arith.constant 0.000000e+00 : f32
    %0 = vector.broadcast %cst : f32 to vector<5x128xf32>
    %c0 = arith.constant 0 : index
    %c0_0 = arith.constant 0 : index
    %1 = vector.load %arg14[%c0, %c0_0] : memref<26x128xf32, #tpu.memory_space<vmem>>, vector<5x128xf32>
    tpu.vector_store %arg14[%c0, %c0_0], %0 {strides = array<i32>} : memref<26x128xf32, #tpu.memory_space<vmem>>, vector<5x128xf32>,
    %c21 = arith.constant 21 : index
    %c0_1 = arith.constant 0 : index
    %2 = vector.load %arg14[%c21, %c0_1] : memref<26x128xf32, #tpu.memory_space<vmem>>, vector<5x128xf32>
    tpu.vector_store %arg14[%c21, %c0_1], %0 {strides = array<i32>} : memref<26x128xf32, #tpu.memory_space<vmem>>, vector<5x128xf32>,
    %c0_2 = arith.constant 0 : index
    %c0_3 = arith.constant 0 : index
    %3 = vector.load %arg15[%c0_2, %c0_3] : memref<26x128xf32, #tpu.memory_space<vmem>>, vector<5x128xf32>
    tpu.vector_store %arg15[%c0_2, %c0_3], %0 {strides = array<i32>} : memref<26x128xf32, #tpu.memory_space<vmem>>, vector<5x128xf32>,
    %c21_4 = arith.constant 21 : index
    %c0_5 = arith.constant 0 : index
    %4 = vector.load %arg15[%c21_4, %c0_5] : memref<26x128xf32, #tpu.memory_space<vmem>>, vector<5x128xf32>
    tpu.vector_store %arg15[%c21_4, %c0_5], %0 {strides = array<i32>} : memref<26x128xf32, #tpu.memory_space<vmem>>, vector<5x128xf32>,
    %c0_6 = arith.constant 0 : index
    %c0_7 = arith.constant 0 : index
    %c0_8 = arith.constant 0 : index
    %5 = vector.load %arg1[%c0_6, %c0_7, %c0_8] : memref<1x16x128xf32, #tpu.memory_space<vmem>>, vector<1x16x128xf32>
    %6 = vector.shape_cast %5 : vector<1x16x128xf32> to vector<16x128xf32>
    %c5 = arith.constant 5 : index
    %c0_9 = arith.constant 0 : index
    %7 = vector.load %arg14[%c5, %c0_9] : memref<26x128xf32, #tpu.memory_space<vmem>>, vector<16x128xf32>
    tpu.vector_store %arg14[%c5, %c0_9], %6 {strides = array<i32>} : memref<26x128xf32, #tpu.memory_space<vmem>>, vector<16x128xf32>,
    %cst_10 = arith.constant 0.000000e+00 : f32
    %8 = vector.broadcast %cst_10 : f32 to vector<16x128xf32>
    %c4 = arith.constant 4 : index
    %c0_11 = arith.constant 0 : index
    %9 = vector.load %arg14[%c4, %c0_11] : memref<26x128xf32, #tpu.memory_space<vmem>>, vector<16x128xf32>
    %c5_12 = arith.constant 5 : index
    %c0_13 = arith.constant 0 : index
    %10 = vector.load %arg14[%c5_12, %c0_13] : memref<26x128xf32, #tpu.memory_space<vmem>>, vector<16x128xf32>
    %c6 = arith.constant 6 : index
    %c0_14 = arith.constant 0 : index
    %11 = vector.load %arg14[%c6, %c0_14] : memref<26x128xf32, #tpu.memory_space<vmem>>, vector<16x128xf32>
    %12 = tpu.concatenate %9, %10, %11 in 1 : vector<16x128xf32>, vector<16x128xf32>, vector<16x128xf32> -> vector<16x384xf32>
    %c0_15 = arith.constant 0 : index
    %c0_16 = arith.constant 0 : index
    %c0_17 = arith.constant 0 : index
    %13 = vector.load %arg3[%c0_15, %c0_16, %c0_17] : memref<8x384x128xf32, #tpu.memory_space<vmem>>, vector<1x384x128xf32>
    %14 = vector.shape_cast %13 : vector<1x384x128xf32> to vector<384x128xf32>
    %cst_18 = arith.constant dense<0.000000e+00> : vector<16x128xf32>
    %15 = tpu.matmul %12, %14, %cst_18 {dimension_numbers = #tpu.dot_dimension_numbers<[1], [0], [0], [1], [0, 0, 1, 1], [], []>} : vector<16x384xf32>, vector<384x128xf32>, vector<16x128xf32> -> vector<16x128xf32>
    %c0_19 = arith.constant 0 : index
    %c0_20 = arith.constant 0 : index
    %c0_21 = arith.constant 0 : index
    %16 = vector.load %arg4[%c0_19, %c0_20, %c0_21] : memref<8x1x128xf32, #tpu.memory_space<vmem>>, vector<1x1x128xf32>
    %17 = vector.shape_cast %16 : vector<1x1x128xf32> to vector<1x128xf32>
    %18 = vector.broadcast %17 : vector<1x128xf32> to vector<16x128xf32>
    %19 = arith.addf %15, %18 : vector<16x128xf32>
    %20 = arith.subf %6, %19 : vector<16x128xf32>
    %c5_22 = arith.constant 5 : index
    %c0_23 = arith.constant 0 : index
    %21 = vector.load %arg15[%c5_22, %c0_23] : memref<26x128xf32, #tpu.memory_space<vmem>>, vector<16x128xf32>
    tpu.vector_store %arg15[%c5_22, %c0_23], %20 {strides = array<i32>} : memref<26x128xf32, #tpu.memory_space<vmem>>, vector<16x128xf32>,
    %c4_24 = arith.constant 4 : index
    %c0_25 = arith.constant 0 : index
    %22 = vector.load %arg15[%c4_24, %c0_25] : memref<26x128xf32, #tpu.memory_space<vmem>>, vector<16x128xf32>
    %c5_26 = arith.constant 5 : index
    %c0_27 = arith.constant 0 : index
    %23 = vector.load %arg15[%c5_26, %c0_27] : memref<26x128xf32, #tpu.memory_space<vmem>>, vector<16x128xf32>
    %c6_28 = arith.constant 6 : index
    %c0_29 = arith.constant 0 : index
    %24 = vector.load %arg15[%c6_28, %c0_29] : memref<26x128xf32, #tpu.memory_space<vmem>>, vector<16x128xf32>
    %25 = tpu.concatenate %22, %23, %24 in 1 : vector<16x128xf32>, vector<16x128xf32>, vector<16x128xf32> -> vector<16x384xf32>
    %c0_30 = arith.constant 0 : index
    %c0_31 = arith.constant 0 : index
    %c0_32 = arith.constant 0 : index
    %26 = vector.load %arg5[%c0_30, %c0_31, %c0_32] : memref<8x384x128xf32, #tpu.memory_space<vmem>>, vector<1x384x128xf32>
    %27 = vector.shape_cast %26 : vector<1x384x128xf32> to vector<384x128xf32>
    %cst_33 = arith.constant dense<0.000000e+00> : vector<16x128xf32>
    %28 = tpu.matmul %25, %27, %cst_33 {dimension_numbers = #tpu.dot_dimension_numbers<[1], [0], [0], [1], [0, 0, 1, 1], [], []>} : vector<16x384xf32>, vector<384x128xf32>, vector<16x128xf32> -> vector<16x128xf32>
    %c0_34 = arith.constant 0 : index
    %c0_35 = arith.constant 0 : index
    %c0_36 = arith.constant 0 : index
    %29 = vector.load %arg6[%c0_34, %c0_35, %c0_36] : memref<8x1x128xf32, #tpu.memory_space<vmem>>, vector<1x1x128xf32>
    %30 = vector.shape_cast %29 : vector<1x1x128xf32> to vector<1x128xf32>
    %31 = vector.broadcast %30 : vector<1x128xf32> to vector<16x128xf32>
    %32 = arith.addf %28, %31 : vector<16x128xf32>
    %33 = arith.negf %32 : vector<16x128xf32>
    %34 = math.exp %33 : vector<16x128xf32>
    %cst_37 = arith.constant 1.000000e+00 : f32
    %35 = vector.broadcast %cst_37 : f32 to vector<16x128xf32>
    %36 = arith.addf %35, %34 : vector<16x128xf32>
    %37 = arith.divf %35, %36 : vector<16x128xf32>
    %cst_38 = arith.constant 9.99999974E-6 : f32
    %38 = vector.broadcast %cst_38 : f32 to vector<16x128xf32>
    %39 = arith.addf %37, %38 : vector<16x128xf32>
    %40 = arith.divf %20, %39 : vector<16x128xf32>
    %41 = arith.addf %8, %40 : vector<16x128xf32>
    %c3 = arith.constant 3 : index
    %c0_39 = arith.constant 0 : index
    %42 = vector.load %arg14[%c3, %c0_39] : memref<26x128xf32, #tpu.memory_space<vmem>>, vector<16x128xf32>
    %c5_40 = arith.constant 5 : index
    %c0_41 = arith.constant 0 : index
    %43 = vector.load %arg14[%c5_40, %c0_41] : memref<26x128xf32, #tpu.memory_space<vmem>>, vector<16x128xf32>
    %c7 = arith.constant 7 : index
    %c0_42 = arith.constant 0 : index
    %44 = vector.load %arg14[%c7, %c0_42] : memref<26x128xf32, #tpu.memory_space<vmem>>, vector<16x128xf32>
    %45 = tpu.concatenate %42, %43, %44 in 1 : vector<16x128xf32>, vector<16x128xf32>, vector<16x128xf32> -> vector<16x384xf32>
    %c1 = arith.constant 1 : index
    %c0_43 = arith.constant 0 : index
    %c0_44 = arith.constant 0 : index
    %46 = vector.load %arg3[%c1, %c0_43, %c0_44] : memref<8x384x128xf32, #tpu.memory_space<vmem>>, vector<1x384x128xf32>
    %47 = vector.shape_cast %46 : vector<1x384x128xf32> to vector<384x128xf32>
    %cst_45 = arith.constant dense<0.000000e+00> : vector<16x128xf32>
    %48 = tpu.matmul %45, %47, %cst_45 {dimension_numbers = #tpu.dot_dimension_numbers<[1], [0], [0], [1], [0, 0, 1, 1], [], []>} : vector<16x384xf32>, vector<384x128xf32>, vector<16x128xf32> -> vector<16x128xf32>
    %c1_46 = arith.constant 1 : index
    %c0_47 = arith.constant 0 : index
    %c0_48 = arith.constant 0 : index
    %49 = vector.load %arg4[%c1_46, %c0_47, %c0_48] : memref<8x1x128xf32, #tpu.memory_space<vmem>>, vector<1x1x128xf32>
    %50 = vector.shape_cast %49 : vector<1x1x128xf32> to vector<1x128xf32>
    %51 = vector.broadcast %50 : vector<1x128xf32> to vector<16x128xf32>
    %52 = arith.addf %48, %51 : vector<16x128xf32>
    %53 = arith.subf %6, %52 : vector<16x128xf32>
    %c5_49 = arith.constant 5 : index
    %c0_50 = arith.constant 0 : index
    %54 = vector.load %arg15[%c5_49, %c0_50] : memref<26x128xf32, #tpu.memory_space<vmem>>, vector<16x128xf32>
    tpu.vector_store %arg15[%c5_49, %c0_50], %53 {strides = array<i32>} : memref<26x128xf32, #tpu.memory_space<vmem>>, vector<16x128xf32>,
    %c3_51 = arith.constant 3 : index
    %c0_52 = arith.constant 0 : index
    %55 = vector.load %arg15[%c3_51, %c0_52] : memref<26x128xf32, #tpu.memory_space<vmem>>, vector<16x128xf32>
    %c5_53 = arith.constant 5 : index
    %c0_54 = arith.constant 0 : index
    %56 = vector.load %arg15[%c5_53, %c0_54] : memref<26x128xf32, #tpu.memory_space<vmem>>, vector<16x128xf32>
    %c7_55 = arith.constant 7 : index
    %c0_56 = arith.constant 0 : index
    %57 = vector.load %arg15[%c7_55, %c0_56] : memref<26x128xf32, #tpu.memory_space<vmem>>, vector<16x128xf32>
    %58 = tpu.concatenate %55, %56, %57 in 1 : vector<16x128xf32>, vector<16x128xf32>, vector<16x128xf32> -> vector<16x384xf32>
    %c1_57 = arith.constant 1 : index
    %c0_58 = arith.constant 0 : index
    %c0_59 = arith.constant 0 : index
    %59 = vector.load %arg5[%c1_57, %c0_58, %c0_59] : memref<8x384x128xf32, #tpu.memory_space<vmem>>, vector<1x384x128xf32>
    %60 = vector.shape_cast %59 : vector<1x384x128xf32> to vector<384x128xf32>
    %cst_60 = arith.constant dense<0.000000e+00> : vector<16x128xf32>
    %61 = tpu.matmul %58, %60, %cst_60 {dimension_numbers = #tpu.dot_dimension_numbers<[1], [0], [0], [1], [0, 0, 1, 1], [], []>} : vector<16x384xf32>, vector<384x128xf32>, vector<16x128xf32> -> vector<16x128xf32>
    %c1_61 = arith.constant 1 : index
    %c0_62 = arith.constant 0 : index
    %c0_63 = arith.constant 0 : index
    %62 = vector.load %arg6[%c1_61, %c0_62, %c0_63] : memref<8x1x128xf32, #tpu.memory_space<vmem>>, vector<1x1x128xf32>
    %63 = vector.shape_cast %62 : vector<1x1x128xf32> to vector<1x128xf32>
    %64 = vector.broadcast %63 : vector<1x128xf32> to vector<16x128xf32>
    %65 = arith.addf %61, %64 : vector<16x128xf32>
    %66 = arith.negf %65 : vector<16x128xf32>
    %67 = math.exp %66 : vector<16x128xf32>
    %cst_64 = arith.constant 1.000000e+00 : f32
    %68 = vector.broadcast %cst_64 : f32 to vector<16x128xf32>
    %69 = arith.addf %68, %67 : vector<16x128xf32>
    %70 = arith.divf %68, %69 : vector<16x128xf32>
    %cst_65 = arith.constant 9.99999974E-6 : f32
    %71 = vector.broadcast %cst_65 : f32 to vector<16x128xf32>
    %72 = arith.addf %70, %71 : vector<16x128xf32>
    %73 = arith.divf %53, %72 : vector<16x128xf32>
    %74 = arith.addf %41, %73 : vector<16x128xf32>
    %c2 = arith.constant 2 : index
    %c0_66 = arith.constant 0 : index
    %75 = vector.load %arg14[%c2, %c0_66] : memref<26x128xf32, #tpu.memory_space<vmem>>, vector<16x128xf32>
    %c5_67 = arith.constant 5 : index
    %c0_68 = arith.constant 0 : index
    %76 = vector.load %arg14[%c5_67, %c0_68] : memref<26x128xf32, #tpu.memory_space<vmem>>, vector<16x128xf32>
    %c8 = arith.constant 8 : index
    %c0_69 = arith.constant 0 : index
    %77 = vector.load %arg14[%c8, %c0_69] : memref<26x128xf32, #tpu.memory_space<vmem>>, vector<16x128xf32>
    %78 = tpu.concatenate %75, %76, %77 in 1 : vector<16x128xf32>, vector<16x128xf32>, vector<16x128xf32> -> vector<16x384xf32>
    %c2_70 = arith.constant 2 : index
    %c0_71 = arith.constant 0 : index
    %c0_72 = arith.constant 0 : index
    %79 = vector.load %arg3[%c2_70, %c0_71, %c0_72] : memref<8x384x128xf32, #tpu.memory_space<vmem>>, vector<1x384x128xf32>
    %80 = vector.shape_cast %79 : vector<1x384x128xf32> to vector<384x128xf32>
    %cst_73 = arith.constant dense<0.000000e+00> : vector<16x128xf32>
    %81 = tpu.matmul %78, %80, %cst_73 {dimension_numbers = #tpu.dot_dimension_numbers<[1], [0], [0], [1], [0, 0, 1, 1], [], []>} : vector<16x384xf32>, vector<384x128xf32>, vector<16x128xf32> -> vector<16x128xf32>
    %c2_74 = arith.constant 2 : index
    %c0_75 = arith.constant 0 : index
    %c0_76 = arith.constant 0 : index
    %82 = vector.load %arg4[%c2_74, %c0_75, %c0_76] : memref<8x1x128xf32, #tpu.memory_space<vmem>>, vector<1x1x128xf32>
    %83 = vector.shape_cast %82 : vector<1x1x128xf32> to vector<1x128xf32>
    %84 = vector.broadcast %83 : vector<1x128xf32> to vector<16x128xf32>
    %85 = arith.addf %81, %84 : vector<16x128xf32>
    %86 = arith.subf %6, %85 : vector<16x128xf32>
    %c5_77 = arith.constant 5 : index
    %c0_78 = arith.constant 0 : index
    %87 = vector.load %arg15[%c5_77, %c0_78] : memref<26x128xf32, #tpu.memory_space<vmem>>, vector<16x128xf32>
    tpu.vector_store %arg15[%c5_77, %c0_78], %86 {strides = array<i32>} : memref<26x128xf32, #tpu.memory_space<vmem>>, vector<16x128xf32>,
    %c2_79 = arith.constant 2 : index
    %c0_80 = arith.constant 0 : index
    %88 = vector.load %arg15[%c2_79, %c0_80] : memref<26x128xf32, #tpu.memory_space<vmem>>, vector<16x128xf32>
    %c5_81 = arith.constant 5 : index
    %c0_82 = arith.constant 0 : index
    %89 = vector.load %arg15[%c5_81, %c0_82] : memref<26x128xf32, #tpu.memory_space<vmem>>, vector<16x128xf32>
    %c8_83 = arith.constant 8 : index
    %c0_84 = arith.constant 0 : index
    %90 = vector.load %arg15[%c8_83, %c0_84] : memref<26x128xf32, #tpu.memory_space<vmem>>, vector<16x128xf32>
    %91 = tpu.concatenate %88, %89, %90 in 1 : vector<16x128xf32>, vector<16x128xf32>, vector<16x128xf32> -> vector<16x384xf32>
    %c2_85 = arith.constant 2 : index
    %c0_86 = arith.constant 0 : index
    %c0_87 = arith.constant 0 : index
    %92 = vector.load %arg5[%c2_85, %c0_86, %c0_87] : memref<8x384x128xf32, #tpu.memory_space<vmem>>, vector<1x384x128xf32>
    %93 = vector.shape_cast %92 : vector<1x384x128xf32> to vector<384x128xf32>
    %cst_88 = arith.constant dense<0.000000e+00> : vector<16x128xf32>
    %94 = tpu.matmul %91, %93, %cst_88 {dimension_numbers = #tpu.dot_dimension_numbers<[1], [0], [0], [1], [0, 0, 1, 1], [], []>} : vector<16x384xf32>, vector<384x128xf32>, vector<16x128xf32> -> vector<16x128xf32>
    %c2_89 = arith.constant 2 : index
    %c0_90 = arith.constant 0 : index
    %c0_91 = arith.constant 0 : index
    %95 = vector.load %arg6[%c2_89, %c0_90, %c0_91] : memref<8x1x128xf32, #tpu.memory_space<vmem>>, vector<1x1x128xf32>
    %96 = vector.shape_cast %95 : vector<1x1x128xf32> to vector<1x128xf32>
    %97 = vector.broadcast %96 : vector<1x128xf32> to vector<16x128xf32>
    %98 = arith.addf %94, %97 : vector<16x128xf32>
    %99 = arith.negf %98 : vector<16x128xf32>
    %100 = math.exp %99 : vector<16x128xf32>
    %cst_92 = arith.constant 1.000000e+00 : f32
    %101 = vector.broadcast %cst_92 : f32 to vector<16x128xf32>
    %102 = arith.addf %101, %100 : vector<16x128xf32>
    %103 = arith.divf %101, %102 : vector<16x128xf32>
    %cst_93 = arith.constant 9.99999974E-6 : f32
    %104 = vector.broadcast %cst_93 : f32 to vector<16x128xf32>
    %105 = arith.addf %103, %104 : vector<16x128xf32>
    %106 = arith.divf %86, %105 : vector<16x128xf32>
    %107 = arith.addf %74, %106 : vector<16x128xf32>
    %c0_94 = arith.constant 0 : index
    %c0_95 = arith.constant 0 : index
    %108 = vector.load %arg14[%c0_94, %c0_95] : memref<26x128xf32, #tpu.memory_space<vmem>>, vector<16x128xf32>
    %c5_96 = arith.constant 5 : index
    %c0_97 = arith.constant 0 : index
    %109 = vector.load %arg14[%c5_96, %c0_97] : memref<26x128xf32, #tpu.memory_space<vmem>>, vector<16x128xf32>
    %c10 = arith.constant 10 : index
    %c0_98 = arith.constant 0 : index
    %110 = vector.load %arg14[%c10, %c0_98] : memref<26x128xf32, #tpu.memory_space<vmem>>, vector<16x128xf32>
    %111 = tpu.concatenate %108, %109, %110 in 1 : vector<16x128xf32>, vector<16x128xf32>, vector<16x128xf32> -> vector<16x384xf32>
    %c3_99 = arith.constant 3 : index
    %c0_100 = arith.constant 0 : index
    %c0_101 = arith.constant 0 : index
    %112 = vector.load %arg3[%c3_99, %c0_100, %c0_101] : memref<8x384x128xf32, #tpu.memory_space<vmem>>, vector<1x384x128xf32>
    %113 = vector.shape_cast %112 : vector<1x384x128xf32> to vector<384x128xf32>
    %cst_102 = arith.constant dense<0.000000e+00> : vector<16x128xf32>
    %114 = tpu.matmul %111, %113, %cst_102 {dimension_numbers = #tpu.dot_dimension_numbers<[1], [0], [0], [1], [0, 0, 1, 1], [], []>} : vector<16x384xf32>, vector<384x128xf32>, vector<16x128xf32> -> vector<16x128xf32>
    %c3_103 = arith.constant 3 : index
    %c0_104 = arith.constant 0 : index
    %c0_105 = arith.constant 0 : index
    %115 = vector.load %arg4[%c3_103, %c0_104, %c0_105] : memref<8x1x128xf32, #tpu.memory_space<vmem>>, vector<1x1x128xf32>
    %116 = vector.shape_cast %115 : vector<1x1x128xf32> to vector<1x128xf32>
    %117 = vector.broadcast %116 : vector<1x128xf32> to vector<16x128xf32>
    %118 = arith.addf %114, %117 : vector<16x128xf32>
    %119 = arith.subf %6, %118 : vector<16x128xf32>
    %c5_106 = arith.constant 5 : index
    %c0_107 = arith.constant 0 : index
    %120 = vector.load %arg15[%c5_106, %c0_107] : memref<26x128xf32, #tpu.memory_space<vmem>>, vector<16x128xf32>
    tpu.vector_store %arg15[%c5_106, %c0_107], %119 {strides = array<i32>} : memref<26x128xf32, #tpu.memory_space<vmem>>, vector<16x128xf32>,
    %c0_108 = arith.constant 0 : index
    %c0_109 = arith.constant 0 : index
    %121 = vector.load %arg15[%c0_108, %c0_109] : memref<26x128xf32, #tpu.memory_space<vmem>>, vector<16x128xf32>
    %c5_110 = arith.constant 5 : index
    %c0_111 = arith.constant 0 : index
    %122 = vector.load %arg15[%c5_110, %c0_111] : memref<26x128xf32, #tpu.memory_space<vmem>>, vector<16x128xf32>
    %c10_112 = arith.constant 10 : index
    %c0_113 = arith.constant 0 : index
    %123 = vector.load %arg15[%c10_112, %c0_113] : memref<26x128xf32, #tpu.memory_space<vmem>>, vector<16x128xf32>
    %124 = tpu.concatenate %121, %122, %123 in 1 : vector<16x128xf32>, vector<16x128xf32>, vector<16x128xf32> -> vector<16x384xf32>
    %c3_114 = arith.constant 3 : index
    %c0_115 = arith.constant 0 : index
    %c0_116 = arith.constant 0 : index
    %125 = vector.load %arg5[%c3_114, %c0_115, %c0_116] : memref<8x384x128xf32, #tpu.memory_space<vmem>>, vector<1x384x128xf32>
    %126 = vector.shape_cast %125 : vector<1x384x128xf32> to vector<384x128xf32>
    %cst_117 = arith.constant dense<0.000000e+00> : vector<16x128xf32>
    %127 = tpu.matmul %124, %126, %cst_117 {dimension_numbers = #tpu.dot_dimension_numbers<[1], [0], [0], [1], [0, 0, 1, 1], [], []>} : vector<16x384xf32>, vector<384x128xf32>, vector<16x128xf32> -> vector<16x128xf32>
    %c3_118 = arith.constant 3 : index
    %c0_119 = arith.constant 0 : index
    %c0_120 = arith.constant 0 : index
    %128 = vector.load %arg6[%c3_118, %c0_119, %c0_120] : memref<8x1x128xf32, #tpu.memory_space<vmem>>, vector<1x1x128xf32>
    %129 = vector.shape_cast %128 : vector<1x1x128xf32> to vector<1x128xf32>
    %130 = vector.broadcast %129 : vector<1x128xf32> to vector<16x128xf32>
    %131 = arith.addf %127, %130 : vector<16x128xf32>
    %132 = arith.negf %131 : vector<16x128xf32>
    %133 = math.exp %132 : vector<16x128xf32>
    %cst_121 = arith.constant 1.000000e+00 : f32
    %134 = vector.broadcast %cst_121 : f32 to vector<16x128xf32>
    %135 = arith.addf %134, %133 : vector<16x128xf32>
    %136 = arith.divf %134, %135 : vector<16x128xf32>
    %cst_122 = arith.constant 9.99999974E-6 : f32
    %137 = vector.broadcast %cst_122 : f32 to vector<16x128xf32>
    %138 = arith.addf %136, %137 : vector<16x128xf32>
    %139 = arith.divf %119, %138 : vector<16x128xf32>
    %140 = arith.addf %107, %139 : vector<16x128xf32>
    %cst_123 = arith.constant 2.500000e-01 : f32
    %141 = vector.broadcast %cst_123 : f32 to vector<16x128xf32>
    %142 = arith.mulf %140, %141 : vector<16x128xf32>
    %143 = arith.negf %142 : vector<16x128xf32>
    %144 = math.exp %143 : vector<16x128xf32>
    %cst_124 = arith.constant 1.000000e+00 : f32
    %145 = vector.broadcast %cst_124 : f32 to vector<16x128xf32>
    %146 = arith.addf %145, %144 : vector<16x128xf32>
    %147 = arith.divf %145, %146 : vector<16x128xf32>
    %148 = arith.mulf %147, %6 : vector<16x128xf32>
    %149 = arith.addf %148, %6 : vector<16x128xf32>
    %c0_125 = arith.constant 0 : index
    %c0_126 = arith.constant 0 : index
    %c0_127 = arith.constant 0 : index
    %150 = vector.load %arg2[%c0_125, %c0_126, %c0_127] : memref<1x16x128xf32, #tpu.memory_space<vmem>>, vector<1x16x128xf32>
    %151 = vector.shape_cast %150 : vector<1x16x128xf32> to vector<16x128xf32>
    %c5_128 = arith.constant 5 : index
    %c0_129 = arith.constant 0 : index
    %152 = vector.load %arg14[%c5_128, %c0_129] : memref<26x128xf32, #tpu.memory_space<vmem>>, vector<16x128xf32>
    tpu.vector_store %arg14[%c5_128, %c0_129], %151 {strides = array<i32>} : memref<26x128xf32, #tpu.memory_space<vmem>>, vector<16x128xf32>,
    %cst_130 = arith.constant 0.000000e+00 : f32
    %153 = vector.broadcast %cst_130 : f32 to vector<16x128xf32>
    %c4_131 = arith.constant 4 : index
    %c0_132 = arith.constant 0 : index
    %154 = vector.load %arg14[%c4_131, %c0_132] : memref<26x128xf32, #tpu.memory_space<vmem>>, vector<16x128xf32>
    %c5_133 = arith.constant 5 : index
    %c0_134 = arith.constant 0 : index
    %155 = vector.load %arg14[%c5_133, %c0_134] : memref<26x128xf32, #tpu.memory_space<vmem>>, vector<16x128xf32>
    %c6_135 = arith.constant 6 : index
    %c0_136 = arith.constant 0 : index
    %156 = vector.load %arg14[%c6_135, %c0_136] : memref<26x128xf32, #tpu.memory_space<vmem>>, vector<16x128xf32>
    %157 = tpu.concatenate %154, %155, %156 in 1 : vector<16x128xf32>, vector<16x128xf32>, vector<16x128xf32> -> vector<16x384xf32>
    %c4_137 = arith.constant 4 : index
    %c0_138 = arith.constant 0 : index
    %c0_139 = arith.constant 0 : index
    %158 = vector.load %arg3[%c4_137, %c0_138, %c0_139] : memref<8x384x128xf32, #tpu.memory_space<vmem>>, vector<1x384x128xf32>
    %159 = vector.shape_cast %158 : vector<1x384x128xf32> to vector<384x128xf32>
    %cst_140 = arith.constant dense<0.000000e+00> : vector<16x128xf32>
    %160 = tpu.matmul %157, %159, %cst_140 {dimension_numbers = #tpu.dot_dimension_numbers<[1], [0], [0], [1], [0, 0, 1, 1], [], []>} : vector<16x384xf32>, vector<384x128xf32>, vector<16x128xf32> -> vector<16x128xf32>
    %c4_141 = arith.constant 4 : index
    %c0_142 = arith.constant 0 : index
    %c0_143 = arith.constant 0 : index
    %161 = vector.load %arg4[%c4_141, %c0_142, %c0_143] : memref<8x1x128xf32, #tpu.memory_space<vmem>>, vector<1x1x128xf32>
    %162 = vector.shape_cast %161 : vector<1x1x128xf32> to vector<1x128xf32>
    %163 = vector.broadcast %162 : vector<1x128xf32> to vector<16x128xf32>
    %164 = arith.addf %160, %163 : vector<16x128xf32>
    %165 = arith.subf %151, %164 : vector<16x128xf32>
    %c5_144 = arith.constant 5 : index
    %c0_145 = arith.constant 0 : index
    %166 = vector.load %arg15[%c5_144, %c0_145] : memref<26x128xf32, #tpu.memory_space<vmem>>, vector<16x128xf32>
    tpu.vector_store %arg15[%c5_144, %c0_145], %165 {strides = array<i32>} : memref<26x128xf32, #tpu.memory_space<vmem>>, vector<16x128xf32>,
    %c4_146 = arith.constant 4 : index
    %c0_147 = arith.constant 0 : index
    %167 = vector.load %arg15[%c4_146, %c0_147] : memref<26x128xf32, #tpu.memory_space<vmem>>, vector<16x128xf32>
    %c5_148 = arith.constant 5 : index
    %c0_149 = arith.constant 0 : index
    %168 = vector.load %arg15[%c5_148, %c0_149] : memref<26x128xf32, #tpu.memory_space<vmem>>, vector<16x128xf32>
    %c6_150 = arith.constant 6 : index
    %c0_151 = arith.constant 0 : index
    %169 = vector.load %arg15[%c6_150, %c0_151] : memref<26x128xf32, #tpu.memory_space<vmem>>, vector<16x128xf32>
    %170 = tpu.concatenate %167, %168, %169 in 1 : vector<16x128xf32>, vector<16x128xf32>, vector<16x128xf32> -> vector<16x384xf32>
    %c4_152 = arith.constant 4 : index
    %c0_153 = arith.constant 0 : index
    %c0_154 = arith.constant 0 : index
    %171 = vector.load %arg5[%c4_152, %c0_153, %c0_154] : memref<8x384x128xf32, #tpu.memory_space<vmem>>, vector<1x384x128xf32>
    %172 = vector.shape_cast %171 : vector<1x384x128xf32> to vector<384x128xf32>
    %cst_155 = arith.constant dense<0.000000e+00> : vector<16x128xf32>
    %173 = tpu.matmul %170, %172, %cst_155 {dimension_numbers = #tpu.dot_dimension_numbers<[1], [0], [0], [1], [0, 0, 1, 1], [], []>} : vector<16x384xf32>, vector<384x128xf32>, vector<16x128xf32> -> vector<16x128xf32>
    %c4_156 = arith.constant 4 : index
    %c0_157 = arith.constant 0 : index
    %c0_158 = arith.constant 0 : index
    %174 = vector.load %arg6[%c4_156, %c0_157, %c0_158] : memref<8x1x128xf32, #tpu.memory_space<vmem>>, vector<1x1x128xf32>
    %175 = vector.shape_cast %174 : vector<1x1x128xf32> to vector<1x128xf32>
    %176 = vector.broadcast %175 : vector<1x128xf32> to vector<16x128xf32>
    %177 = arith.addf %173, %176 : vector<16x128xf32>
    %178 = arith.negf %177 : vector<16x128xf32>
    %179 = math.exp %178 : vector<16x128xf32>
    %cst_159 = arith.constant 1.000000e+00 : f32
    %180 = vector.broadcast %cst_159 : f32 to vector<16x128xf32>
    %181 = arith.addf %180, %179 : vector<16x128xf32>
    %182 = arith.divf %180, %181 : vector<16x128xf32>
    %cst_160 = arith.constant 9.99999974E-6 : f32
    %183 = vector.broadcast %cst_160 : f32 to vector<16x128xf32>
    %184 = arith.addf %182, %183 : vector<16x128xf32>
    %185 = arith.divf %165, %184 : vector<16x128xf32>
    %186 = arith.addf %153, %185 : vector<16x128xf32>
    %c3_161 = arith.constant 3 : index
    %c0_162 = arith.constant 0 : index
    %187 = vector.load %arg14[%c3_161, %c0_162] : memref<26x128xf32, #tpu.memory_space<vmem>>, vector<16x128xf32>
    %c5_163 = arith.constant 5 : index
    %c0_164 = arith.constant 0 : index
    %188 = vector.load %arg14[%c5_163, %c0_164] : memref<26x128xf32, #tpu.memory_space<vmem>>, vector<16x128xf32>
    %c7_165 = arith.constant 7 : index
    %c0_166 = arith.constant 0 : index
    %189 = vector.load %arg14[%c7_165, %c0_166] : memref<26x128xf32, #tpu.memory_space<vmem>>, vector<16x128xf32>
    %190 = tpu.concatenate %187, %188, %189 in 1 : vector<16x128xf32>, vector<16x128xf32>, vector<16x128xf32> -> vector<16x384xf32>
    %c5_167 = arith.constant 5 : index
    %c0_168 = arith.constant 0 : index
    %c0_169 = arith.constant 0 : index
    %191 = vector.load %arg3[%c5_167, %c0_168, %c0_169] : memref<8x384x128xf32, #tpu.memory_space<vmem>>, vector<1x384x128xf32>
    %192 = vector.shape_cast %191 : vector<1x384x128xf32> to vector<384x128xf32>
    %cst_170 = arith.constant dense<0.000000e+00> : vector<16x128xf32>
    %193 = tpu.matmul %190, %192, %cst_170 {dimension_numbers = #tpu.dot_dimension_numbers<[1], [0], [0], [1], [0, 0, 1, 1], [], []>} : vector<16x384xf32>, vector<384x128xf32>, vector<16x128xf32> -> vector<16x128xf32>
    %c5_171 = arith.constant 5 : index
    %c0_172 = arith.constant 0 : index
    %c0_173 = arith.constant 0 : index
    %194 = vector.load %arg4[%c5_171, %c0_172, %c0_173] : memref<8x1x128xf32, #tpu.memory_space<vmem>>, vector<1x1x128xf32>
    %195 = vector.shape_cast %194 : vector<1x1x128xf32> to vector<1x128xf32>
    %196 = vector.broadcast %195 : vector<1x128xf32> to vector<16x128xf32>
    %197 = arith.addf %193, %196 : vector<16x128xf32>
    %198 = arith.subf %151, %197 : vector<16x128xf32>
    %c5_174 = arith.constant 5 : index
    %c0_175 = arith.constant 0 : index
    %199 = vector.load %arg15[%c5_174, %c0_175] : memref<26x128xf32, #tpu.memory_space<vmem>>, vector<16x128xf32>
    tpu.vector_store %arg15[%c5_174, %c0_175], %198 {strides = array<i32>} : memref<26x128xf32, #tpu.memory_space<vmem>>, vector<16x128xf32>,
    %c3_176 = arith.constant 3 : index
    %c0_177 = arith.constant 0 : index
    %200 = vector.load %arg15[%c3_176, %c0_177] : memref<26x128xf32, #tpu.memory_space<vmem>>, vector<16x128xf32>
    %c5_178 = arith.constant 5 : index
    %c0_179 = arith.constant 0 : index
    %201 = vector.load %arg15[%c5_178, %c0_179] : memref<26x128xf32, #tpu.memory_space<vmem>>, vector<16x128xf32>
    %c7_180 = arith.constant 7 : index
    %c0_181 = arith.constant 0 : index
    %202 = vector.load %arg15[%c7_180, %c0_181] : memref<26x128xf32, #tpu.memory_space<vmem>>, vector<16x128xf32>
    %203 = tpu.concatenate %200, %201, %202 in 1 : vector<16x128xf32>, vector<16x128xf32>, vector<16x128xf32> -> vector<16x384xf32>
    %c5_182 = arith.constant 5 : index
    %c0_183 = arith.constant 0 : index
    %c0_184 = arith.constant 0 : index
    %204 = vector.load %arg5[%c5_182, %c0_183, %c0_184] : memref<8x384x128xf32, #tpu.memory_space<vmem>>, vector<1x384x128xf32>
    %205 = vector.shape_cast %204 : vector<1x384x128xf32> to vector<384x128xf32>
    %cst_185 = arith.constant dense<0.000000e+00> : vector<16x128xf32>
    %206 = tpu.matmul %203, %205, %cst_185 {dimension_numbers = #tpu.dot_dimension_numbers<[1], [0], [0], [1], [0, 0, 1, 1], [], []>} : vector<16x384xf32>, vector<384x128xf32>, vector<16x128xf32> -> vector<16x128xf32>
    %c5_186 = arith.constant 5 : index
    %c0_187 = arith.constant 0 : index
    %c0_188 = arith.constant 0 : index
    %207 = vector.load %arg6[%c5_186, %c0_187, %c0_188] : memref<8x1x128xf32, #tpu.memory_space<vmem>>, vector<1x1x128xf32>
    %208 = vector.shape_cast %207 : vector<1x1x128xf32> to vector<1x128xf32>
    %209 = vector.broadcast %208 : vector<1x128xf32> to vector<16x128xf32>
    %210 = arith.addf %206, %209 : vector<16x128xf32>
    %211 = arith.negf %210 : vector<16x128xf32>
    %212 = math.exp %211 : vector<16x128xf32>
    %cst_189 = arith.constant 1.000000e+00 : f32
    %213 = vector.broadcast %cst_189 : f32 to vector<16x128xf32>
    %214 = arith.addf %213, %212 : vector<16x128xf32>
    %215 = arith.divf %213, %214 : vector<16x128xf32>
    %cst_190 = arith.constant 9.99999974E-6 : f32
    %216 = vector.broadcast %cst_190 : f32 to vector<16x128xf32>
    %217 = arith.addf %215, %216 : vector<16x128xf32>
    %218 = arith.divf %198, %217 : vector<16x128xf32>
    %219 = arith.addf %186, %218 : vector<16x128xf32>
    %c2_191 = arith.constant 2 : index
    %c0_192 = arith.constant 0 : index
    %220 = vector.load %arg14[%c2_191, %c0_192] : memref<26x128xf32, #tpu.memory_space<vmem>>, vector<16x128xf32>
    %c5_193 = arith.constant 5 : index
    %c0_194 = arith.constant 0 : index
    %221 = vector.load %arg14[%c5_193, %c0_194] : memref<26x128xf32, #tpu.memory_space<vmem>>, vector<16x128xf32>
    %c8_195 = arith.constant 8 : index
    %c0_196 = arith.constant 0 : index
    %222 = vector.load %arg14[%c8_195, %c0_196] : memref<26x128xf32, #tpu.memory_space<vmem>>, vector<16x128xf32>
    %223 = tpu.concatenate %220, %221, %222 in 1 : vector<16x128xf32>, vector<16x128xf32>, vector<16x128xf32> -> vector<16x384xf32>
    %c6_197 = arith.constant 6 : index
    %c0_198 = arith.constant 0 : index
    %c0_199 = arith.constant 0 : index
    %224 = vector.load %arg3[%c6_197, %c0_198, %c0_199] : memref<8x384x128xf32, #tpu.memory_space<vmem>>, vector<1x384x128xf32>
    %225 = vector.shape_cast %224 : vector<1x384x128xf32> to vector<384x128xf32>
    %cst_200 = arith.constant dense<0.000000e+00> : vector<16x128xf32>
    %226 = tpu.matmul %223, %225, %cst_200 {dimension_numbers = #tpu.dot_dimension_numbers<[1], [0], [0], [1], [0, 0, 1, 1], [], []>} : vector<16x384xf32>, vector<384x128xf32>, vector<16x128xf32> -> vector<16x128xf32>
    %c6_201 = arith.constant 6 : index
    %c0_202 = arith.constant 0 : index
    %c0_203 = arith.constant 0 : index
    %227 = vector.load %arg4[%c6_201, %c0_202, %c0_203] : memref<8x1x128xf32, #tpu.memory_space<vmem>>, vector<1x1x128xf32>
    %228 = vector.shape_cast %227 : vector<1x1x128xf32> to vector<1x128xf32>
    %229 = vector.broadcast %228 : vector<1x128xf32> to vector<16x128xf32>
    %230 = arith.addf %226, %229 : vector<16x128xf32>
    %231 = arith.subf %151, %230 : vector<16x128xf32>
    %c5_204 = arith.constant 5 : index
    %c0_205 = arith.constant 0 : index
    %232 = vector.load %arg15[%c5_204, %c0_205] : memref<26x128xf32, #tpu.memory_space<vmem>>, vector<16x128xf32>
    tpu.vector_store %arg15[%c5_204, %c0_205], %231 {strides = array<i32>} : memref<26x128xf32, #tpu.memory_space<vmem>>, vector<16x128xf32>,
    %c2_206 = arith.constant 2 : index
    %c0_207 = arith.constant 0 : index
    %233 = vector.load %arg15[%c2_206, %c0_207] : memref<26x128xf32, #tpu.memory_space<vmem>>, vector<16x128xf32>
    %c5_208 = arith.constant 5 : index
    %c0_209 = arith.constant 0 : index
    %234 = vector.load %arg15[%c5_208, %c0_209] : memref<26x128xf32, #tpu.memory_space<vmem>>, vector<16x128xf32>
    %c8_210 = arith.constant 8 : index
    %c0_211 = arith.constant 0 : index
    %235 = vector.load %arg15[%c8_210, %c0_211] : memref<26x128xf32, #tpu.memory_space<vmem>>, vector<16x128xf32>
    %236 = tpu.concatenate %233, %234, %235 in 1 : vector<16x128xf32>, vector<16x128xf32>, vector<16x128xf32> -> vector<16x384xf32>
    %c6_212 = arith.constant 6 : index
    %c0_213 = arith.constant 0 : index
    %c0_214 = arith.constant 0 : index
    %237 = vector.load %arg5[%c6_212, %c0_213, %c0_214] : memref<8x384x128xf32, #tpu.memory_space<vmem>>, vector<1x384x128xf32>
    %238 = vector.shape_cast %237 : vector<1x384x128xf32> to vector<384x128xf32>
    %cst_215 = arith.constant dense<0.000000e+00> : vector<16x128xf32>
    %239 = tpu.matmul %236, %238, %cst_215 {dimension_numbers = #tpu.dot_dimension_numbers<[1], [0], [0], [1], [0, 0, 1, 1], [], []>} : vector<16x384xf32>, vector<384x128xf32>, vector<16x128xf32> -> vector<16x128xf32>
    %c6_216 = arith.constant 6 : index
    %c0_217 = arith.constant 0 : index
    %c0_218 = arith.constant 0 : index
    %240 = vector.load %arg6[%c6_216, %c0_217, %c0_218] : memref<8x1x128xf32, #tpu.memory_space<vmem>>, vector<1x1x128xf32>
    %241 = vector.shape_cast %240 : vector<1x1x128xf32> to vector<1x128xf32>
    %242 = vector.broadcast %241 : vector<1x128xf32> to vector<16x128xf32>
    %243 = arith.addf %239, %242 : vector<16x128xf32>
    %244 = arith.negf %243 : vector<16x128xf32>
    %245 = math.exp %244 : vector<16x128xf32>
    %cst_219 = arith.constant 1.000000e+00 : f32
    %246 = vector.broadcast %cst_219 : f32 to vector<16x128xf32>
    %247 = arith.addf %246, %245 : vector<16x128xf32>
    %248 = arith.divf %246, %247 : vector<16x128xf32>
    %cst_220 = arith.constant 9.99999974E-6 : f32
    %249 = vector.broadcast %cst_220 : f32 to vector<16x128xf32>
    %250 = arith.addf %248, %249 : vector<16x128xf32>
    %251 = arith.divf %231, %250 : vector<16x128xf32>
    %252 = arith.addf %219, %251 : vector<16x128xf32>
    %c0_221 = arith.constant 0 : index
    %c0_222 = arith.constant 0 : index
    %253 = vector.load %arg14[%c0_221, %c0_222] : memref<26x128xf32, #tpu.memory_space<vmem>>, vector<16x128xf32>
    %c5_223 = arith.constant 5 : index
    %c0_224 = arith.constant 0 : index
    %254 = vector.load %arg14[%c5_223, %c0_224] : memref<26x128xf32, #tpu.memory_space<vmem>>, vector<16x128xf32>
    %c10_225 = arith.constant 10 : index
    %c0_226 = arith.constant 0 : index
    %255 = vector.load %arg14[%c10_225, %c0_226] : memref<26x128xf32, #tpu.memory_space<vmem>>, vector<16x128xf32>
    %256 = tpu.concatenate %253, %254, %255 in 1 : vector<16x128xf32>, vector<16x128xf32>, vector<16x128xf32> -> vector<16x384xf32>
    %c7_227 = arith.constant 7 : index
    %c0_228 = arith.constant 0 : index
    %c0_229 = arith.constant 0 : index
    %257 = vector.load %arg3[%c7_227, %c0_228, %c0_229] : memref<8x384x128xf32, #tpu.memory_space<vmem>>, vector<1x384x128xf32>
    %258 = vector.shape_cast %257 : vector<1x384x128xf32> to vector<384x128xf32>
    %cst_230 = arith.constant dense<0.000000e+00> : vector<16x128xf32>
    %259 = tpu.matmul %256, %258, %cst_230 {dimension_numbers = #tpu.dot_dimension_numbers<[1], [0], [0], [1], [0, 0, 1, 1], [], []>} : vector<16x384xf32>, vector<384x128xf32>, vector<16x128xf32> -> vector<16x128xf32>
    %c7_231 = arith.constant 7 : index
    %c0_232 = arith.constant 0 : index
    %c0_233 = arith.constant 0 : index
    %260 = vector.load %arg4[%c7_231, %c0_232, %c0_233] : memref<8x1x128xf32, #tpu.memory_space<vmem>>, vector<1x1x128xf32>
    %261 = vector.shape_cast %260 : vector<1x1x128xf32> to vector<1x128xf32>
    %262 = vector.broadcast %261 : vector<1x128xf32> to vector<16x128xf32>
    %263 = arith.addf %259, %262 : vector<16x128xf32>
    %264 = arith.subf %151, %263 : vector<16x128xf32>
    %c5_234 = arith.constant 5 : index
    %c0_235 = arith.constant 0 : index
    %265 = vector.load %arg15[%c5_234, %c0_235] : memref<26x128xf32, #tpu.memory_space<vmem>>, vector<16x128xf32>
    tpu.vector_store %arg15[%c5_234, %c0_235], %264 {strides = array<i32>} : memref<26x128xf32, #tpu.memory_space<vmem>>, vector<16x128xf32>,
    %c0_236 = arith.constant 0 : index
    %c0_237 = arith.constant 0 : index
    %266 = vector.load %arg15[%c0_236, %c0_237] : memref<26x128xf32, #tpu.memory_space<vmem>>, vector<16x128xf32>
    %c5_238 = arith.constant 5 : index
    %c0_239 = arith.constant 0 : index
    %267 = vector.load %arg15[%c5_238, %c0_239] : memref<26x128xf32, #tpu.memory_space<vmem>>, vector<16x128xf32>
    %c10_240 = arith.constant 10 : index
    %c0_241 = arith.constant 0 : index
    %268 = vector.load %arg15[%c10_240, %c0_241] : memref<26x128xf32, #tpu.memory_space<vmem>>, vector<16x128xf32>
    %269 = tpu.concatenate %266, %267, %268 in 1 : vector<16x128xf32>, vector<16x128xf32>, vector<16x128xf32> -> vector<16x384xf32>
    %c7_242 = arith.constant 7 : index
    %c0_243 = arith.constant 0 : index
    %c0_244 = arith.constant 0 : index
    %270 = vector.load %arg5[%c7_242, %c0_243, %c0_244] : memref<8x384x128xf32, #tpu.memory_space<vmem>>, vector<1x384x128xf32>
    %271 = vector.shape_cast %270 : vector<1x384x128xf32> to vector<384x128xf32>
    %cst_245 = arith.constant dense<0.000000e+00> : vector<16x128xf32>
    %272 = tpu.matmul %269, %271, %cst_245 {dimension_numbers = #tpu.dot_dimension_numbers<[1], [0], [0], [1], [0, 0, 1, 1], [], []>} : vector<16x384xf32>, vector<384x128xf32>, vector<16x128xf32> -> vector<16x128xf32>
    %c7_246 = arith.constant 7 : index
    %c0_247 = arith.constant 0 : index
    %c0_248 = arith.constant 0 : index
    %273 = vector.load %arg6[%c7_246, %c0_247, %c0_248] : memref<8x1x128xf32, #tpu.memory_space<vmem>>, vector<1x1x128xf32>
    %274 = vector.shape_cast %273 : vector<1x1x128xf32> to vector<1x128xf32>
    %275 = vector.broadcast %274 : vector<1x128xf32> to vector<16x128xf32>
    %276 = arith.addf %272, %275 : vector<16x128xf32>
    %277 = arith.negf %276 : vector<16x128xf32>
    %278 = math.exp %277 : vector<16x128xf32>
    %cst_249 = arith.constant 1.000000e+00 : f32
    %279 = vector.broadcast %cst_249 : f32 to vector<16x128xf32>
    %280 = arith.addf %279, %278 : vector<16x128xf32>
    %281 = arith.divf %279, %280 : vector<16x128xf32>
    %cst_250 = arith.constant 9.99999974E-6 : f32
    %282 = vector.broadcast %cst_250 : f32 to vector<16x128xf32>
    %283 = arith.addf %281, %282 : vector<16x128xf32>
    %284 = arith.divf %264, %283 : vector<16x128xf32>
    %285 = arith.addf %252, %284 : vector<16x128xf32>
    %cst_251 = arith.constant 2.500000e-01 : f32
    %286 = vector.broadcast %cst_251 : f32 to vector<16x128xf32>
    %287 = arith.mulf %285, %286 : vector<16x128xf32>
    %288 = arith.negf %287 : vector<16x128xf32>
    %289 = math.exp %288 : vector<16x128xf32>
    %cst_252 = arith.constant 1.000000e+00 : f32
    %290 = vector.broadcast %cst_252 : f32 to vector<16x128xf32>
    %291 = arith.addf %290, %289 : vector<16x128xf32>
    %292 = arith.divf %290, %291 : vector<16x128xf32>
    %293 = arith.mulf %292, %151 : vector<16x128xf32>
    %294 = arith.addf %293, %151 : vector<16x128xf32>
    %c0_253 = arith.constant 0 : index
    %c0_254 = arith.constant 0 : index
    %295 = vector.load %arg7[%c0_253, %c0_254] : memref<128x64xf32, #tpu.memory_space<vmem>>, vector<128x64xf32>
    %cst_255 = arith.constant dense<0.000000e+00> : vector<16x64xf32>
    %296 = tpu.matmul %149, %295, %cst_255 {dimension_numbers = #tpu.dot_dimension_numbers<[1], [0], [0], [1], [0, 0, 1, 1], [], []>} : vector<16x128xf32>, vector<128x64xf32>, vector<16x64xf32> -> vector<16x64xf32>
    %c0_256 = arith.constant 0 : index
    %c0_257 = arith.constant 0 : index
    %297 = vector.load %arg8[%c0_256, %c0_257] : memref<1x64xf32, #tpu.memory_space<vmem>>, vector<1x64xf32>
    %298 = vector.broadcast %297 : vector<1x64xf32> to vector<16x64xf32>
    %299 = arith.addf %296, %298 : vector<16x64xf32>
    %c0_258 = arith.constant 0 : index
    %c0_259 = arith.constant 0 : index
    %300 = vector.load %arg9[%c0_258, %c0_259] : memref<64x128xf32, #tpu.memory_space<vmem>>, vector<64x128xf32>
    %cst_260 = arith.constant dense<0.000000e+00> : vector<16x128xf32>
    %301 = tpu.matmul %299, %300, %cst_260 {dimension_numbers = #tpu.dot_dimension_numbers<[1], [0], [0], [1], [0, 0, 1, 1], [], []>} : vector<16x64xf32>, vector<64x128xf32>, vector<16x128xf32> -> vector<16x128xf32>
    %c0_261 = arith.constant 0 : index
    %c0_262 = arith.constant 0 : index
    %302 = vector.load %arg10[%c0_261, %c0_262] : memref<1x128xf32, #tpu.memory_space<vmem>>, vector<1x128xf32>
    %303 = vector.broadcast %302 : vector<1x128xf32> to vector<16x128xf32>
    %304 = arith.addf %301, %303 : vector<16x128xf32>
    %305 = arith.negf %304 : vector<16x128xf32>
    %306 = math.exp %305 : vector<16x128xf32>
    %cst_263 = arith.constant 1.000000e+00 : f32
    %307 = vector.broadcast %cst_263 : f32 to vector<16x128xf32>
    %308 = arith.addf %307, %306 : vector<16x128xf32>
    %309 = arith.divf %307, %308 : vector<16x128xf32>
    %310 = arith.negf %294 : vector<16x128xf32>
    %311 = math.exp %310 : vector<16x128xf32>
    %cst_264 = arith.constant 1.000000e+00 : f32
    %312 = vector.broadcast %cst_264 : f32 to vector<16x128xf32>
    %313 = arith.addf %312, %311 : vector<16x128xf32>
    %314 = arith.divf %312, %313 : vector<16x128xf32>
    %c8_i32 = arith.constant 8 : i32
    %315 = tpu.dynamic_rotate %314 by %c8_i32 dim 1 : vector<16x128xf32>, i32 -> vector<16x128xf32>
    %316 = arith.maximumf %314, %315 : vector<16x128xf32>
    %c16_i32 = arith.constant 16 : i32
    %317 = tpu.dynamic_rotate %316 by %c16_i32 dim 1 : vector<16x128xf32>, i32 -> vector<16x128xf32>
    %318 = arith.maximumf %316, %317 : vector<16x128xf32>
    %c32_i32 = arith.constant 32 : i32
    %319 = tpu.dynamic_rotate %318 by %c32_i32 dim 1 : vector<16x128xf32>, i32 -> vector<16x128xf32>
    %320 = arith.maximumf %318, %319 : vector<16x128xf32>
    %c64_i32 = arith.constant 64 : i32
    %321 = tpu.dynamic_rotate %320 by %c64_i32 dim 1 : vector<16x128xf32>, i32 -> vector<16x128xf32>
    %322 = arith.maximumf %320, %321 : vector<16x128xf32>
    %cst_265 = arith.constant dense<0xFF800000> : vector<128xf32>
    %323 = vector.multi_reduction <maximumf>, %322, %cst_265 [0] : vector<16x128xf32> to vector<128xf32>
    %324 = vector.shape_cast %323 : vector<128xf32> to vector<1x128xf32>
    %c0_266 = arith.constant 0 : index
    %c0_267 = arith.constant 0 : index
    %325 = vector.load %arg11[%c0_266, %c0_267] : memref<128x128xf32, #tpu.memory_space<vmem>>, vector<128x128xf32>
    %cst_268 = arith.constant dense<0.000000e+00> : vector<1x128xf32>
    %326 = tpu.matmul %324, %325, %cst_268 {dimension_numbers = #tpu.dot_dimension_numbers<[1], [0], [0], [1], [0, 0, 1, 1], [], []>} : vector<1x128xf32>, vector<128x128xf32>, vector<1x128xf32> -> vector<1x128xf32>
    %c0_269 = arith.constant 0 : index
    %c0_270 = arith.constant 0 : index
    %327 = vector.load %arg12[%c0_269, %c0_270] : memref<1x128xf32, #tpu.memory_space<vmem>>, vector<1x128xf32>
    %328 = arith.addf %326, %327 : vector<1x128xf32>
    %329 = vector.broadcast %328 : vector<1x128xf32> to vector<16x128xf32>
    %330 = arith.mulf %294, %329 : vector<16x128xf32>
    %331 = arith.mulf %309, %330 : vector<16x128xf32>
    %332 = arith.addf %331, %294 : vector<16x128xf32>
    %c0_271 = arith.constant 0 : index
    %c0_272 = arith.constant 0 : index
    %c0_273 = arith.constant 0 : index
    %333 = vector.load %arg13[%c0_271, %c0_272, %c0_273] : memref<1x16x128xf32, #tpu.memory_space<vmem>>, vector<1x16x128xf32>
    %334 = vector.shape_cast %333 : vector<1x16x128xf32> to vector<16x128xf32>
    %335 = vector.shape_cast %332 : vector<16x128xf32> to vector<1x16x128xf32>
    tpu.vector_store %arg13[%c0_271, %c0_272, %c0_273], %335 {strides = array<i32>} : memref<1x16x128xf32, #tpu.memory_space<vmem>>, vector<1x16x128xf32>,
    return
  }
  func.func @transform_0(%arg0: i32) -> (i32, i32, i32) {
    %c0_i32 = arith.constant 0 : i32
    %c0_i32_0 = arith.constant 0 : i32
    %c0_i32_1 = arith.constant 0 : i32
    return %arg0, %c0_i32, %c0_i32_0 : i32, i32, i32
  }
  func.func @transform_1(%arg0: i32) -> (i32, i32, i32) {
    %c0_i32 = arith.constant 0 : i32
    %c0_i32_0 = arith.constant 0 : i32
    %c0_i32_1 = arith.constant 0 : i32
    return %arg0, %c0_i32, %c0_i32_0 : i32, i32, i32
  }
  func.func @transform_2(%arg0: i32) -> (i32, i32, i32) {
    %c0_i32 = arith.constant 0 : i32
    %c0_i32_0 = arith.constant 0 : i32
    %c0_i32_1 = arith.constant 0 : i32
    %c0_i32_2 = arith.constant 0 : i32
    return %c0_i32, %c0_i32_0, %c0_i32_1 : i32, i32, i32
  }
  func.func @transform_3(%arg0: i32) -> (i32, i32, i32) {
    %c0_i32 = arith.constant 0 : i32
    %c0_i32_0 = arith.constant 0 : i32
    %c0_i32_1 = arith.constant 0 : i32
    %c0_i32_2 = arith.constant 0 : i32
    return %c0_i32, %c0_i32_0, %c0_i32_1 : i32, i32, i32
  }
  func.func @transform_4(%arg0: i32) -> (i32, i32, i32) {
    %c0_i32 = arith.constant 0 : i32
    %c0_i32_0 = arith.constant 0 : i32
    %c0_i32_1 = arith.constant 0 : i32
    %c0_i32_2 = arith.constant 0 : i32
    return %c0_i32, %c0_i32_0, %c0_i32_1 : i32, i32, i32
  }
  func.func @transform_5(%arg0: i32) -> (i32, i32, i32) {
    %c0_i32 = arith.constant 0 : i32
    %c0_i32_0 = arith.constant 0 : i32
    %c0_i32_1 = arith.constant 0 : i32
    %c0_i32_2 = arith.constant 0 : i32
    return %c0_i32, %c0_i32_0, %c0_i32_1 : i32, i32, i32
  }
  func.func @transform_6(%arg0: i32) -> (i32, i32) {
    %c0_i32 = arith.constant 0 : i32
    %c0_i32_0 = arith.constant 0 : i32
    %c0_i32_1 = arith.constant 0 : i32
    return %c0_i32, %c0_i32_0 : i32, i32
  }
  func.func @transform_7(%arg0: i32) -> (i32, i32) {
    %c0_i32 = arith.constant 0 : i32
    %c0_i32_0 = arith.constant 0 : i32
    %c0_i32_1 = arith.constant 0 : i32
    return %c0_i32, %c0_i32_0 : i32, i32
  }
  func.func @transform_8(%arg0: i32) -> (i32, i32) {
    %c0_i32 = arith.constant 0 : i32
    %c0_i32_0 = arith.constant 0 : i32
    %c0_i32_1 = arith.constant 0 : i32
    return %c0_i32, %c0_i32_0 : i32, i32
  }
  func.func @transform_9(%arg0: i32) -> (i32, i32) {
    %c0_i32 = arith.constant 0 : i32
    %c0_i32_0 = arith.constant 0 : i32
    %c0_i32_1 = arith.constant 0 : i32
    return %c0_i32, %c0_i32_0 : i32, i32
  }
  func.func @transform_10(%arg0: i32) -> (i32, i32) {
    %c0_i32 = arith.constant 0 : i32
    %c0_i32_0 = arith.constant 0 : i32
    %c0_i32_1 = arith.constant 0 : i32
    return %c0_i32, %c0_i32_0 : i32, i32
  }
  func.func @transform_11(%arg0: i32) -> (i32, i32) {
    %c0_i32 = arith.constant 0 : i32
    %c0_i32_0 = arith.constant 0 : i32
    %c0_i32_1 = arith.constant 0 : i32
    return %c0_i32, %c0_i32_0 : i32, i32
  }
  func.func @transform_12(%arg0: i32) -> (i32, i32, i32) {
    %c0_i32 = arith.constant 0 : i32
    %c0_i32_0 = arith.constant 0 : i32
    %c0_i32_1 = arith.constant 0 : i32
    return %arg0, %c0_i32, %c0_i32_0 : i32, i32, i32
  }
}

</mosaic_0001>

<bundles_post_ra>
// kernel: tpu_custom_call.1
= control target key start
LH: loop header
LB: loop body
LE: loop exit
PB: predicated region body
PF: predicated region fallthrough
CT: control target
= control target key end

     0   :  { %s9114_s0 = inlined_call_operand.hbm [shape: f32[2,16,128], index: 0, kind: input, shape index: {}]   ;;  %s9115_s1 = inlined_call_operand.hbm [shape: f32[2,16,128], index: 1, kind: input, shape index: {}]   ;;  %s9116_s2 = inlined_call_operand.hbm [shape: f32[8,384,128], index: 2, kind: input, shape index: {}]   ;;  %s9117_s3 = inlined_call_operand.hbm [shape: f32[8,1,128], index: 3, kind: input, shape index: {}]   ;;  %s9118_s4 = inlined_call_operand.hbm [shape: f32[8,384,128], index: 4, kind: input, shape index: {}]   ;;  %s9119_s5 = inlined_call_operand.hbm [shape: f32[8,1,128], index: 5, kind: input, shape index: {}]   ;;  %s9120_s6 = inlined_call_operand.vmem [shape: f32[128,64], index: 6, kind: input, shape index: {}]   ;;  %s9121_s7 = inlined_call_operand.hbm [shape: f32[1,64], index: 7, kind: input, shape index: {}]   ;;  %s9122_s8 = inlined_call_operand.hbm [shape: f32[64,128], index: 8, kind: input, shape index: {}]   ;;  %s9123_s9 = inlined_call_operand.hbm [shape: f32[1,128], index: 9, kind: input, shape index: {}]   ;;  %s9124_s10 = inlined_call_operand.hbm [shape: f32[128,128], index: 10, kind: input, shape index: {}]   ;;  %s9125_s11 = inlined_call_operand.hbm [shape: f32[1,128], index: 11, kind: input, shape index: {}]   ;;  %s9126_s12 = inlined_call_operand.hbm [shape: f32[2,16,128], index: 12, kind: output, shape index: {}]  }
   0x1   :  { %9138 = sst [smem:[#allocation32_spill]] %s9115_s1 }
   0x2   :  { %9139 = sst [smem:[#allocation33_spill]] %s9116_s2 }
   0x3   :  { %9140 = sst [smem:[#allocation34_spill]] %s9117_s3 }
   0x4   :  { %9141 = sst [smem:[#allocation35_spill]] %s9118_s4 }
   0x5   :  { %9142 = sst [smem:[#allocation36_spill]] %s9119_s5 }
   0x6   :  { %9143 = sst [smem:[#allocation37_spill]] %s9120_s6 }
   0x7   :  { %9144 = sst [smem:[#allocation38_spill]] %s9121_s7 }
   0x8   :  { %9145 = sst [smem:[#allocation39_spill]] %s9122_s8 }
   0x9   :  { %9146 = sst [smem:[#allocation40_spill]] %s9123_s9 }
   0xa   :  { %9147 = sst [smem:[#allocation41_spill]] %s9124_s10 }
   0xb   :  { %9148 = sst [smem:[#allocation42_spill]] %s9126_s12 }
   0xc   :  { %17 = vsyncpa [#allocation5], 0 }
   0xd   :  { %19 = vsyncpa [#allocation5 + $0x1], 0 }
   0xe   :  { %20 = vsyncpa [#allocation8], 0 }
   0xf   :  { %22 = vsyncpa [#allocation8 + $0x1], 0 }
  0x10   :  { %23 = vsyncpa [#allocation11], 0 }
  0x11   :  { %24 = vsyncpa [#allocation14], 0 }
  0x12   :  { %25 = vsyncpa [#allocation17], 0 }
  0x13   :  { %26 = vsyncpa [#allocation20], 0 }
  0x14   :  { %27 = vsyncpa [#allocation6], 0 }
  0x15   :  { %29 = vsyncpa [#allocation6 + $0x1], 0  ;;  %s8354_s21 = smov 0   ;;  %s8356_s22 = smov 0  }
  0x16   :  { %s8358_s23 = smov 0   ;;  %s8360_s24 = smov 0  }
  0x17 LB: > { %s8265_s25 = smov [#allocation9]   ;;  %s8375_s27 = sadd.s32 4294967295, %s8263_s24   ;;  %s8263_s24 = sphi %s8360_s24, %s9189_s24   ;;  %s8259_s23 = sphi %s8358_s23, %s9188_s23   ;;  %s8255_s22 = sphi %s8356_s22, %s9187_s22   ;;  %s8251_s21 = sphi %s8354_s21, %s9186_s21  }
  0x18   : > { %s340_s26 = sshll.u32 %s8265_s25, 4  ;;  %p4785_p0 = scmp.ge.s32.totalorder %s8263_s24, 1  ;;  %s8380_s26 = int_to_ptr.vmem [resolvable:$true] %s340_s26 }
  0x19   : > { %p9133_p1 = scmp.eq.s32.totalorder %s8375_s27, 0  ;;  %p328_p2 = scmp.lt.s32.totalorder %s8263_s24, 3 }
  0x1a   : > { %s8266_s29 = smov [#allocation10]   ;;  %s8267_s14 = smov [#allocation13]  }
  0x1b   : > { %p8382_p3 = pnand %p4785_p0, %p328_p2  ;;  %s353_s30 = sshll.u32 %s8266_s29, 4  ;;  %s8395_s30 = int_to_ptr.vmem [resolvable:$true] %s353_s30 }
  0x1c   : > { %s8397_s15 = sshll.u32 %s8267_s14, 4  ;;  %s9152_s2 = sld [smem:[#allocation33_spill]]  ;;  %s380_s15 = int_to_ptr.vmem [resolvable:$true] %s8397_s15 }
  0x1d   : > { %s9149_s28 = scalar_select %p8382_p3, 1, 0 }
  0x1e   : > { %p7595_p5 = pneg %p8382_p3 }
  0x1f   : > { %9150 = sst [smem:[#allocation31_spill]] %s9149_s28 }
  0x20   : > { %p8391_p6 = pnand %p7595_p5, %p9133_p1 }
  0x22   : > { %s7861_s18 = scalar_lea.hbm %s9152_s2, 49152  ;;  %p8407_p8 = pneg %p8391_p6 }
  0x23   : > { %p7862_p7 = scmp.ne.s32.totalorder %s9152_s2, %s7861_s18  ;;  %p7868_p11 = scmp.lt.u32.totalorder %s7861_s18, %s9152_s2 }
  0x25   : > { %p7864_p9 = pnand %p8407_p8, %p7862_p7 }
  0x27   : > { %p7865_p10 = pneg %p7864_p9 }
  0x29   : > { %p7870_p12 = pnand %p7868_p11, %p7865_p10 }
  0x2b   : > { %7873 = shalt.err (!%p7870_p12)
}
  0x2c   : > { %s7874_s16 = scalar_lea.vmem %s8380_s26, 49152  ;;  %p7882_p5 = scmp.lt.s32.totalorder %s8380_s26, %s8380_s26 }
  0x2d   : > { %p7875_p13 = scmp.ne.s32.totalorder %s8380_s26, %s7874_s16  ;;  %p7883_p4 = scmp.lt.s32.totalorder %s7874_s16, %s7874_s16 }
  0x2f   : > { %p7877_p0 = pnand %p7875_p13, %p8407_p8  ;;  %p7884_p7 = por %p7883_p4, %p7882_p5 }
  0x31   : > { %p7878_p2 = pneg %p7877_p0 }
  0x33   : > { %p7885_p9 = pnand %p7884_p7, %p7878_p2 }
  0x35   : > { %7888 = shalt.err (!%p7885_p9)
}
  0x36   : > { %s9131_s17 = smov 128   ;;  %s9135_s18 = smov 8  }
  0x37   : > { %7598 = dma.hbm_to_vmem [thread:$0]  (!%p8391_p6), %s9152_s2, 49152, %s8380_s26, [#allocation8], %s9131_s17, %s9131_s17, %s9135_s18  }
  0x38   : > { %s9154_s3 = sld [smem:[#allocation34_spill]] }
  0x3e   : > { %s7889_s16 = scalar_lea.hbm %s9154_s3, 128 }
  0x3f   : > { %p7890_p4 = scmp.ne.s32.totalorder %s9154_s3, %s7889_s16  ;;  %p7896_p12 = scmp.lt.u32.totalorder %s7889_s16, %s9154_s3 }
  0x41   : > { %p7892_p10 = pnand %p7890_p4, %p8407_p8 }
  0x43   : > { %p7893_p11 = pneg %p7892_p10 }
  0x45   : > { %p7898_p13 = pnand %p7896_p12, %p7893_p11 }
  0x47   : > { %7901 = shalt.err (!%p7898_p13)
}
  0x48   : > { %s7902_s26 = scalar_lea.vmem %s8395_s30, 128  ;;  %p7910_p7 = scmp.lt.s32.totalorder %s8395_s30, %s8395_s30 }
  0x49   : > { %p7903_p0 = scmp.ne.s32.totalorder %s8395_s30, %s7902_s26  ;;  %p7911_p9 = scmp.lt.s32.totalorder %s7902_s26, %s7902_s26 }
  0x4b   : > { %p7905_p2 = pnand %p7903_p0, %p8407_p8  ;;  %p7912_p4 = por %p7911_p9, %p7910_p7 }
  0x4d   : > { %p7906_p5 = pneg %p7905_p2 }
  0x4f   : > { %p7913_p10 = pnand %p7912_p4, %p7906_p5 }
  0x51   : > { %7916 = shalt.err (!%p7913_p10)
}
  0x52   : > { %s8270_s6 = smov 16   ;;  %s8271_s1 = smov 1  }
  0x53   : > { %7601 = dma.hbm_to_vmem [thread:$0]  (!%p8391_p6), %s9154_s3, 128, %s8395_s30, [#allocation11], %s8270_s6, %s8270_s6, %s8271_s1  }
  0x54   : > { %s9155_s5 = sld [smem:[#allocation36_spill]] }
  0x5a   : > { %s7917_s29 = scalar_lea.hbm %s9155_s5, 128 }
  0x5b   : > { %p7918_p11 = scmp.ne.s32.totalorder %s9155_s5, %s7917_s29  ;;  %p7924_p0 = scmp.lt.u32.totalorder %s7917_s29, %s9155_s5 }
  0x5d   : > { %p7920_p12 = pnand %p7918_p11, %p8407_p8 }
  0x5f   : > { %p7921_p13 = pneg %p7920_p12 }
  0x61   : > { %p7926_p2 = pnand %p7924_p0, %p7921_p13 }
  0x63   : > { %7929 = shalt.err (!%p7926_p2)
}
  0x64   : > { %s7930_s12 = scalar_lea.vmem %s380_s15, 128  ;;  %p7938_p4 = scmp.lt.s32.totalorder %s380_s15, %s380_s15 }
  0x65   : > { %p7931_p5 = scmp.ne.s32.totalorder %s380_s15, %s7930_s12  ;;  %p7939_p10 = scmp.lt.s32.totalorder %s7930_s12, %s7930_s12 }
  0x67   : > { %p7933_p7 = pnand %p7931_p5, %p8407_p8  ;;  %p7940_p1 = por %p7939_p10, %p7938_p4 }
  0x69   : > { %p7934_p9 = pneg %p7933_p7 }
  0x6b   : > { %p7941_p3 = pnand %p7940_p1, %p7934_p9 }
  0x6d   : > { %7944 = shalt.err (!%p7941_p3)
}
  0x6e   : > { %7607 = dma.hbm_to_vmem [thread:$0]  (!%p8391_p6), %s9155_s5, 128, %s380_s15, [#allocation14], %s8270_s6, %s8270_s6, %s8271_s1  }
  0x6f   : > { %s8272_s17 = smov [#allocation16]   ;;  %s8273_s20 = smov [#allocation19]  }
  0x70   : > { %s406_s19 = sshll.u32 %s8272_s17, 4  ;;  %s430_s29 = sshll.u32 %s8273_s20, 4  ;;  %s407_s19 = int_to_ptr.vmem [resolvable:$true] %s406_s19  ;;  %s431_s29 = int_to_ptr.vmem [resolvable:$true] %s430_s29 }
  0x71   : > { %s9156_s8 = sld [smem:[#allocation39_spill]] }
  0x77   : > { %s7945_s26 = scalar_lea.hbm %s9156_s8, 1024 }
  0x78   : > { %p7946_p1 = scmp.ne.s32.totalorder %s9156_s8, %s7945_s26  ;;  %p7952_p12 = scmp.lt.u32.totalorder %s7945_s26, %s9156_s8 }
  0x7a   : > { %p7948_p3 = pnand %p7946_p1, %p8407_p8 }
  0x7c   : > { %p7949_p11 = pneg %p7948_p3 }
  0x7e   : > { %p7954_p13 = pnand %p7952_p12, %p7949_p11 }
  0x80   : > { %7957 = shalt.err (!%p7954_p13)
}
  0x81   : > { %s7958_s15 = scalar_lea.vmem %s407_s19, 1024  ;;  %p7966_p7 = scmp.lt.s32.totalorder %s407_s19, %s407_s19 }
  0x82   : > { %p7959_p0 = scmp.ne.s32.totalorder %s407_s19, %s7958_s15  ;;  %p7967_p9 = scmp.lt.s32.totalorder %s7958_s15, %s7958_s15 }
  0x84   : > { %p7961_p2 = pnand %p7959_p0, %p8407_p8  ;;  %p7968_p4 = por %p7967_p9, %p7966_p7 }
  0x86   : > { %p7962_p5 = pneg %p7961_p2 }
  0x88   : > { %p7969_p10 = pnand %p7968_p4, %p7962_p5 }
  0x8a   : > { %7972 = shalt.err (!%p7969_p10)
}
  0x8b   : > { %s9157_s18 = smov 8   ;;  %s9158_s6 = smov 128  }
  0x8c   : > { %7613 = dma.hbm_to_vmem [thread:$0]  (!%p8391_p6), %s9156_s8, 1024, %s407_s19, [#allocation17], %s9158_s6, %s9158_s6, %s9157_s18  }
  0x8d   : > { %s9159_s10 = sld [smem:[#allocation41_spill]] }
  0x93   : > { %s7973_s20 = scalar_lea.hbm %s9159_s10, 2048 }
  0x94   : > { %p7974_p1 = scmp.ne.s32.totalorder %s9159_s10, %s7973_s20  ;;  %p7980_p12 = scmp.lt.u32.totalorder %s7973_s20, %s9159_s10 }
  0x96   : > { %p7976_p3 = pnand %p7974_p1, %p8407_p8 }
  0x98   : > { %p7977_p11 = pneg %p7976_p3 }
  0x9a   : > { %p7982_p13 = pnand %p7980_p12, %p7977_p11 }
  0x9c   : > { %7985 = shalt.err (!%p7982_p13)
}
  0x9d   : > { %s7986_s30 = scalar_lea.vmem %s431_s29, 2048  ;;  %p7994_p7 = scmp.lt.s32.totalorder %s431_s29, %s431_s29 }
  0x9e   : > { %p7987_p0 = scmp.ne.s32.totalorder %s431_s29, %s7986_s30  ;;  %p7995_p9 = scmp.lt.s32.totalorder %s7986_s30, %s7986_s30 }
  0xa0   : > { %p7989_p2 = pnand %p7987_p0, %p8407_p8  ;;  %p7996_p4 = por %p7995_p9, %p7994_p7 }
  0xa2   : > { %p7990_p5 = pneg %p7989_p2 }
  0xa4   : > { %p7997_p10 = pnand %p7996_p4, %p7990_p5 }
  0xa6   : > { %8000 = shalt.err (!%p7997_p10)
}
  0xa7   : > { %7619 = dma.hbm_to_vmem [thread:$0]  (!%p8391_p6), %s9159_s10, 2048, %s431_s29, [#allocation20], %s9158_s6, %s9158_s6, %s9157_s18  }
  0xa8   : > { %s8274_s2 = smov [#allocation12]   ;;  %s8275_s28 = smov [#allocation15]  }
  0xa9   : > { %s366_s1 = sshll.u32 %s8274_s2, 4  ;;  %s396_s17 = sshll.u32 %s8275_s28, 4  ;;  %s367_s1 = int_to_ptr.vmem [resolvable:$true] %s366_s1  ;;  %s397_s17 = int_to_ptr.vmem [resolvable:$true] %s396_s17 }
  0xaa   : > { %s9160_s4 = sld [smem:[#allocation35_spill]] }
  0xb0   : > { %s8001_s16 = scalar_lea.hbm %s9160_s4, 49152 }
  0xb1   : > { %p8002_p1 = scmp.ne.s32.totalorder %s9160_s4, %s8001_s16  ;;  %p8008_p12 = scmp.lt.u32.totalorder %s8001_s16, %s9160_s4 }
  0xb3   : > { %p8004_p3 = pnand %p8002_p1, %p8407_p8 }
  0xb5   : > { %p8005_p11 = pneg %p8004_p3 }
  0xb7   : > { %p8010_p13 = pnand %p8008_p12, %p8005_p11 }
  0xb9   : > { %8013 = shalt.err (!%p8010_p13)
}
  0xba   : > { %s8014_s29 = scalar_lea.vmem %s367_s1, 49152  ;;  %p8022_p7 = scmp.lt.s32.totalorder %s367_s1, %s367_s1 }
  0xbb   : > { %p8015_p0 = scmp.ne.s32.totalorder %s367_s1, %s8014_s29  ;;  %p8023_p9 = scmp.lt.s32.totalorder %s8014_s29, %s8014_s29 }
  0xbd   : > { %p8017_p2 = pnand %p8015_p0, %p8407_p8  ;;  %p8024_p4 = por %p8023_p9, %p8022_p7 }
  0xbf   : > { %p8018_p5 = pneg %p8017_p2 }
  0xc1   : > { %p8025_p10 = pnand %p8024_p4, %p8018_p5 }
  0xc3   : > { %8028 = shalt.err (!%p8025_p10)
}
  0xc4   : > { %7604 = dma.hbm_to_vmem [thread:$0]  (!%p8391_p6), %s9160_s4, 49152, %s367_s1, [#allocation11], %s9158_s6, %s9158_s6, %s9157_s18  }
  0xc5   : > { %s9161_s7 = sld [smem:[#allocation38_spill]] }
  0xcb   : > { %s8029_s14 = scalar_lea.hbm %s9161_s7, 16 }
  0xcc   : > { %p8030_p1 = scmp.ne.s32.totalorder %s9161_s7, %s8029_s14  ;;  %p8036_p12 = scmp.lt.u32.totalorder %s8029_s14, %s9161_s7 }
  0xce   : > { %p8032_p3 = pnand %p8030_p1, %p8407_p8 }
  0xd0   : > { %p8033_p11 = pneg %p8032_p3 }
  0xd2   : > { %p8038_p13 = pnand %p8036_p12, %p8033_p11 }
  0xd4   : > { %8041 = shalt.err (!%p8038_p13)
}
  0xd5   : > { %s8042_s19 = scalar_lea.vmem %s397_s17, 16  ;;  %s8049_s1 = scalar_lea.vmem %s397_s17, 32 }
  0xd6   : > { %p8043_p0 = scmp.ne.s32.totalorder %s397_s17, %s8042_s19  ;;  %p8050_p7 = scmp.lt.s32.totalorder %s397_s17, %s397_s17 }
  0xd7   : > { %p8051_p9 = scmp.lt.s32.totalorder %s8049_s1, %s8042_s19 }
  0xd8   : > { %p8045_p2 = pnand %p8043_p0, %p8407_p8 }
  0xd9   : > { %p8052_p4 = por %p8051_p9, %p8050_p7 }
  0xda   : > { %p8046_p5 = pneg %p8045_p2 }
  0xdc   : > { %p8053_p10 = pnand %p8052_p4, %p8046_p5 }
  0xde   : > { %8056 = shalt.err (!%p8053_p10)
}
  0xdf   : > { %7610 = dma.hbm_to_vmem [thread:$0]  (!%p8391_p6), %s9161_s7, 16, %s397_s17, [#allocation14]  }
  0xe0   : > { %s8276_s2 = smov [#allocation18]   ;;  %s8277_s20 = smov [#allocation21]  }
  0xe1   : > { %s420_s28 = sshll.u32 %s8276_s2, 4  ;;  %s444_s14 = sshll.u32 %s8277_s20, 4  ;;  %s421_s28 = int_to_ptr.vmem [resolvable:$true] %s420_s28  ;;  %s445_s14 = int_to_ptr.vmem [resolvable:$true] %s444_s14 }
  0xe2   : > { %s9162_s9 = sld [smem:[#allocation40_spill]] }
  0xe8   : > { %s8057_s12 = scalar_lea.hbm %s9162_s9, 16 }
  0xe9   : > { %p8058_p1 = scmp.ne.s32.totalorder %s9162_s9, %s8057_s12  ;;  %p8064_p12 = scmp.lt.u32.totalorder %s8057_s12, %s9162_s9 }
  0xeb   : > { %p8060_p3 = pnand %p8058_p1, %p8407_p8 }
  0xed   : > { %p8061_p11 = pneg %p8060_p3 }
  0xef   : > { %p8066_p13 = pnand %p8064_p12, %p8061_p11 }
  0xf1   : > { %8069 = shalt.err (!%p8066_p13)
}
  0xf2   : > { %s8070_s17 = scalar_lea.vmem %s421_s28, 16  ;;  %s8077_s15 = scalar_lea.vmem %s421_s28, 32 }
  0xf3   : > { %p8071_p0 = scmp.ne.s32.totalorder %s421_s28, %s8070_s17  ;;  %p8078_p7 = scmp.lt.s32.totalorder %s421_s28, %s421_s28 }
  0xf4   : > { %p8079_p9 = scmp.lt.s32.totalorder %s8077_s15, %s8070_s17 }
  0xf5   : > { %p8073_p2 = pnand %p8071_p0, %p8407_p8 }
  0xf6   : > { %p8080_p4 = por %p8079_p9, %p8078_p7 }
  0xf7   : > { %p8074_p5 = pneg %p8073_p2 }
  0xf9   : > { %p8081_p10 = pnand %p8080_p4, %p8074_p5 }
  0xfb   : > { %8084 = shalt.err (!%p8081_p10)
}
  0xfc   : > { %7616 = dma.hbm_to_vmem [thread:$0]  (!%p8391_p6), %s9162_s9, 16, %s421_s28, [#allocation17]  }
  0xfd   : > { %s8085_s12 = scalar_lea.hbm %s9125_s11, 16 }
  0xfe   : > { %p8086_p1 = scmp.ne.s32.totalorder %s9125_s11, %s8085_s12  ;;  %p8092_p12 = scmp.lt.u32.totalorder %s8085_s12, %s9125_s11 }
 0x100   : > { %p8088_p3 = pnand %p8086_p1, %p8407_p8 }
 0x102   : > { %p8089_p11 = pneg %p8088_p3 }
 0x104   : > { %p8094_p13 = pnand %p8092_p12, %p8089_p11 }
 0x106   : > { %8097 = shalt.err (!%p8094_p13)
}
 0x107   : > { %s8098_s17 = scalar_lea.vmem %s445_s14, 16  ;;  %s8105_s28 = scalar_lea.vmem %s445_s14, 32 }
 0x108   : > { %p8099_p0 = scmp.ne.s32.totalorder %s445_s14, %s8098_s17  ;;  %p8106_p7 = scmp.lt.s32.totalorder %s445_s14, %s445_s14 }
 0x109   : > { %p8107_p9 = scmp.lt.s32.totalorder %s8105_s28, %s8098_s17 }
 0x10a   : > { %p8101_p2 = pnand %p8099_p0, %p8407_p8 }
 0x10b   : > { %p8108_p4 = por %p8107_p9, %p8106_p7 }
 0x10c   : > { %p8102_p5 = pneg %p8101_p2 }
 0x10e   : > { %p8109_p10 = pnand %p8108_p4, %p8102_p5 }
 0x110   : > { %8112 = shalt.err (!%p8109_p10)
}
 0x111   : > { %7622 = dma.hbm_to_vmem [thread:$0]  (!%p8391_p6), %s9125_s11, 16, %s445_s14, [#allocation20]  }
 0x112   : > { %s4784_s25 = sadd.s32 4294967294, %s8263_s24   ;;  %s8592_s13 = sadd.s32 1, %s8263_s24  }
 0x113   : > { %s42_s20 = sadd.s32 1, %s8259_s23  ;;  %s39_s16 = ssub.s32 %s8263_s24, %s8592_s13 }
 0x114   : > { %p49_p8 = scmp.ne.s32.totalorder %s8259_s23, %s8255_s22  ;;  %p40_p1 = scmp.eq.s32.totalorder %s39_s16, 0 }
 0x115   : > { %p50_p3 = scmp.eq.s32.totalorder %s8263_s24, 0  ;;  %p55_p11 = scmp.ne.s32.totalorder %s8255_s22, %s8251_s21 }
 0x116   : > { %p315_p12 = scmp.eq.s32.totalorder %s8375_s27, 1  ;;  %p9163_p0 = scmp.eq.s32.totalorder %s8375_s27, 0 }
 0x117   : > { %s8604_s26 = scalar_select %p40_p1, %s8259_s23, %s42_s20  }
 0x118   : > { %p51_p13 = por %p50_p3, %p49_p8  ;;  %p8608_p2 = por %p9163_p0, %p55_p11 }
 0x119   : > { %p8612_p6 = por %p315_p12, %p49_p8  ;;  %p321_p5 = scmp.eq.s32.totalorder %s4784_s25, 1 }
 0x11a   : > { %p7643_p7 = scmp.lt.s32.totalorder %s8263_s24, 2  ;;  %s455_s30 = sand.u32 1, %s8259_s23  }
 0x11b   : > { %s9165_s14 = scalar_select %p8612_p6, 1, 0 }
 0x11c   : > { %p8618_p9 = por %p321_p5, %p55_p11  ;;  %s8622_s1 = sshll.u32 %s455_s30, 4 }
 0x11d   : > { %s4864_s29 = sshll.u32 %s8263_s24, 8  ;;  %s459_s2 = scalar_lea.vmem [#allocation4], %s8622_s1 }
 0x11e   : > { %s9166_s19 = scalar_select %p8618_p9, 1, 0 }
 0x11f   : > { %s8628_s15 = scalar_lea.hbm %s9114_s0, %s4864_s29  ;;  %s466_s25 = sshll.u32 %s459_s2, 4  ;;  %s8635_s25 = int_to_ptr.vmem [resolvable:$true] %s466_s25 }
 0x120   : > { %p8631_p4 = pnand %p7643_p7, %p51_p13  ;;  %s9168_s4 = sld [smem:[#allocation32_spill]] }
 0x121   : > { %s8642_s28 = scalar_lea.sflag [#allocation5], %s455_s30  ;;  %s8113_s5 = scalar_lea.hbm %s8628_s15, 256 }
 0x122   : > { %p8114_p10 = scmp.ne.s32.totalorder %s8628_s15, %s8113_s5  ;;  %p8115_p8 = pneg %p8631_p4 }
 0x123   : > { %s8118_s8 = scalar_lea.hbm %s9114_s0, 512  ;;  %p8119_p11 = scmp.lt.u32.totalorder %s8628_s15, %s9114_s0 }
 0x124   : > { %p8116_p1 = pnand %p8115_p8, %p8114_p10  ;;  %p8120_p12 = scmp.lt.u32.totalorder %s8118_s8, %s8113_s5 }
 0x125   : > { %p8122_p0 = scmp.lt.u32.totalorder %s8113_s5, %s8628_s15 }
 0x126   : > { %s8640_s17 = scalar_lea.hbm %s9168_s4, %s4864_s29  ;;  %p8117_p3 = pneg %p8116_p1 }
 0x127   : > { %p8121_p13 = por %p8120_p12, %p8119_p11 }
 0x129   : > { %p8123_p5 = por %p8122_p0, %p8121_p13 }
 0x12b   : > { %p8124_p7 = pnand %p8123_p5, %p8117_p3 }
 0x12d   : > { %8127 = shalt.err (!%p8124_p7)
}
 0x12e   : > { %s8128_s3 = scalar_lea.vmem %s8635_s25, 256  ;;  %s8278_s7 = smov [#allocation4]  }
 0x12f   : > { %p8129_p10 = scmp.ne.s32.totalorder %s8635_s25, %s8128_s3  ;;  %s8133_s30 = sshll.u32 %s8278_s7, 4  ;;  %s8134_s30 = int_to_ptr.vmem [resolvable:$false] %s8133_s30 }
 0x130   : > { %s8135_s9 = scalar_lea.vmem %s8134_s30, 512  ;;  %p8136_p6 = scmp.lt.s32.totalorder %s8635_s25, %s8134_s30 }
 0x131   : > { %p8131_p1 = pnand %p8129_p10, %p8115_p8  ;;  %p8137_p11 = scmp.lt.s32.totalorder %s8135_s9, %s8128_s3 }
 0x133   : > { %p8132_p9 = pneg %p8131_p1  ;;  %p8138_p12 = por %p8137_p11, %p8136_p6 }
 0x135   : > { %p8139_p13 = pnand %p8138_p12, %p8132_p9 }
 0x137   : > { %8142 = shalt.err (!%p8139_p13)
}
 0x138   : > { %7626 = dma.hbm_to_vmem [thread:$0]  (!%p8631_p4), %s8628_s15, 256, %s8635_s25, %s8642_s28, %s9158_s6, %s9158_s6, %s9157_s18  }
 0x139   : > { %s480_s5 = scalar_lea.vmem [#allocation7], %s8622_s1  ;;  %s476_s10 = sand.u32 1, %s8263_s24  }
 0x13a   : > { %s487_s8 = sshll.u32 %s480_s5, 4  ;;  %s8677_s29 = scalar_lea.sflag [#allocation8], %s476_s10  ;;  %s8675_s8 = int_to_ptr.vmem [resolvable:$true] %s487_s8 }
 0x13b   : > { %s8143_s16 = scalar_lea.hbm %s8640_s17, 256  ;;  %s8148_s7 = scalar_lea.hbm %s9168_s4, 512 }
 0x13c   : > { %p8144_p6 = scmp.ne.s32.totalorder %s8640_s17, %s8143_s16  ;;  %p8149_p0 = scmp.lt.u32.totalorder %s8640_s17, %s9168_s4 }
 0x13d   : > { %p8150_p5 = scmp.lt.u32.totalorder %s8148_s7, %s8143_s16  ;;  %p8152_p10 = scmp.lt.u32.totalorder %s8143_s16, %s8640_s17 }
 0x13e   : > { %p8146_p9 = pnand %p8144_p6, %p8115_p8 }
 0x13f   : > { %p8151_p7 = por %p8150_p5, %p8149_p0 }
 0x140   : > { %p8147_p3 = pneg %p8146_p9 }
 0x141   : > { %p8153_p1 = por %p8152_p10, %p8151_p7 }
 0x143   : > { %p8154_p11 = pnand %p8153_p1, %p8147_p3 }
 0x145   : > { %8157 = shalt.err (!%p8154_p11)
}
 0x146   : > { %s8158_s1 = scalar_lea.vmem %s8675_s8, 256  ;;  %s8279_s15 = smov [#allocation7]  }
 0x147   : > { %p8159_p12 = scmp.ne.s32.totalorder %s8675_s8, %s8158_s1  ;;  %s8163_s25 = sshll.u32 %s8279_s15, 4  ;;  %s8164_s25 = int_to_ptr.vmem [resolvable:$false] %s8163_s25 }
 0x148   : > { %s8165_s28 = scalar_lea.vmem %s8164_s25, 512  ;;  %p8166_p9 = scmp.lt.s32.totalorder %s8675_s8, %s8164_s25 }
 0x149   : > { %p8161_p13 = pnand %p8159_p12, %p8115_p8  ;;  %p8167_p0 = scmp.lt.s32.totalorder %s8165_s28, %s8158_s1 }
 0x14b   : > { %p8162_p6 = pneg %p8161_p13  ;;  %p8168_p5 = por %p8167_p0, %p8166_p9 }
 0x14d   : > { %p8169_p7 = pnand %p8168_p5, %p8162_p6 }
 0x14f   : > { %8172 = shalt.err (!%p8169_p7)
}
 0x150   : > { %7629 = dma.hbm_to_vmem [thread:$0]  (!%p8631_p4), %s8640_s17, 256, %s8675_s8, %s8677_s29, %s9158_s6, %s9158_s6, %s9157_s18  }
 0x151   : > { %s9169_s5 = sld [smem:[#allocation31_spill]] }
 0x157   : > { %p9170_p8 = scmp.ne.s32.totalorder %s9169_s5, 0 }
 0x158   : > { %s8709_s10 = sand.u32 (!%p9170_p8), 1, %s8255_s22  }
 0x159   : > { %499 = sbr.rel (%p9170_p8) target bundleno = 3530 (0xdca), region = 68  ;;  %s8712_s16 = sshll.u32 (!%p9170_p8), %s8709_s10, 4 }
 0x15a   : > { %s502_s20 = scalar_lea.sflag (!%p9170_p8), [#allocation5], %s8709_s10  ;;  %s505_s2 = scalar_lea.vmem (!%p9170_p8), [#allocation4], %s8712_s16 }
 0x160   : > { %8218 = dma.done.wait (%p8608_p2), %s502_s20, 256  }
 0x161   : > { %8220 = vsyncadd (%p8608_p2), %s502_s20, 4294967040  ;;  %s510_s18 = sand.u32 1, %s8375_s27   ;;  %s514_s17 = scalar_lea.vmem [#allocation7], %s8712_s16 }
 0x162   : > { %s511_s6 = scalar_lea.sflag [#allocation8], %s510_s18 }
 0x163   : > { %8222 = dma.done.wait (%p8608_p2), %s511_s6, 256  }
 0x164   : > { %8224 = vsyncadd (%p8608_p2), %s511_s6, 4294967040  ;;  %p9171_p4 = scmp.eq.s32.totalorder %s8375_s27, 0 }
 0x166   : > { %8226 = dma.done.wait (%p9171_p4), [#allocation8], 49152   ;;  %p9172_p3 = pmov %p9171_p4 }
 0x168   : > { %8228 = vsyncadd (%p9172_p3), [#allocation8], 4294918144  ;;  %p9173_p10 = pmov %p9172_p3 }
 0x169   : > { %p9174_p1 = pmov %p9172_p3 }
 0x16a   : > { %8230 = dma.done.wait (%p9173_p10), [#allocation11], 49280  }
 0x16b   : > { %8232 = vsyncadd (%p9174_p1), [#allocation11], 4294918016  ;;  %p9175_p11 = pmov %p9174_p1 }
 0x16c   : > { %p9176_p12 = pmov %p9174_p1 }
 0x16d   : > { %8234 = dma.done.wait (%p9175_p11), [#allocation14], 144  }
 0x16e   : > { %8236 = vsyncadd (%p9176_p12), [#allocation14], 4294967152  ;;  %p9177_p2 = pmov %p9174_p1 }
 0x16f   : > { %p9178_p13 = pmov %p9174_p1 }
 0x170   : > { %8238 = dma.done.wait (%p9177_p2), [#allocation17], 1040  }
 0x171   : > { %8240 = vsyncadd (%p9178_p13), [#allocation17], 4294966256  ;;  %p9179_p6 = pmov %p9174_p1 }
 0x172   : > { %p9180_p9 = pmov %p9174_p1 }
 0x173   : > { %8242 = dma.done.wait (%p9179_p6), [#allocation20], 2064  }
 0x174   : > { %8244 = vsyncadd (%p9180_p9), [#allocation20], 4294965232  ;;  %v8280_v0 = vmov 0.0   ;;  %v626_v1 = vld [vmem:[#allocation9 + $0x80] sm:$0xff]  ;;  %v627_v2 = vld [vmem:[#allocation9 + $0x88] sm:$0xff]  ;;  %s9181_s29 = sld [smem:[#allocation37_spill]] }
 0x175   : > { %596 = vst [vmem:[#allocation2] sm:$0x1f] %v8280_v0  ;;  %598 = vst [vmem:[#allocation3] sm:$0x1f] %v8280_v0  ;;  %v610_v3 = vld [vmem:[#allocation9] sm:$0xff]  ;;  %v6457_v4 = vpack.c.bf16 %v627_v2, %v626_v1  ;;  %v611_v5 = vld [vmem:[#allocation9 + $0x8] sm:$0xff] }
 0x176   : > { %599 = vst [vmem:[#allocation3 + $0x15] sm:$0x1f] %v8280_v0  ;;  %597 = vst [vmem:[#allocation2 + $0x15] sm:$0x1f] %v8280_v0  ;;  %v642_v6 = vld [vmem:[#allocation9 + $0x100] sm:$0xff]  ;;  %v643_v7 = vld [vmem:[#allocation9 + $0x108] sm:$0xff]  ;;  %v6459_v8 = vpack.c.bf16 %v611_v5, %v610_v3 }
 0x177   : > { %v6489_v9 = vpack.c.bf16 %v643_v7, %v642_v6  ;;  %v628_v10 = vld [vmem:[#allocation9 + $0x90] sm:$0xff]  ;;  %v629_v11 = vld [vmem:[#allocation9 + $0x98] sm:$0xff]  ;;  %6458 = vmatprep.subr.bf16.mxu0 %v6457_v4  ;;  %v630_v19 = vld [vmem:[#allocation9 + $0xa0] sm:$0xff]  ;;  %vm4353_vm0 = vcmask 523264   ;;  %s8281_s12 = smov 8   ;;  %s8282_s8 = smov 16  }
 0x178   : > { %v612_v12 = vld [vmem:[#allocation9 + $0x10] sm:$0xff]  ;;  %v6461_v13 = vpack.c.bf16 %v629_v11, %v628_v10  ;;  %v613_v14 = vld [vmem:[#allocation9 + $0x18] sm:$0xff]  ;;  %6460 = vmatpush3.bf16.msra.mxu0 %v6459_v8  ;;  %v631_v20 = vld [vmem:[#allocation9 + $0xa8] sm:$0xff]  ;;  %s8284_s3 = smov 32   ;;  %s8285_s7 = smov 64   ;;  %vm8286_vm1 = vmmov 0  }
 0x179   : > { %v644_v15 = vld [vmem:[#allocation9 + $0x110] sm:$0xff]  ;;  %v645_v16 = vld [vmem:[#allocation9 + $0x118] sm:$0xff]  ;;  %6490 = vmatprep.subr.bf16.mxu1 %v6489_v9  ;;  %v6463_v17 = vpack.c.bf16 %v613_v14, %v612_v12  ;;  %v614_v21 = vld [vmem:[#allocation9 + $0x20] sm:$0xff]  ;;  %v6465_v22 = vpack.c.bf16 %v631_v20, %v630_v19  ;;  %s4866_s30 = sshll.u32 %s8375_s27, 8  ;;  %s595_s9 = scalar_lea.vmem [#allocation22], %s8712_s16 }
 0x17a   : > { %v6493_v18 = vpack.c.bf16 %v645_v16, %v644_v15  ;;  %6462 = vmatprep.subr.bf16.mxu0 %v6461_v13  ;;  %6492 = vmatpush3.bf16.msra.mxu1 %v6489_v9  ;;  %v615_v23 = vld [vmem:[#allocation9 + $0x28] sm:$0xff]  ;;  %v646_v24 = vld [vmem:[#allocation9 + $0x120] sm:$0xff]  ;;  %v632_v27 = vld [vmem:[#allocation9 + $0xb0] sm:$0xff]  ;;  %s4603_s1 = sshll.u32 %s595_s9, 4  ;;  %s9182_s28 = sld [smem:[#allocation42_spill]]  ;;  %s9069_s1 = int_to_ptr.vmem [resolvable:$true] %s4603_s1 }
 0x17b   : > { %v647_v25 = vld [vmem:[#allocation9 + $0x128] sm:$0xff]  ;;  %v633_v28 = vld [vmem:[#allocation9 + $0xb8] sm:$0xff]  ;;  %v648_v29 = vld [vmem:[#allocation9 + $0x130] sm:$0xff]  ;;  %v6467_v31 = vpack.c.bf16 %v615_v23, %v614_v21  ;;  %s4590_s27 = scalar_lea.sflag [#allocation6], %s8709_s10  ;;  %s8173_s16 = scalar_lea.vmem %s9069_s1, 256 }
 0x17c   : > { %6494 = vmatprep.subr.bf16.mxu1 %v6493_v18  ;;  %v6497_v26 = vpack.c.bf16 %v647_v25, %v646_v24  ;;  %v649_v30 = vld [vmem:[#allocation9 + $0x138] sm:$0xff]  ;;  %6464 = vmatpush3.bf16.msra.mxu0 %v6463_v17  ;;  %v6469_v32 = vpack.c.bf16 %v633_v28, %v632_v27  ;;  %v616_v33 = vld [vmem:[#allocation9 + $0x30] sm:$0xff]  ;;  %v634_v36 = vld [vmem:[#allocation9 + $0xc0] sm:$0xff]  ;;  %p8174_p0 = scmp.ne.s32.totalorder %s9069_s1, %s8173_s16  ;;  %p9183_p5 = scmp.ne.s32.totalorder %s9165_s14, 0 }
 0x17d   : > { %6466 = vmatprep.subr.bf16.mxu0 %v6465_v22  ;;  %v617_v34 = vld [vmem:[#allocation9 + $0x38] sm:$0xff]  ;;  %v6501_v35 = vpack.c.bf16 %v649_v30, %v648_v29  ;;  %v635_v37 = vld [vmem:[#allocation9 + $0xc8] sm:$0xff]  ;;  %v650_v38 = vld [vmem:[#allocation9 + $0x140] sm:$0xff]  ;;  %s8287_s20 = smov [#allocation22]  }
 0x17e   : > { %6496 = vmatpush3.bf16.msra.mxu1 %v6493_v18  ;;  %v651_v39 = vld [vmem:[#allocation9 + $0x148] sm:$0xff]  ;;  %v6471_v40 = vpack.c.bf16 %v617_v34, %v616_v33  ;;  %v6473_v41 = vpack.c.bf16 %v635_v37, %v634_v36  ;;  %v618_v42 = vld [vmem:[#allocation9 + $0x40] sm:$0xff]  ;;  %v636_v45 = vld [vmem:[#allocation9 + $0xd0] sm:$0xff]  ;;  %p8175_p7 = pnand %p8174_p0, %p9183_p5 }
 0x17f   : > { %6498 = vmatprep.subr.bf16.mxu1 %v6497_v26  ;;  %v619_v43 = vld [vmem:[#allocation9 + $0x48] sm:$0xff]  ;;  %v6505_v44 = vpack.c.bf16 %v651_v39, %v650_v38  ;;  %v637_v46 = vld [vmem:[#allocation9 + $0xd8] sm:$0xff]  ;;  %v652_v47 = vld [vmem:[#allocation9 + $0x150] sm:$0xff] }
 0x180   : > { %6468 = vmatpush3.bf16.msra.mxu0 %v6467_v31  ;;  %v653_v48 = vld [vmem:[#allocation9 + $0x158] sm:$0xff]  ;;  %v8752_v49 = vld [vmem:[%s505_s2] sm:$0xff]  ;;  %v6475_v50 = vpack.c.bf16 %v619_v43, %v618_v42  ;;  %v6477_v52 = vpack.c.bf16 %v637_v46, %v636_v45  ;;  %v639_v57 = vld [vmem:[#allocation9 + $0xe8] sm:$0xff]  ;;  %s9065_s5 = scalar_lea.hbm %s9182_s28, %s4866_s30  ;;  %p8176_p8 = pneg %p8175_p7 }
 0x181   : > { %6470 = vmatprep.subr.bf16.mxu0 %v6469_v32  ;;  %602 = vst [vmem:[#allocation2 + $0x5] sm:$0xff] %v8752_v49  ;;  %729 = vmatprep.mubr.f32.mxu0 %v8752_v49  ;;  %v8758_v51 = vld [vmem:[%s505_s2 + $0x8] sm:$0xff]  ;;  %v620_v53 = vld [vmem:[#allocation9 + $0x50] sm:$0xff]  ;;  %v6509_v55 = vpack.c.bf16 %v653_v48, %v652_v47  ;;  %v638_v56 = vld [vmem:[#allocation9 + $0xe0] sm:$0xff]  ;;  %s8177_s2 = sshll.u32 %s8287_s20, 4  ;;  %s8178_s2 = int_to_ptr.vmem [resolvable:$false] %s8177_s2 }
 0x182   : > { %6500 = vmatpush3.bf16.msra.mxu1 %v6497_v26  ;;  %v621_v54 = vld [vmem:[#allocation9 + $0x58] sm:$0xff]  ;;  %603 = vst [vmem:[#allocation2 + $0xd] sm:$0xff] %v8758_v51  ;;  %v654_v58 = vld [vmem:[#allocation9 + $0x160] sm:$0xff]  ;;  %v655_v59 = vld [vmem:[#allocation9 + $0x168] sm:$0xff]  ;;  %v6481_v61 = vpack.c.bf16 %v639_v57, %v638_v56  ;;  %s8179_s18 = scalar_lea.vmem %s8178_s2, 512  ;;  %p8180_p4 = scmp.lt.s32.totalorder %s9069_s1, %s8178_s2 }
 0x183   : > { %6502 = vmatprep.subr.bf16.mxu1 %v6501_v35  ;;  %v6479_v60 = vpack.c.bf16 %v621_v54, %v620_v53  ;;  %v622_v62 = vld [vmem:[#allocation9 + $0x60] sm:$0xff]  ;;  %v623_v63 = vld [vmem:[#allocation9 + $0x68] sm:$0xff]  ;;  %v6513_v1 = vpack.c.bf16 %v655_v59, %v654_v58  ;;  %v640_v2 = vld [vmem:[#allocation9 + $0xf0] sm:$0xff]  ;;  %p8181_p3 = scmp.lt.s32.totalorder %s8179_s18, %s8173_s16 }
 0x184   : > { %6472 = vmatpush3.bf16.msra.mxu0 %v6471_v40  ;;  %v641_v3 = vld [vmem:[#allocation9 + $0xf8] sm:$0xff]  ;;  %v656_v4 = vld [vmem:[#allocation9 + $0x170] sm:$0xff]  ;;  %v6483_v6 = vpack.c.bf16 %v623_v63, %v622_v62  ;;  %v841_v12 = vld [vmem:[#allocation12 + $0x80] sm:$0xff] }
 0x185   : > { %6474 = vmatprep.subr.bf16.mxu0 %v6473_v41  ;;  %v657_v5 = vld [vmem:[#allocation9 + $0x178] sm:$0xff]  ;;  %v6485_v8 = vpack.c.bf16 %v641_v3, %v640_v2  ;;  %v624_v9 = vld [vmem:[#allocation9 + $0x70] sm:$0xff]  ;;  %v857_v14 = vld [vmem:[#allocation12 + $0x100] sm:$0xff]  ;;  %p8182_p10 = por %p8181_p3, %p8180_p4 }
 0x186   : > { %6504 = vmatpush3.bf16.msra.mxu1 %v6501_v35  ;;  %v625_v10 = vld [vmem:[#allocation9 + $0x78] sm:$0xff]  ;;  %v6517_v11 = vpack.c.bf16 %v657_v5, %v656_v4  ;;  %v842_v13 = vld [vmem:[#allocation12 + $0x88] sm:$0xff]  ;;  %v825_v18 = vld [vmem:[#allocation12] sm:$0xff] }
 0x187   : > { %6506 = vmatprep.subr.bf16.mxu1 %v6505_v44  ;;  %v858_v15 = vld [vmem:[#allocation12 + $0x108] sm:$0xff]  ;;  %v6487_v16 = vpack.c.bf16 %v625_v10, %v624_v9  ;;  %v6521_v17 = vpack.c.bf16 %v842_v13, %v841_v12  ;;  %v843_v20 = vld [vmem:[#allocation12 + $0x90] sm:$0xff]  ;;  %v844_v22 = vld [vmem:[#allocation12 + $0x98] sm:$0xff]  ;;  %p8183_p1 = pnand %p8182_p10, %p8176_p8 }
 0x188   : > { %6476 = vmatpush3.bf16.msra.mxu0 %v6475_v50  ;;  %v826_v19 = vld [vmem:[#allocation12 + $0x8] sm:$0xff]  ;;  %v6553_v21 = vpack.c.bf16 %v858_v15, %v857_v14  ;;  %v859_v23 = vld [vmem:[#allocation12 + $0x110] sm:$0xff]  ;;  %v860_v24 = vld [vmem:[#allocation12 + $0x118] sm:$0xff]  ;;  %v6525_v28 = vpack.c.bf16 %v844_v22, %v843_v20 }
 0x189   : > { %6478 = vmatprep.subr.bf16.mxu0 %v6477_v52  ;;  %v608_v7 = vld [vmem:[#allocation2 + $0x6] sm:$0xff]  ;;  %v609_v26 = vld [vmem:[#allocation2 + $0xe] sm:$0xff]  ;;  %v6523_v27 = vpack.c.bf16 %v826_v19, %v825_v18  ;;  %v827_v29 = vld [vmem:[#allocation12 + $0x10] sm:$0xff]  ;;  %v6557_v32 = vpack.c.bf16 %v860_v24, %v859_v23 }
 0x18a   : > { %6508 = vmatpush3.bf16.msra.mxu1 %v6505_v44  ;;  %5840 = vmatprep.mubr.f32.mxu1 %v608_v7  ;;  %v604_v25 = vld [vmem:[#allocation2 + $0x4] sm:$0xff]  ;;  %v846_v33 = vld [vmem:[#allocation12 + $0xa8] sm:$0xff]  ;;  %v847_v42 = vld [vmem:[#allocation12 + $0xb0] sm:$0xff] }
 0x18b   : > { %6510 = vmatprep.subr.bf16.mxu1 %v6509_v55  ;;  %v828_v30 = vld [vmem:[#allocation12 + $0x18] sm:$0xff]  ;;  %v845_v31 = vld [vmem:[#allocation12 + $0xa0] sm:$0xff]  ;;  %v862_v35 = vld [vmem:[#allocation12 + $0x128] sm:$0xff] }
 0x18c   : > { %6480 = vmatpush3.bf16.msra.mxu0 %v6479_v60  ;;  %v861_v34 = vld [vmem:[#allocation12 + $0x120] sm:$0xff]  ;;  %v6527_v37 = vpack.c.bf16 %v828_v30, %v827_v29  ;;  %v6529_v38 = vpack.c.bf16 %v846_v33, %v845_v31  ;;  %v830_v40 = vld [vmem:[#allocation12 + $0x28] sm:$0xff]  ;;  %v848_v43 = vld [vmem:[#allocation12 + $0xb8] sm:$0xff] }
 0x18d   : > { %6482 = vmatprep.subr.bf16.mxu0 %v6481_v61  ;;  %v605_v36 = vld [vmem:[#allocation2 + $0xc] sm:$0xff]  ;;  %v6561_v41 = vpack.c.bf16 %v862_v35, %v861_v34  ;;  %v6533_v45 = vpack.c.bf16 %v848_v43, %v847_v42  ;;  %v831_v46 = vld [vmem:[#allocation12 + $0x30] sm:$0xff]  ;;  %v832_v47 = vld [vmem:[#allocation12 + $0x38] sm:$0xff] }
 0x18e   : > { %6512 = vmatpush3.bf16.msra.mxu1 %v6509_v55  ;;  %v829_v39 = vld [vmem:[#allocation12 + $0x20] sm:$0xff]  ;;  %v6535_v48 = vpack.c.bf16 %v832_v47, %v831_v46  ;;  %v850_v52 = vld [vmem:[#allocation12 + $0xc8] sm:$0xff]  ;;  %v863_v54 = vld [vmem:[#allocation12 + $0x130] sm:$0xff] }
 0x18f   : > { %6514 = vmatprep.subr.bf16.mxu1 %v6513_v1  ;;  %v6531_v44 = vpack.c.bf16 %v830_v40, %v829_v39  ;;  %v849_v50 = vld [vmem:[#allocation12 + $0xc0] sm:$0xff]  ;;  %v864_v55 = vld [vmem:[#allocation12 + $0x138] sm:$0xff]  ;;  %v834_v58 = vld [vmem:[#allocation12 + $0x48] sm:$0xff] }
 0x190   : > { %6484 = vmatpush3.bf16.msra.mxu0 %v6483_v6  ;;  %v6537_v53 = vpack.c.bf16 %v850_v52, %v849_v50  ;;  %v833_v56 = vld [vmem:[#allocation12 + $0x40] sm:$0xff]  ;;  %v6565_v57 = vpack.c.bf16 %v864_v55, %v863_v54  ;;  %v851_v60 = vld [vmem:[#allocation12 + $0xd0] sm:$0xff]  ;;  %v852_v61 = vld [vmem:[#allocation12 + $0xd8] sm:$0xff] }
 0x191   : > { %6486 = vmatprep.subr.bf16.mxu0 %v6485_v8  ;;  %v6539_v59 = vpack.c.bf16 %v834_v58, %v833_v56  ;;  %v6541_v62 = vpack.c.bf16 %v852_v61, %v851_v60  ;;  %v865_v63 = vld [vmem:[#allocation12 + $0x140] sm:$0xff]  ;;  %v835_v3 = vld [vmem:[#allocation12 + $0x50] sm:$0xff]  ;;  %v836_v4 = vld [vmem:[#allocation12 + $0x58] sm:$0xff] }
 0x192   : > { %6516 = vmatpush3.bf16.msra.mxu1 %v6513_v1  ;;  %v866_v1 = vld [vmem:[#allocation12 + $0x148] sm:$0xff]  ;;  %v6543_v5 = vpack.c.bf16 %v836_v4, %v835_v3  ;;  %v853_v6 = vld [vmem:[#allocation12 + $0xe0] sm:$0xff]  ;;  %v867_v9 = vld [vmem:[#allocation12 + $0x150] sm:$0xff] }
 0x193   : > { %6518 = vmatprep.subr.bf16.mxu1 %v6517_v11  ;;  %v6569_v2 = vpack.c.bf16 %v866_v1, %v865_v63  ;;  %v854_v7 = vld [vmem:[#allocation12 + $0xe8] sm:$0xff]  ;;  %v868_v10 = vld [vmem:[#allocation12 + $0x158] sm:$0xff]  ;;  %v855_v15 = vld [vmem:[#allocation12 + $0xf0] sm:$0xff] }
 0x194   : > { %6488 = vmatpush3.bf16.msra.mxu0 %v6487_v16  ;;  %v6545_v8 = vpack.c.bf16 %v854_v7, %v853_v6  ;;  %v6573_v12 = vpack.c.bf16 %v868_v10, %v867_v9  ;;  %v838_v13 = vld [vmem:[#allocation12 + $0x68] sm:$0xff]  ;;  %v856_v16 = vld [vmem:[#allocation12 + $0xf8] sm:$0xff]  ;;  %v869_v18 = vld [vmem:[#allocation12 + $0x160] sm:$0xff] }
 0x195   : > { %6522 = vmatprep.subr.bf16.mxu0 %v6521_v17  ;;  %v6549_v17 = vpack.c.bf16 %v856_v16, %v855_v15  ;;  %v870_v19 = vld [vmem:[#allocation12 + $0x168] sm:$0xff]  ;;  %v839_v20 = vld [vmem:[#allocation12 + $0x70] sm:$0xff]  ;;  %v840_v22 = vld [vmem:[#allocation12 + $0x78] sm:$0xff] }
 0x196   : > { %6520 = vmatpush3.bf16.msra.mxu1 %v6517_v11  ;;  %v837_v11 = vld [vmem:[#allocation12 + $0x60] sm:$0xff]  ;;  %v6551_v23 = vpack.c.bf16 %v840_v22, %v839_v20  ;;  %v1073_v24 = vld [vmem:[#allocation9 + $0x200] sm:$0xff]  ;;  %v1075_v52 = vld [vmem:[#allocation9 + $0x210] sm:$0xff] }
 0x197   : > { %6554 = vmatprep.subr.bf16.mxu1 %v6553_v21  ;;  %730 = vmatmul.mubr.f32.vlgmr.msra.gmra.mrb[0].mxu0 %v604_v25  ;;  %v6547_v14 = vpack.c.bf16 %v838_v13, %v837_v11  ;;  %v1074_v25 = vld [vmem:[#allocation9 + $0x208] sm:$0xff]  ;;  %v1089_v30 = vld [vmem:[#allocation9 + $0x280] sm:$0xff]  ;;  %v1059_v56 = vld [vmem:[#allocation9 + $0x190] sm:$0xff] }
 0x198   : > { %734 = vmatprep.mubr.f32.mxu0 %v8758_v51  ;;  %6524 = vmatpush3.bf16.msra.mxu0 %v6523_v27  ;;  %v872_v27 = vld [vmem:[#allocation12 + $0x178] sm:$0xff]  ;;  %v1090_v31 = vld [vmem:[#allocation9 + $0x288] sm:$0xff]  ;;  %v1091_v61 = vld [vmem:[#allocation9 + $0x290] sm:$0xff] }
 0x199   : > { %5841 = vmatmul.mubr.f32.vlgmr.msra.gmra.mrb[0].mxu1 %v609_v26  ;;  %6526 = vmatprep.subr.bf16.mxu0 %v6525_v28  ;;  %v871_v26 = vld [vmem:[#allocation12 + $0x170] sm:$0xff]  ;;  %v6585_v28 = vpack.c.bf16 %v1074_v25, %v1073_v24  ;;  %v1058_v50 = vld [vmem:[#allocation9 + $0x188] sm:$0xff]  ;;  %v1061_v1 = vld [vmem:[#allocation9 + $0x1a0] sm:$0xff] }
 0x19a   : > { %6556 = vmatpush3.bf16.msra.mxu1 %v6553_v21  ;;  %v6577_v21 = vpack.c.bf16 %v870_v19, %v869_v18  ;;  %v6581_v29 = vpack.c.bf16 %v872_v27, %v871_v26  ;;  %v1078_v60 = vld [vmem:[#allocation9 + $0x228] sm:$0xff]  ;;  %v1079_v4 = vld [vmem:[#allocation9 + $0x230] sm:$0xff]  ;;  %v1093_v10 = vld [vmem:[#allocation9 + $0x2a0] sm:$0xff] }
 0x19b   : > { %6558 = vmatprep.subr.bf16.mxu1 %v6557_v32  ;;  %735 = vmatmul.mubr.f32.gmra.mrb[2].mxu0 %v605_v36  ;;  %v4815_v36 = vld [vmem:[#allocation10] ss:$0 sm:$0xff]  ;;  %v1062_v3 = vld [vmem:[#allocation9 + $0x1a8] sm:$0xff]  ;;  %v1063_v15 = vld [vmem:[#allocation9 + $0x1b0] sm:$0xff] }
 0x19c   : > { %6528 = vmatpush3.bf16.msra.mxu0 %v6527_v37  ;;  %v1094_v11 = vld [vmem:[#allocation9 + $0x2a8] sm:$0xff]  ;;  %v1064_v16 = vld [vmem:[#allocation9 + $0x1b8] sm:$0xff]  ;;  %v1081_v18 = vld [vmem:[#allocation9 + $0x240] sm:$0xff] }
 0x19d   : > { %6530 = vmatprep.subr.bf16.mxu0 %v6529_v38  ;;  %v1054_v13 = vld [vmem:[#allocation2 + $0x7] sm:$0xff]  ;;  %v1095_v20 = vld [vmem:[#allocation9 + $0x2b0] sm:$0xff]  ;;  %v6599_v22 = vpack.c.bf16 %v1064_v16, %v1063_v15 }
 0x19e   : > { %6560 = vmatpush3.bf16.msra.mxu1 %v6557_v32  ;;  %v6617_v32 = vpack.c.bf16 %v1090_v31, %v1089_v30  ;;  %v1082_v19 = vld [vmem:[#allocation9 + $0x248] sm:$0xff]  ;;  %v1065_v24 = vld [vmem:[#allocation9 + $0x1c0] sm:$0xff]  ;;  %v1083_v27 = vld [vmem:[#allocation9 + $0x250] sm:$0xff] }
 0x19f   : > { %6562 = vmatprep.subr.bf16.mxu1 %v6561_v41  ;;  %v1066_v25 = vld [vmem:[#allocation9 + $0x1c8] sm:$0xff] }
 0x1a0   : > { %6532 = vmatpush3.bf16.msra.mxu0 %v6531_v44  ;;  %v1098_v30 = vld [vmem:[#allocation9 + $0x2c8] sm:$0xff]  ;;  %v6603_v31 = vpack.c.bf16 %v1066_v25, %v1065_v24 }
 0x1a1   : > { %6534 = vmatprep.subr.bf16.mxu0 %v6533_v45 }
 0x1a2   : > { %6564 = vmatpush3.bf16.msra.mxu1 %v6561_v41 }
 0x1a3   : > { %6566 = vmatprep.subr.bf16.mxu1 %v6565_v57 }
 0x1a4   : > { %6536 = vmatpush3.bf16.msra.mxu0 %v6535_v48  ;;  %v1057_v48 = vld [vmem:[#allocation9 + $0x180] sm:$0xff] }
 0x1a5   : > { %6538 = vmatprep.subr.bf16.mxu0 %v6537_v53  ;;  %v1076_v53 = vld [vmem:[#allocation9 + $0x218] sm:$0xff]  ;;  %v6587_v54 = vpack.c.bf16 %v1058_v50, %v1057_v48  ;;  %v1101_v50 = vld [vmem:[#allocation9 + $0x2e0] sm:$0xff] }
 0x1a6   : > { %6568 = vmatpush3.bf16.msra.mxu1 %v6565_v57  ;;  %v6589_v55 = vpack.c.bf16 %v1076_v53, %v1075_v52  ;;  %v1060_v57 = vld [vmem:[#allocation9 + $0x198] sm:$0xff]  ;;  %v1102_v52 = vld [vmem:[#allocation9 + $0x2e8] sm:$0xff] }
 0x1a7   : > { %6570 = vmatprep.subr.bf16.mxu1 %v6569_v2  ;;  %v6591_v63 = vpack.c.bf16 %v1060_v57, %v1059_v56  ;;  %v1088_v48 = vld [vmem:[#allocation9 + $0x278] sm:$0xff]  ;;  %v6641_v57 = vpack.c.bf16 %v1102_v52, %v1101_v50  ;;  %v1314_v50 = vld [vmem:[#allocation12 + $0x2c0] sm:$0xff]  ;;  %v1315_v52 = vld [vmem:[#allocation12 + $0x2c8] sm:$0xff] }
 0x1a8   : > { %6540 = vmatpush3.bf16.msra.mxu0 %v6539_v59  ;;  %v1077_v59 = vld [vmem:[#allocation9 + $0x220] sm:$0xff]  ;;  %v1072_v56 = vld [vmem:[#allocation9 + $0x1f8] sm:$0xff] }
 0x1a9   : > { %6542 = vmatprep.subr.bf16.mxu0 %v6541_v62  ;;  %v1092_v62 = vld [vmem:[#allocation9 + $0x298] sm:$0xff] }
 0x1aa   : > { %6572 = vmatpush3.bf16.msra.mxu1 %v6569_v2  ;;  %v6593_v2 = vpack.c.bf16 %v1078_v60, %v1077_v59  ;;  %v6621_v9 = vpack.c.bf16 %v1092_v62, %v1091_v61  ;;  %v1104_v59 = vld [vmem:[#allocation9 + $0x2f8] sm:$0xff]  ;;  %v1050_v62 = vld [vmem:[#allocation2 + $0x3] sm:$0xff] }
 0x1ab   : > { %6574 = vmatprep.subr.bf16.mxu1 %v6573_v12 }
 0x1ac   : > { %6544 = vmatpush3.bf16.msra.mxu0 %v6543_v5  ;;  %v1080_v5 = vld [vmem:[#allocation9 + $0x238] sm:$0xff] }
 0x1ad   : > { %6546 = vmatprep.subr.bf16.mxu0 %v6545_v8 }
 0x1ae   : > { %6576 = vmatpush3.bf16.msra.mxu1 %v6573_v12  ;;  %v6595_v12 = vpack.c.bf16 %v1062_v3, %v1061_v1  ;;  %v1055_v1 = vld [vmem:[#allocation2 + $0xf] sm:$0xff] }
 0x1af   : > { %6578 = vmatprep.subr.bf16.mxu1 %v6577_v21  ;;  %v1291_v3 = vld [vmem:[#allocation12 + $0x208] sm:$0xff] }
 0x1b0   : > { %6548 = vmatpush3.bf16.msra.mxu0 %v6547_v14  ;;  %v6597_v14 = vpack.c.bf16 %v1080_v5, %v1079_v4  ;;  %v1274_v5 = vld [vmem:[#allocation12 + $0x180] sm:$0xff] }
 0x1b1   : > { %6550 = vmatprep.subr.bf16.mxu0 %v6549_v17  ;;  %v6625_v17 = vpack.c.bf16 %v1094_v11, %v1093_v10  ;;  %v1306_v10 = vld [vmem:[#allocation12 + $0x280] sm:$0xff] }
 0x1b2   : > { %6580 = vmatpush3.bf16.msra.mxu1 %v6577_v21  ;;  %v1096_v21 = vld [vmem:[#allocation9 + $0x2b8] sm:$0xff] }
 0x1b3   : > { %6582 = vmatprep.subr.bf16.mxu1 %v6581_v29  ;;  %v6629_v26 = vpack.c.bf16 %v1096_v21, %v1095_v20  ;;  %v1309_v21 = vld [vmem:[#allocation12 + $0x298] sm:$0xff] }
 0x1b4   : > { %6552 = vmatpush3.bf16.msra.mxu0 %v6551_v23  ;;  %v6601_v23 = vpack.c.bf16 %v1082_v19, %v1081_v18  ;;  %v1295_v18 = vld [vmem:[#allocation12 + $0x228] sm:$0xff]  ;;  %v1308_v19 = vld [vmem:[#allocation12 + $0x290] sm:$0xff] }
 0x1b5   : > { %6586 = vmatprep.subr.bf16.mxu0 %v6585_v28  ;;  %v1084_v28 = vld [vmem:[#allocation9 + $0x258] sm:$0xff]  ;;  %v6685_v24 = vpack.c.bf16 %v1309_v21, %v1308_v19  ;;  %v1540_v19 = vld [vmem:[#allocation9 + $0x408] sm:$0xff] }
 0x1b6   : > { %6584 = vmatpush3.bf16.msra.mxu1 %v6581_v29  ;;  %v1097_v29 = vld [vmem:[#allocation9 + $0x2c0] sm:$0xff] }
 0x1b7   : > { %6618 = vmatprep.subr.bf16.mxu1 %v6617_v32 }
 0x26a   : > { %v4899_v33 = vpop.f32.mrb[0].mxu0 }
 0x26b   : > { %v4900_v34 = vpop.f32.mrb[1].mxu0 }
 0x26c   : > { %v5842_v35 = vpop.f32.mrb[0].mxu1  ;;  %v4901_v37 = vadd.f32 %v4900_v34, %v4899_v33  ;;  %v1067_v33 = vld [vmem:[#allocation9 + $0x1d0] sm:$0xff]  ;;  %v1068_v34 = vld [vmem:[#allocation9 + $0x1d8] sm:$0xff] }
 0x26d   : > { %v806_v38 = vpop.f32.mrb[1].mxu1 }
 0x26e   : > { %v4902_v39 = vpop.f32.mrb[2].mxu0  ;;  %v732_v40 = vadd.f32 %v4901_v37, %v4815_v36  ;;  %v1086_v37 = vld [vmem:[#allocation9 + $0x268] sm:$0xff] }
 0x26f   : > { %v4903_v41 = vpop.f32.mrb[3].mxu0 }
 0x270   : > { %v807_v42 = vadd.f32 %v806_v38, %v732_v40  ;;  %v4904_v43 = vadd.f32 %v4903_v41, %v4902_v39  ;;  %v1099_v38 = vld [vmem:[#allocation9 + $0x2d0] sm:$0xff]  ;;  %v1100_v39 = vld [vmem:[#allocation9 + $0x2d8] sm:$0xff]  ;;  %v6607_v40 = vpack.c.bf16 %v1068_v34, %v1067_v33 }
 0x272   : > { %v8763_v44 = vsub.f32 %v8752_v49, %v807_v42  ;;  %v737_v45 = vadd.f32 %v4904_v43, %v4815_v36  ;;  %v1085_v36 = vld [vmem:[#allocation9 + $0x260] sm:$0xff]  ;;  %v1070_v43 = vld [vmem:[#allocation9 + $0x1e8] sm:$0xff] }
 0x273   : > { %v6609_v41 = vpack.c.bf16 %v1086_v37, %v1085_v36  ;;  %v1069_v42 = vld [vmem:[#allocation9 + $0x1e0] sm:$0xff]  ;;  %v1299_v36 = vld [vmem:[#allocation12 + $0x248] sm:$0xff]  ;;  %v1312_v37 = vld [vmem:[#allocation12 + $0x2b0] sm:$0xff] }
 0x274   : > { %817 = vst [vmem:[#allocation3 + $0x5] sm:$0xff] %v8763_v44  ;;  %v812_v46 = vadd.f32 %v5842_v35, %v737_v45  ;;  %944 = vmatprep.mubr.f32.mxu0 %v8763_v44  ;;  %v6633_v35 = vpack.c.bf16 %v1098_v30, %v1097_v29  ;;  %v6637_v45 = vpack.c.bf16 %v1100_v39, %v1099_v38  ;;  %v1311_v30 = vld [vmem:[#allocation12 + $0x2a8] sm:$0xff]  ;;  %v1313_v39 = vld [vmem:[#allocation12 + $0x2b8] sm:$0xff] }
 0x275   : > { %v6611_v53 = vpack.c.bf16 %v1070_v43, %v1069_v42  ;;  %v6693_v42 = vpack.c.bf16 %v1313_v39, %v1312_v37 }
 0x276   : > { %v8768_v47 = vsub.f32 %v8758_v51, %v812_v46  ;;  %v1087_v46 = vld [vmem:[#allocation9 + $0x270] sm:$0xff] }
 0x278   : > { %818 = vst [vmem:[#allocation3 + $0xd] sm:$0xff] %v8768_v47 }
 0x27b   : > { %v819_v58 = vld [vmem:[#allocation3 + $0x4] sm:$0xff] }
 0x27c   : > { %945 = vmatmul.mubr.f32.vlgmr.msra.gmra.mrb[4].mxu0 %v819_v58  ;;  %v1103_v58 = vld [vmem:[#allocation9 + $0x2f0] sm:$0xff] }
 0x27d   : > { %6588 = vmatpush3.bf16.msra.mxu0 %v6587_v54  ;;  %949 = vmatprep.mubr.f32.mxu0 %v8768_v47  ;;  %v6613_v54 = vpack.c.bf16 %v1088_v48, %v1087_v46  ;;  %v6645_v61 = vpack.c.bf16 %v1104_v59, %v1103_v58  ;;  %v1301_v46 = vld [vmem:[#allocation12 + $0x258] sm:$0xff]  ;;  %v1303_v58 = vld [vmem:[#allocation12 + $0x268] sm:$0xff]  ;;  %v1316_v59 = vld [vmem:[#allocation12 + $0x2d0] sm:$0xff] }
 0x27e   : > { %6590 = vmatprep.subr.bf16.mxu0 %v6589_v55  ;;  %v1071_v55 = vld [vmem:[#allocation9 + $0x1f0] sm:$0xff] }
 0x27f   : > { %v820_v6 = vld [vmem:[#allocation3 + $0xc] sm:$0xff]  ;;  %v6615_v60 = vpack.c.bf16 %v1072_v56, %v1071_v55  ;;  %v1285_v55 = vld [vmem:[#allocation12 + $0x1d8] sm:$0xff] }
 0x280   : > { %v823_v7 = vld [vmem:[#allocation3 + $0x6] sm:$0xff]  ;;  %v824_v8 = vld [vmem:[#allocation3 + $0xe] sm:$0xff]  ;;  %950 = vmatmul.mubr.f32.gmra.mrb[6].mxu0 %v820_v6 }
 0x281   : > { %5875 = vmatprep.mubr.f32.mxu1 %v823_v7  ;;  %6592 = vmatpush3.bf16.msra.mxu0 %v6591_v63  ;;  %v1051_v63 = vld [vmem:[#allocation2 + $0xb] sm:$0xff] }
 0x282   : > { %5876 = vmatmul.mubr.f32.vlgmr.msra.gmra.mrb[2].mxu1 %v824_v8  ;;  %6594 = vmatprep.subr.bf16.mxu0 %v6593_v2  ;;  %v1290_v2 = vld [vmem:[#allocation12 + $0x200] sm:$0xff]  ;;  %v1275_v6 = vld [vmem:[#allocation12 + $0x188] sm:$0xff]  ;;  %v1292_v8 = vld [vmem:[#allocation12 + $0x210] sm:$0xff] }
 0x283   : > { %6620 = vmatpush3.bf16.msra.mxu1 %v6617_v32  ;;  %1177 = vmatprep.mubr.f32.mxu0 %v8752_v49  ;;  %v6605_v32 = vpack.c.bf16 %v1084_v28, %v1083_v27  ;;  %v6649_v4 = vpack.c.bf16 %v1291_v3, %v1290_v2  ;;  %v6651_v7 = vpack.c.bf16 %v1275_v6, %v1274_v5  ;;  %v1297_v27 = vld [vmem:[#allocation12 + $0x238] sm:$0xff]  ;;  %v1310_v28 = vld [vmem:[#allocation12 + $0x2a0] sm:$0xff]  ;;  %v1304_v3 = vld [vmem:[#allocation12 + $0x270] sm:$0xff] }
 0x284   : > { %6622 = vmatprep.subr.bf16.mxu1 %v6621_v9  ;;  %5910 = vmatprep.mubr.f32.mxu1 %v1054_v13  ;;  %v1276_v13 = vld [vmem:[#allocation12 + $0x190] sm:$0xff]  ;;  %v6689_v33 = vpack.c.bf16 %v1311_v30, %v1310_v28  ;;  %v1318_v5 = vld [vmem:[#allocation12 + $0x2e0] sm:$0xff] }
 0x285   : > { %6596 = vmatpush3.bf16.msra.mxu0 %v6595_v12  ;;  %v1307_v12 = vld [vmem:[#allocation12 + $0x288] sm:$0xff] }
 0x286   : > { %6598 = vmatprep.subr.bf16.mxu0 %v6597_v14  ;;  %v1277_v14 = vld [vmem:[#allocation12 + $0x198] sm:$0xff]  ;;  %v6681_v15 = vpack.c.bf16 %v1307_v12, %v1306_v10  ;;  %v1320_v12 = vld [vmem:[#allocation12 + $0x2f0] sm:$0xff] }
 0x287   : > { %6624 = vmatpush3.bf16.msra.mxu1 %v6621_v9  ;;  %v1293_v9 = vld [vmem:[#allocation12 + $0x218] sm:$0xff]  ;;  %v6655_v16 = vpack.c.bf16 %v1277_v14, %v1276_v13 }
 0x288   : > { %6626 = vmatprep.subr.bf16.mxu1 %v6625_v17  ;;  %v6653_v11 = vpack.c.bf16 %v1293_v9, %v1292_v8  ;;  %v1288_v8 = vld [vmem:[#allocation12 + $0x1f0] sm:$0xff]  ;;  %v1289_v9 = vld [vmem:[#allocation12 + $0x1f8] sm:$0xff] }
 0x289   : > { %6600 = vmatpush3.bf16.msra.mxu0 %v6599_v22  ;;  %v1278_v22 = vld [vmem:[#allocation12 + $0x1a0] sm:$0xff]  ;;  %v1321_v13 = vld [vmem:[#allocation12 + $0x2f8] sm:$0xff] }
 0x28a   : > { %6602 = vmatprep.subr.bf16.mxu0 %v6601_v23  ;;  %v1279_v23 = vld [vmem:[#allocation12 + $0x1a8] sm:$0xff]  ;;  %v1523_v14 = vld [vmem:[#allocation9 + $0x380] sm:$0xff] }
 0x28b   : > { %6628 = vmatpush3.bf16.msra.mxu1 %v6625_v17  ;;  %v1294_v17 = vld [vmem:[#allocation12 + $0x220] sm:$0xff]  ;;  %v6659_v25 = vpack.c.bf16 %v1279_v23, %v1278_v22 }
 0x28c   : > { %6630 = vmatprep.subr.bf16.mxu1 %v6629_v26  ;;  %v6657_v20 = vpack.c.bf16 %v1295_v18, %v1294_v17  ;;  %v1539_v18 = vld [vmem:[#allocation9 + $0x400] sm:$0xff]  ;;  %v4816_v23 = vld [vmem:[#allocation13] ss:$0 sm:$0xff] }
 0x28d   : > { %6604 = vmatpush3.bf16.msra.mxu0 %v6603_v31  ;;  %v1280_v31 = vld [vmem:[#allocation12 + $0x1b0] sm:$0xff] }
 0x28e   : > { %6606 = vmatprep.subr.bf16.mxu0 %v6605_v32  ;;  %v1281_v32 = vld [vmem:[#allocation12 + $0x1b8] sm:$0xff] }
 0x28f   : > { %6632 = vmatpush3.bf16.msra.mxu1 %v6629_v26  ;;  %v1296_v26 = vld [vmem:[#allocation12 + $0x230] sm:$0xff]  ;;  %v6663_v34 = vpack.c.bf16 %v1281_v32, %v1280_v31 }
 0x290   : > { %6634 = vmatprep.subr.bf16.mxu1 %v6633_v35  ;;  %v6661_v29 = vpack.c.bf16 %v1297_v27, %v1296_v26 }
 0x291   : > { %6608 = vmatpush3.bf16.msra.mxu0 %v6607_v40  ;;  %v1282_v40 = vld [vmem:[#allocation12 + $0x1c0] sm:$0xff] }
 0x292   : > { %6610 = vmatprep.subr.bf16.mxu0 %v6609_v41  ;;  %v1283_v41 = vld [vmem:[#allocation12 + $0x1c8] sm:$0xff] }
 0x293   : > { %6636 = vmatpush3.bf16.msra.mxu1 %v6633_v35  ;;  %v1298_v35 = vld [vmem:[#allocation12 + $0x240] sm:$0xff]  ;;  %v6667_v43 = vpack.c.bf16 %v1283_v41, %v1282_v40 }
 0x294   : > { %6638 = vmatprep.subr.bf16.mxu1 %v6637_v45  ;;  %v6665_v38 = vpack.c.bf16 %v1299_v36, %v1298_v35  ;;  %v4819_v36 = vld [vmem:[#allocation10 + $0x1] ss:$0 sm:$0xff] }
 0x295   : > { %6612 = vmatpush3.bf16.msra.mxu0 %v6611_v53  ;;  %v1284_v53 = vld [vmem:[#allocation12 + $0x1d0] sm:$0xff] }
 0x296   : > { %6614 = vmatprep.subr.bf16.mxu0 %v6613_v54  ;;  %v6697_v54 = vpack.c.bf16 %v1315_v52, %v1314_v50  ;;  %v6671_v56 = vpack.c.bf16 %v1285_v55, %v1284_v53  ;;  %v1507_v53 = vld [vmem:[#allocation9 + $0x300] sm:$0xff]  ;;  %v1525_v55 = vld [vmem:[#allocation9 + $0x390] sm:$0xff] }
 0x297   : > { %6640 = vmatpush3.bf16.msra.mxu1 %v6637_v45  ;;  %v1300_v45 = vld [vmem:[#allocation12 + $0x250] sm:$0xff] }
 0x298   : > { %6642 = vmatprep.subr.bf16.mxu1 %v6641_v57  ;;  %v6669_v48 = vpack.c.bf16 %v1301_v46, %v1300_v45 }
 0x299   : > { %6616 = vmatpush3.bf16.msra.mxu0 %v6615_v60 }
 0x29a   : > { %6650 = vmatprep.subr.bf16.mxu0 %v6649_v4  ;;  %v1305_v4 = vld [vmem:[#allocation12 + $0x278] sm:$0xff] }
 0x29b   : > { %6644 = vmatpush3.bf16.msra.mxu1 %v6641_v57  ;;  %v1302_v57 = vld [vmem:[#allocation12 + $0x260] sm:$0xff]  ;;  %v6677_v6 = vpack.c.bf16 %v1305_v4, %v1304_v3  ;;  %v1529_v4 = vld [vmem:[#allocation9 + $0x3b0] sm:$0xff] }
 0x29c   : > { %6646 = vmatprep.subr.bf16.mxu1 %v6645_v61  ;;  %1178 = vmatmul.mubr.f32.vlgmr.msra.gmra.mrb[8].mxu0 %v1050_v62  ;;  %v6673_v60 = vpack.c.bf16 %v1303_v58, %v1302_v57  ;;  %v1286_v62 = vld [vmem:[#allocation12 + $0x1e0] sm:$0xff]  ;;  %v1509_v58 = vld [vmem:[#allocation9 + $0x310] sm:$0xff] }
 0x29d   : > { %1182 = vmatprep.mubr.f32.mxu0 %v8758_v51  ;;  %6652 = vmatpush3.bf16.msra.mxu0 %v6651_v7  ;;  %v1319_v7 = vld [vmem:[#allocation12 + $0x2e8] sm:$0xff]  ;;  %v1512_v3 = vld [vmem:[#allocation9 + $0x328] sm:$0xff] }
 0x29e   : > { %6654 = vmatprep.subr.bf16.mxu0 %v6653_v11  ;;  %v6705_v10 = vpack.c.bf16 %v1319_v7, %v1318_v5  ;;  %v6679_v11 = vpack.c.bf16 %v1289_v9, %v1288_v8 }
 0x29f   : > { %6648 = vmatpush3.bf16.msra.mxu1 %v6645_v61  ;;  %v1317_v61 = vld [vmem:[#allocation12 + $0x2d8] sm:$0xff] }
 0x2a0   : > { %1183 = vmatmul.mubr.f32.gmra.mrb[10].mxu0 %v1051_v63  ;;  %6682 = vmatprep.subr.bf16.mxu1 %v6681_v15  ;;  %v1287_v63 = vld [vmem:[#allocation12 + $0x1e8] sm:$0xff] }
 0x2a1   : > { %6656 = vmatpush3.bf16.msra.mxu0 %v6655_v16  ;;  %v6675_v2 = vpack.c.bf16 %v1287_v63, %v1286_v62  ;;  %v1524_v16 = vld [vmem:[#allocation9 + $0x388] sm:$0xff]  ;;  %v1541_v63 = vld [vmem:[#allocation9 + $0x410] sm:$0xff] }
 0x2a2   : > { %5911 = vmatmul.mubr.f32.vlgmr.msra.gmra.mrb[4].mxu1 %v1055_v1  ;;  %6658 = vmatprep.subr.bf16.mxu0 %v6657_v20  ;;  %v6701_v1 = vpack.c.bf16 %v1317_v61, %v1316_v59  ;;  %v6713_v17 = vpack.c.bf16 %v1524_v16, %v1523_v14  ;;  %v8774_v20 = vpack.c.bf16 %v1540_v19, %v1539_v18  ;;  %v1528_v61 = vld [vmem:[#allocation9 + $0x3a8] sm:$0xff]  ;;  %v1513_v18 = vld [vmem:[#allocation9 + $0x330] sm:$0xff]  ;;  %v1514_v19 = vld [vmem:[#allocation9 + $0x338] sm:$0xff] }
 0x2a3   : > { %6684 = vmatpush3.bf16.msra.mxu1 %v6681_v15  ;;  %v6709_v15 = vpack.c.bf16 %v1321_v13, %v1320_v12  ;;  %v1544_v12 = vld [vmem:[#allocation9 + $0x428] sm:$0xff] }
 0x2a4   : > { %6686 = vmatprep.subr.bf16.mxu1 %v6685_v24  ;;  %v8791_v13 = vld [vmem:[#allocation2 + $0x5] sm:$0xff] }
 0x2a5   : > { %6660 = vmatpush3.bf16.msra.mxu0 %v6659_v25  ;;  %v8793_v14 = vld [vmem:[#allocation2 + $0x8] sm:$0xff] }
 0x2a6   : > { %6662 = vmatprep.subr.bf16.mxu0 %v6661_v29 }
 0x2a7   : > { %6688 = vmatpush3.bf16.msra.mxu1 %v6685_v24 }
 0x2a8   : > { %6690 = vmatprep.subr.bf16.mxu1 %v6689_v33 }
 0x2a9   : > { %6664 = vmatpush3.bf16.msra.mxu0 %v6663_v34 }
 0x2aa   : > { %6666 = vmatprep.subr.bf16.mxu0 %v6665_v38 }
 0x2ab   : > { %6692 = vmatpush3.bf16.msra.mxu1 %v6689_v33 }
 0x2ac   : > { %6694 = vmatprep.subr.bf16.mxu1 %v6693_v42 }
 0x2ad   : > { %6668 = vmatpush3.bf16.msra.mxu0 %v6667_v43 }
 0x2ae   : > { %6670 = vmatprep.subr.bf16.mxu0 %v6669_v48 }
 0x2af   : > { %6696 = vmatpush3.bf16.msra.mxu1 %v6693_v42 }
 0x2b0   : > { %6698 = vmatprep.subr.bf16.mxu1 %v6697_v54 }
 0x2b1   : > { %6672 = vmatpush3.bf16.msra.mxu0 %v6671_v56  ;;  %v1526_v56 = vld [vmem:[#allocation9 + $0x398] sm:$0xff] }
 0x2b2   : > { %6674 = vmatprep.subr.bf16.mxu0 %v6673_v60  ;;  %v6717_v59 = vpack.c.bf16 %v1526_v56, %v1525_v55  ;;  %v1510_v60 = vld [vmem:[#allocation9 + $0x318] sm:$0xff]  ;;  %v1537_v55 = vld [vmem:[#allocation9 + $0x3f0] sm:$0xff] }
 0x2b3   : > { %6700 = vmatpush3.bf16.msra.mxu1 %v6697_v54  ;;  %v1508_v54 = vld [vmem:[#allocation9 + $0x308] sm:$0xff]  ;;  %v1538_v56 = vld [vmem:[#allocation9 + $0x3f8] sm:$0xff] }
 0x2b4   : > { %6702 = vmatprep.subr.bf16.mxu1 %v6701_v1  ;;  %v6715_v57 = vpack.c.bf16 %v1508_v54, %v1507_v53  ;;  %v1519_v53 = vld [vmem:[#allocation9 + $0x360] sm:$0xff]  ;;  %v1520_v54 = vld [vmem:[#allocation9 + $0x368] sm:$0xff] }
 0x2b5   : > { %6676 = vmatpush3.bf16.msra.mxu0 %v6675_v2  ;;  %v1511_v2 = vld [vmem:[#allocation9 + $0x320] sm:$0xff] }
 0x2b6   : > { %6678 = vmatprep.subr.bf16.mxu0 %v6677_v6 }
 0x2b7   : > { %6704 = vmatpush3.bf16.msra.mxu1 %v6701_v1  ;;  %v1542_v1 = vld [vmem:[#allocation9 + $0x418] sm:$0xff] }
 0x2b8   : > { %6706 = vmatprep.subr.bf16.mxu1 %v6705_v10  ;;  %v6749_v9 = vpack.c.bf16 %v1542_v1, %v1541_v63  ;;  %v1553_v63 = vld [vmem:[#allocation9 + $0x470] sm:$0xff]  ;;  %v1554_v1 = vld [vmem:[#allocation9 + $0x478] sm:$0xff] }
 0x2b9   : > { %6680 = vmatpush3.bf16.msra.mxu0 %v6679_v11  ;;  %v1543_v11 = vld [vmem:[#allocation9 + $0x420] sm:$0xff] }
 0x2ba   : > { %6714 = vmatprep.subr.bf16.mxu0 %v6713_v17  ;;  %v6753_v17 = vpack.c.bf16 %v1544_v12, %v1543_v11  ;;  %v1725_v11 = vld [vmem:[#allocation12 + $0x308] sm:$0xff] }
 0x2bb   : > { %6708 = vmatpush3.bf16.msra.mxu1 %v6705_v10  ;;  %v1530_v10 = vld [vmem:[#allocation9 + $0x3b8] sm:$0xff] }
 0x2bc   : > { %6710 = vmatprep.subr.bf16.mxu1 %v6709_v15  ;;  %v6725_v16 = vpack.c.bf16 %v1530_v10, %v1529_v4  ;;  %v8798_v4 = vld [vmem:[#allocation2 + $0xd] sm:$0xff] }
 0x2bd   : > { %v1724_v10 = vld [vmem:[#allocation12 + $0x300] sm:$0xff] }
 0x2be   : > { %v6779_v12 = vpack.c.bf16 %v1725_v11, %v1724_v10  ;;  %v1736_v10 = vld [vmem:[#allocation12 + $0x360] sm:$0xff] }
 0x2bf   : > { %6712 = vmatpush3.bf16.msra.mxu1 %v6709_v15  ;;  %v6723_v15 = vpack.c.bf16 %v1512_v3, %v1511_v2  ;;  %v6773_v2 = vpack.c.bf16 %v1554_v1, %v1553_v63  ;;  %v1500_v3 = vld [vmem:[#allocation2 + $0x2] sm:$0xff]  ;;  %v1734_v1 = vld [vmem:[#allocation12 + $0x350] sm:$0xff] }
 0x2c0   : > { %6746 = vmatprep.subr.bf16.mxu1 %v8774_v20 }
 0x34f   : > { %v4955_v21 = vpop.f32.mrb[4].mxu0 }
 0x350   : > { %v4956_v22 = vpop.f32.mrb[5].mxu0 }
 0x351   : > { %v4957_v24 = vadd.f32 %v4956_v22, %v4955_v21  ;;  %v1531_v21 = vld [vmem:[#allocation9 + $0x3c0] sm:$0xff]  ;;  %v1532_v22 = vld [vmem:[#allocation9 + $0x3c8] sm:$0xff] }
 0x353   : > { %v4958_v25 = vpop.f32.mrb[6].mxu0  ;;  %v947_v26 = vadd.f32 %v4957_v24, %v4816_v23  ;;  %v1546_v24 = vld [vmem:[#allocation9 + $0x438] sm:$0xff] }
 0x354   : > { %v4959_v28 = vpop.f32.mrb[7].mxu0 }
 0x355   : > { %v5877_v27 = vpop.f32.mrb[2].mxu1  ;;  %v4960_v29 = vadd.f32 %v4959_v28, %v4958_v25  ;;  %v6727_v25 = vpack.c.bf16 %v1514_v19, %v1513_v18  ;;  %v1516_v28 = vld [vmem:[#allocation9 + $0x348] sm:$0xff]  ;;  %v1757_v19 = vld [vmem:[#allocation12 + $0x408] sm:$0xff] }
 0x356   : > { %v1021_v30 = vpop.f32.mrb[3].mxu1  ;;  %v1756_v18 = vld [vmem:[#allocation12 + $0x400] sm:$0xff] }
 0x357   : > { %v8777_v31 = vadd.f32 %v1021_v30, %v947_v26  ;;  %v952_v32 = vadd.f32 %v4960_v29, %v4816_v23  ;;  %v1545_v23 = vld [vmem:[#allocation9 + $0x430] sm:$0xff]  ;;  %v1534_v30 = vld [vmem:[#allocation9 + $0x3d8] sm:$0xff] }
 0x358   : > { %v6757_v26 = vpack.c.bf16 %v1546_v24, %v1545_v23  ;;  %v1533_v29 = vld [vmem:[#allocation9 + $0x3d0] sm:$0xff]  ;;  %v1727_v23 = vld [vmem:[#allocation12 + $0x318] sm:$0xff] }
 0x359   : > { %v8779_v33 = vadd.f32 %v5877_v27, %v952_v32  ;;  %v1515_v27 = vld [vmem:[#allocation9 + $0x340] sm:$0xff] }
 0x35a   : > { %v1547_v32 = vld [vmem:[#allocation9 + $0x440] sm:$0xff] }
 0x36f   : > { %v5011_v34 = vpop.f32.mrb[8].mxu0 }
 0x370   : > { %v5012_v35 = vpop.f32.mrb[9].mxu0 }
 0x371   : > { %v5013_v37 = vadd.f32 %v5012_v35, %v5011_v34  ;;  %v1548_v34 = vld [vmem:[#allocation9 + $0x448] sm:$0xff]  ;;  %v6731_v35 = vpack.c.bf16 %v1516_v28, %v1515_v27  ;;  %v1758_v27 = vld [vmem:[#allocation12 + $0x410] sm:$0xff]  ;;  %v1759_v28 = vld [vmem:[#allocation12 + $0x418] sm:$0xff] }
 0x373   : > { %v5014_v38 = vpop.f32.mrb[10].mxu0  ;;  %v1180_v39 = vadd.f32 %v5013_v37, %v4819_v36  ;;  %v6761_v37 = vpack.c.bf16 %v1548_v34, %v1547_v32  ;;  %v1729_v32 = vld [vmem:[#allocation12 + $0x328] sm:$0xff] }
 0x374   : > { %v5015_v41 = vpop.f32.mrb[11].mxu0 }
 0x375   : > { %v5912_v40 = vpop.f32.mrb[4].mxu1  ;;  %v5016_v42 = vadd.f32 %v5015_v41, %v5014_v38  ;;  %v1517_v38 = vld [vmem:[#allocation9 + $0x350] sm:$0xff]  ;;  %v1536_v41 = vld [vmem:[#allocation9 + $0x3e8] sm:$0xff] }
 0x376   : > { %v1254_v43 = vpop.f32.mrb[5].mxu1 }
 0x377   : > { %v1255_v45 = vadd.f32 %v1254_v43, %v1180_v39  ;;  %v1185_v46 = vadd.f32 %v5016_v42, %v4819_v36  ;;  %v6733_v36 = vpack.c.bf16 %v1534_v30, %v1533_v29  ;;  %v1518_v39 = vld [vmem:[#allocation9 + $0x358] sm:$0xff]  ;;  %v1549_v42 = vld [vmem:[#allocation9 + $0x450] sm:$0xff]  ;;  %v1728_v29 = vld [vmem:[#allocation12 + $0x320] sm:$0xff]  ;;  %v6813_v30 = vpack.c.bf16 %v1759_v28, %v1758_v27 }
 0x378   : > { %v1550_v43 = vld [vmem:[#allocation9 + $0x458] sm:$0xff]  ;;  %v6787_v34 = vpack.c.bf16 %v1729_v32, %v1728_v29  ;;  %v1771_v28 = vld [vmem:[#allocation12 + $0x478] sm:$0xff] }
 0x379   : > { %v8782_v48 = vsub.f32 %v8752_v49, %v1255_v45  ;;  %v1260_v50 = vadd.f32 %v5912_v40, %v1185_v46  ;;  %v1527_v49 = vld [vmem:[#allocation9 + $0x3a0] sm:$0xff]  ;;  %v6735_v45 = vpack.c.bf16 %v1518_v39, %v1517_v38  ;;  %v1760_v38 = vld [vmem:[#allocation12 + $0x420] sm:$0xff]  ;;  %v1761_v39 = vld [vmem:[#allocation12 + $0x428] sm:$0xff] }
 0x37a   : > { %v6721_v8 = vpack.c.bf16 %v1528_v61, %v1527_v49  ;;  %v1535_v40 = vld [vmem:[#allocation9 + $0x3e0] sm:$0xff]  ;;  %v1521_v61 = vld [vmem:[#allocation9 + $0x370] sm:$0xff]  ;;  %v1770_v27 = vld [vmem:[#allocation12 + $0x470] sm:$0xff] }
 0x37b   : > { %1265 = vst [vmem:[#allocation3 + $0x5] sm:$0xff] %v8782_v48  ;;  %1394 = vmatprep.mubr.f32.mxu0 %v8782_v48  ;;  %v8787_v52 = vsub.f32 %v8758_v51, %v1260_v50  ;;  %v6719_v51 = vpack.c.bf16 %v1510_v60, %v1509_v58  ;;  %v6737_v46 = vpack.c.bf16 %v1536_v41, %v1535_v40  ;;  %v1552_v58 = vld [vmem:[#allocation9 + $0x468] sm:$0xff]  ;;  %v1730_v40 = vld [vmem:[#allocation12 + $0x330] sm:$0xff]  ;;  %v1989_v32 = vld [vmem:[#allocation9 + $0x580] sm:$0xff] }
 0x37c   : > { %v6765_v50 = vpack.c.bf16 %v1550_v43, %v1549_v42  ;;  %v6741_v60 = vpack.c.bf16 %v1538_v56, %v1537_v55  ;;  %v6817_v41 = vpack.c.bf16 %v1761_v39, %v1760_v38  ;;  %v1731_v42 = vld [vmem:[#allocation12 + $0x338] sm:$0xff]  ;;  %v1732_v55 = vld [vmem:[#allocation12 + $0x340] sm:$0xff] }
 0x37d   : > { %1266 = vst [vmem:[#allocation3 + $0xd] sm:$0xff] %v8787_v52  ;;  %v6791_v43 = vpack.c.bf16 %v1731_v42, %v1730_v40  ;;  %v4820_v40 = vld [vmem:[#allocation13 + $0x1] ss:$0 sm:$0xff] }
 0x382   : > { %v1267_v62 = vld [vmem:[#allocation3 + $0x3] sm:$0xff] }
 0x383   : > { %1395 = vmatmul.mubr.f32.vlgmr.msra.gmra.mrb[12].mxu0 %v1267_v62  ;;  %v1522_v62 = vld [vmem:[#allocation9 + $0x378] sm:$0xff] }
 0x384   : > { %6716 = vmatpush3.bf16.msra.mxu0 %v6715_v57  ;;  %1399 = vmatprep.mubr.f32.mxu0 %v8787_v52  ;;  %v1271_v5 = vld [vmem:[#allocation3 + $0x7] sm:$0xff]  ;;  %v1272_v7 = vld [vmem:[#allocation3 + $0xf] sm:$0xff] }
 0x385   : > { %6718 = vmatprep.subr.bf16.mxu0 %v6717_v59  ;;  %v1268_v6 = vld [vmem:[#allocation3 + $0xb] sm:$0xff]  ;;  %5945 = vmatprep.mubr.f32.mxu1 %v1271_v5  ;;  %v1551_v57 = vld [vmem:[#allocation9 + $0x460] sm:$0xff]  ;;  %v6739_v59 = vpack.c.bf16 %v1520_v54, %v1519_v53  ;;  %v1762_v53 = vld [vmem:[#allocation12 + $0x430] sm:$0xff] }
 0x386   : > { %5946 = vmatmul.mubr.f32.vlgmr.msra.gmra.mrb[6].mxu1 %v1272_v7  ;;  %v6769_v49 = vpack.c.bf16 %v1552_v58, %v1551_v57  ;;  %v8801_v5 = vld [vmem:[#allocation2 + $0xa] sm:$0xff]  ;;  %v1763_v54 = vld [vmem:[#allocation12 + $0x438] sm:$0xff] }
 0x387   : > { %1400 = vmatmul.mubr.f32.gmra.mrb[14].mxu0 %v1268_v6  ;;  %6748 = vmatpush3.bf16.msra.mxu1 %v8774_v20  ;;  %v6729_v20 = vpack.c.bf16 %v1532_v22, %v1531_v21  ;;  %v1505_v6 = vld [vmem:[#allocation2 + $0x10] sm:$0xff]  ;;  %v1740_v7 = vld [vmem:[#allocation12 + $0x380] sm:$0xff]  ;;  %v1726_v21 = vld [vmem:[#allocation12 + $0x310] sm:$0xff]  ;;  %v6809_v22 = vpack.c.bf16 %v1757_v19, %v1756_v18  ;;  %v6821_v56 = vpack.c.bf16 %v1763_v54, %v1762_v53 }
 0x388   : > { %6720 = vmatpush3.bf16.msra.mxu0 %v6719_v51  ;;  %6750 = vmatprep.subr.bf16.mxu1 %v6749_v9  ;;  %v6743_v51 = vpack.c.bf16 %v1522_v62, %v1521_v61  ;;  %v6783_v24 = vpack.c.bf16 %v1727_v23, %v1726_v21  ;;  %v1733_v57 = vld [vmem:[#allocation12 + $0x348] sm:$0xff]  ;;  %v1764_v61 = vld [vmem:[#allocation12 + $0x440] sm:$0xff] }
 0x389   : > { %6722 = vmatprep.subr.bf16.mxu0 %v6721_v8  ;;  %1627 = vmatprep.mubr.f32.mxu0 %v8791_v13  ;;  %v1741_v8 = vld [vmem:[#allocation12 + $0x388] sm:$0xff]  ;;  %v6795_v58 = vpack.c.bf16 %v1733_v57, %v1732_v55  ;;  %v1768_v19 = vld [vmem:[#allocation12 + $0x460] sm:$0xff] }
 0x38a   : > { %5980 = vmatprep.mubr.f32.mxu1 %v8793_v14  ;;  %v1765_v62 = vld [vmem:[#allocation12 + $0x448] sm:$0xff] }
 0x38b   : > { %6752 = vmatpush3.bf16.msra.mxu1 %v6749_v9  ;;  %v6777_v9 = vpack.c.bf16 %v1741_v8, %v1740_v7  ;;  %v6825_v63 = vpack.c.bf16 %v1765_v62, %v1764_v61  ;;  %v1766_v8 = vld [vmem:[#allocation12 + $0x450] sm:$0xff]  ;;  %v1769_v21 = vld [vmem:[#allocation12 + $0x468] sm:$0xff] }
 0x38c   : > { %6724 = vmatpush3.bf16.msra.mxu0 %v6723_v15  ;;  %6754 = vmatprep.subr.bf16.mxu1 %v6753_v17  ;;  %v1742_v15 = vld [vmem:[#allocation12 + $0x390] sm:$0xff]  ;;  %v6833_v23 = vpack.c.bf16 %v1769_v21, %v1768_v19 }
 0x38d   : > { %6726 = vmatprep.subr.bf16.mxu0 %v6725_v16  ;;  %v1743_v16 = vld [vmem:[#allocation12 + $0x398] sm:$0xff] }
 0x38f   : > { %6756 = vmatpush3.bf16.msra.mxu1 %v6753_v17  ;;  %v6781_v17 = vpack.c.bf16 %v1743_v16, %v1742_v15  ;;  %v1754_v16 = vld [vmem:[#allocation12 + $0x3f0] sm:$0xff] }
 0x390   : > { %6728 = vmatpush3.bf16.msra.mxu0 %v6727_v25  ;;  %6758 = vmatprep.subr.bf16.mxu1 %v6757_v26  ;;  %v1744_v25 = vld [vmem:[#allocation12 + $0x3a0] sm:$0xff] }
 0x391   : > { %6730 = vmatprep.subr.bf16.mxu0 %v6729_v20  ;;  %v1745_v20 = vld [vmem:[#allocation12 + $0x3a8] sm:$0xff] }
 0x393   : > { %6760 = vmatpush3.bf16.msra.mxu1 %v6757_v26  ;;  %v6785_v26 = vpack.c.bf16 %v1745_v20, %v1744_v25  ;;  %v1973_v20 = vld [vmem:[#allocation9 + $0x500] sm:$0xff] }
 0x394   : > { %6732 = vmatpush3.bf16.msra.mxu0 %v6731_v35  ;;  %6762 = vmatprep.subr.bf16.mxu1 %v6761_v37  ;;  %v1746_v35 = vld [vmem:[#allocation12 + $0x3b0] sm:$0xff] }
 0x395   : > { %6734 = vmatprep.subr.bf16.mxu0 %v6733_v36  ;;  %v1747_v36 = vld [vmem:[#allocation12 + $0x3b8] sm:$0xff] }
 0x397   : > { %6764 = vmatpush3.bf16.msra.mxu1 %v6761_v37  ;;  %v6789_v37 = vpack.c.bf16 %v1747_v36, %v1746_v35  ;;  %v4817_v36 = vmul.f32 -1.442695, %v8777_v31 }
 0x398   : > { %6736 = vmatpush3.bf16.msra.mxu0 %v6735_v45  ;;  %6766 = vmatprep.subr.bf16.mxu1 %v6765_v50  ;;  %v1748_v45 = vld [vmem:[#allocation12 + $0x3c0] sm:$0xff] }
 0x399   : > { %6738 = vmatprep.subr.bf16.mxu0 %v6737_v46  ;;  %v1749_v46 = vld [vmem:[#allocation12 + $0x3c8] sm:$0xff]  ;;  %7727 = vpow2.f32 %v4817_v36  ;;  %v1976_v36 = vld [vmem:[#allocation9 + $0x518] sm:$0xff] }
 0x39b   : > { %6768 = vmatpush3.bf16.msra.mxu1 %v6765_v50  ;;  %v6793_v50 = vpack.c.bf16 %v1749_v46, %v1748_v45 }
 0x39c   : > { %6740 = vmatpush3.bf16.msra.mxu0 %v6739_v59  ;;  %6770 = vmatprep.subr.bf16.mxu1 %v6769_v49  ;;  %v1750_v59 = vld [vmem:[#allocation12 + $0x3d0] sm:$0xff] }
 0x39d   : > { %6742 = vmatprep.subr.bf16.mxu0 %v6741_v60  ;;  %v1751_v60 = vld [vmem:[#allocation12 + $0x3d8] sm:$0xff] }
 0x39f   : > { %6772 = vmatpush3.bf16.msra.mxu1 %v6769_v49  ;;  %v6797_v49 = vpack.c.bf16 %v1751_v60, %v1750_v59 }
 0x3a0   : > { %6744 = vmatpush3.bf16.msra.mxu0 %v6743_v51  ;;  %6774 = vmatprep.subr.bf16.mxu1 %v6773_v2  ;;  %v1735_v51 = vld [vmem:[#allocation12 + $0x358] sm:$0xff] }
 0x3a1   : > { %6778 = vmatprep.subr.bf16.mxu0 %v6777_v9  ;;  %v1767_v9 = vld [vmem:[#allocation12 + $0x458] sm:$0xff] }
 0x3a2   : > { %v6829_v11 = vpack.c.bf16 %v1767_v9, %v1766_v8  ;;  %v4823_v8 = vld [vmem:[#allocation10 + $0x2] ss:$0 sm:$0xff] }
 0x3a3   : > { %1628 = vmatmul.mubr.f32.vlgmr.msra.gmra.mrb[16].mxu0 %v1500_v3  ;;  %6776 = vmatpush3.bf16.msra.mxu1 %v6773_v2  ;;  %v6799_v2 = vpack.c.bf16 %v1735_v51, %v1734_v1  ;;  %v1752_v3 = vld [vmem:[#allocation12 + $0x3e0] sm:$0xff]  ;;  %v7728_v57 = vpop.eup %7727 }
 0x3a4   : > { %1632 = vmatprep.mubr.f32.mxu0 %v8798_v4  ;;  %6780 = vmatpush3.bf16.msra.mxu0 %v6779_v12  ;;  %v1737_v12 = vld [vmem:[#allocation12 + $0x368] sm:$0xff] }
 0x3a5   : > { %6782 = vmatprep.subr.bf16.mxu0 %v6781_v17  ;;  %6810 = vmatprep.subr.bf16.mxu1 %v6809_v22  ;;  %v6803_v15 = vpack.c.bf16 %v1737_v12, %v1736_v10  ;;  %v1755_v17 = vld [vmem:[#allocation12 + $0x3f8] sm:$0xff] }
 0x3a6   : > { %5981 = vmatmul.mubr.f32.vlgmr.msra.gmra.mrb[8].mxu1 %v1505_v6  ;;  %v1753_v6 = vld [vmem:[#allocation12 + $0x3e8] sm:$0xff]  ;;  %v6805_v18 = vpack.c.bf16 %v1755_v17, %v1754_v16 }
 0x3a7   : > { %1633 = vmatmul.mubr.f32.gmra.mrb[18].mxu0 %v8801_v5  ;;  %6812 = vmatpush3.bf16.msra.mxu1 %v6809_v22  ;;  %v6801_v7 = vpack.c.bf16 %v1753_v6, %v1752_v3  ;;  %v1738_v22 = vld [vmem:[#allocation12 + $0x370] sm:$0xff] }
 0x3a8   : > { %6784 = vmatpush3.bf16.msra.mxu0 %v6783_v24  ;;  %6814 = vmatprep.subr.bf16.mxu1 %v6813_v30  ;;  %v1739_v24 = vld [vmem:[#allocation12 + $0x378] sm:$0xff] }
 0x3a9   : > { %6786 = vmatprep.subr.bf16.mxu0 %v6785_v26  ;;  %v6807_v25 = vpack.c.bf16 %v1739_v24, %v1738_v22  ;;  %v1974_v26 = vld [vmem:[#allocation9 + $0x508] sm:$0xff] }
 0x3aa   : > { %v6841_v29 = vpack.c.bf16 %v1974_v26, %v1973_v20 }
 0x3ab   : > { %6816 = vmatpush3.bf16.msra.mxu1 %v6813_v30  ;;  %v6837_v30 = vpack.c.bf16 %v1771_v28, %v1770_v27  ;;  %v8816_v28 = vld [vmem:[#allocation2 + $0xd] sm:$0xff] }
 0x3ac   : > { %6788 = vmatpush3.bf16.msra.mxu0 %v6787_v34  ;;  %6818 = vmatprep.subr.bf16.mxu1 %v6817_v41  ;;  %v1990_v34 = vld [vmem:[#allocation9 + $0x588] sm:$0xff] }
 0x3ad   : > { %6790 = vmatprep.subr.bf16.mxu0 %v6789_v37  ;;  %v8804_v35 = vpack.c.bf16 %v1990_v34, %v1989_v32  ;;  %v4818_v37 = vmul.f32 -1.442695, %v8779_v33  ;;  %v1036_v33 = vadd.f32 1.0, %v7728_v57  ;;  %v1958_v32 = vld [vmem:[#allocation9 + $0x488] sm:$0xff]  ;;  %v1975_v34 = vld [vmem:[#allocation9 + $0x510] sm:$0xff]  ;;  %v1992_v57 = vld [vmem:[#allocation9 + $0x598] sm:$0xff] }
 0x3af   : > { %6820 = vmatpush3.bf16.msra.mxu1 %v6817_v41  ;;  %7729 = vpow2.f32 %v4818_v37 }
 0x3b0   : > { %6792 = vmatpush3.bf16.msra.mxu0 %v6791_v43  ;;  %6822 = vmatprep.subr.bf16.mxu1 %v6821_v56 }
 0x3b1   : > { %6794 = vmatprep.subr.bf16.mxu0 %v6793_v50 }
 0x3b3   : > { %6824 = vmatpush3.bf16.msra.mxu1 %v6821_v56 }
 0x3b4   : > { %6796 = vmatpush3.bf16.msra.mxu0 %v6795_v58  ;;  %6826 = vmatprep.subr.bf16.mxu1 %v6825_v63 }
 0x3b5   : > { %6798 = vmatprep.subr.bf16.mxu0 %v6797_v49 }
 0x3b7   : > { %6828 = vmatpush3.bf16.msra.mxu1 %v6825_v63 }
 0x3b8   : > { %6800 = vmatpush3.bf16.msra.mxu0 %v6799_v2  ;;  %6830 = vmatprep.subr.bf16.mxu1 %v6829_v11 }
 0x3b9   : > { %6802 = vmatprep.subr.bf16.mxu0 %v6801_v7  ;;  %v7730_v59 = vpop.eup %7729 }
 0x3ba   : > { %v1037_v60 = vadd.f32 1.0, %v7730_v59  ;;  %v1962_v59 = vld [vmem:[#allocation9 + $0x4a8] sm:$0xff] }
 0x3bb   : > { %6832 = vmatpush3.bf16.msra.mxu1 %v6829_v11 }
 0x3bc   : > { %6804 = vmatpush3.bf16.msra.mxu0 %v6803_v15  ;;  %6834 = vmatprep.subr.bf16.mxu1 %v6833_v23 }
 0x3bd   : > { %6806 = vmatprep.subr.bf16.mxu0 %v6805_v18 }
 0x3bf   : > { %6836 = vmatpush3.bf16.msra.mxu1 %v6833_v23 }
 0x3c0   : > { %6808 = vmatpush3.bf16.msra.mxu0 %v6807_v25  ;;  %6838 = vmatprep.subr.bf16.mxu1 %v6837_v30  ;;  %v8809_v25 = vld [vmem:[#allocation2 + $0x5] sm:$0xff] }
 0x3c1   : > { %6842 = vmatprep.subr.bf16.mxu0 %v6841_v29 }
 0x3c3   : > { %6840 = vmatpush3.bf16.msra.mxu1 %v6837_v30  ;;  %v1957_v30 = vld [vmem:[#allocation9 + $0x480] sm:$0xff] }
 0x3c4   : > { %6874 = vmatprep.subr.bf16.mxu1 %v8804_v35 }
 0x456   : > { %v5067_v38 = vpop.f32.mrb[12].mxu0 }
 0x457   : > { %v5068_v39 = vpop.f32.mrb[13].mxu0 }
 0x458   : > { %v5069_v41 = vadd.f32 %v5068_v39, %v5067_v38 }
 0x459   : > { %v5947_v43 = vpop.f32.mrb[6].mxu1 }
 0x45a   : > { %v5070_v42 = vpop.f32.mrb[14].mxu0  ;;  %v1397_v45 = vadd.f32 %v5069_v41, %v4820_v40  ;;  %v1471_v50 = vpop.f32.mrb[7].mxu1 }
 0x45b   : > { %v5071_v46 = vpop.f32.mrb[15].mxu0 }
 0x45c   : > { %v5072_v53 = vadd.f32 %v5071_v46, %v5070_v42  ;;  %v1472_v54 = vadd.f32 %v1471_v50, %v1397_v45  ;;  %v6845_v42 = vpack.c.bf16 %v1976_v36, %v1975_v34  ;;  %v1960_v45 = vld [vmem:[#allocation9 + $0x498] sm:$0xff]  ;;  %v1999_v34 = vld [vmem:[#allocation9 + $0x5d0] sm:$0xff] }
 0x45d   : > { %v2000_v36 = vld [vmem:[#allocation9 + $0x5d8] sm:$0xff] }
 0x45e   : > { %v1402_v55 = vadd.f32 %v5072_v53, %v4820_v40  ;;  %v4821_v56 = vmul.f32 -1.442695, %v1472_v54  ;;  %v6843_v40 = vpack.c.bf16 %v1958_v32, %v1957_v30  ;;  %v1977_v53 = vld [vmem:[#allocation9 + $0x520] sm:$0xff]  ;;  %v1978_v54 = vld [vmem:[#allocation9 + $0x528] sm:$0xff] }
 0x45f   : > { %v1985_v30 = vld [vmem:[#allocation9 + $0x560] sm:$0xff]  ;;  %v1986_v32 = vld [vmem:[#allocation9 + $0x568] sm:$0xff] }
 0x460   : > { %v1477_v58 = vadd.f32 %v5947_v43, %v1402_v55  ;;  %7731 = vpow2.f32 %v4821_v56  ;;  %v1959_v43 = vld [vmem:[#allocation9 + $0x490] sm:$0xff] }
 0x461   : > { %v1991_v56 = vld [vmem:[#allocation9 + $0x590] sm:$0xff] }
 0x462   : > { %v4822_v31 = vmul.f32 -1.442695, %v1477_v58 }
 0x464   : > { %7733 = vpow2.f32 %v4822_v31  ;;  %v1961_v31 = vld [vmem:[#allocation9 + $0x4a0] sm:$0xff] }
 0x465   : > { %7735 = vrcp.f32 %v1036_v33  ;;  %v6849_v33 = vpack.c.bf16 %v1978_v54, %v1977_v53 }
 0x466   : > { %7737 = vrcp.f32 %v1037_v60  ;;  %v1979_v60 = vld [vmem:[#allocation9 + $0x530] sm:$0xff] }
 0x46a   : > { %v7732_v49 = vpop.eup %7731 }
 0x46b   : > { %v1486_v61 = vadd.f32 1.0, %v7732_v49  ;;  %v1980_v49 = vld [vmem:[#allocation9 + $0x538] sm:$0xff] }
 0x46d   : > { %7739 = vrcp.f32 %v1486_v61 }
 0x46e   : > { %v7734_v62 = vpop.eup %7733 }
 0x46f   : > { %v1487_v63 = vadd.f32 1.0, %v7734_v62  ;;  %v7736_v1 = vpop.eup %7735 }
 0x470   : > { %v1042_v51 = vadd.f32 1e-05, %v7736_v1  ;;  %v7738_v2 = vpop.eup %7737 }
 0x471   : > { %7741 = vrcp.f32 %v1487_v63  ;;  %v1043_v9 = vadd.f32 1e-05, %v7738_v2  ;;  %v6851_v2 = vpack.c.bf16 %v1962_v59, %v1961_v31  ;;  %v1955_v59 = vld [vmem:[#allocation2 + $0x12] sm:$0xff] }
 0x472   : > { %7743 = vrcp.f32 %v1042_v51  ;;  %v6877_v51 = vpack.c.bf16 %v1992_v57, %v1991_v56  ;;  %v1972_v56 = vld [vmem:[#allocation9 + $0x4f8] sm:$0xff] }
 0x476   : > { %v5123_v3 = vpop.f32.mrb[16].mxu0 }
 0x477   : > { %v7740_v6 = vpop.eup %7739  ;;  %v5124_v7 = vpop.f32.mrb[17].mxu0 }
 0x478   : > { %v1492_v10 = vadd.f32 1e-05, %v7740_v6  ;;  %v5125_v11 = vadd.f32 %v5124_v7, %v5123_v3  ;;  %v6853_v3 = vpack.c.bf16 %v1980_v49, %v1979_v60  ;;  %v1963_v6 = vld [vmem:[#allocation9 + $0x4b0] sm:$0xff]  ;;  %v1964_v7 = vld [vmem:[#allocation9 + $0x4b8] sm:$0xff]  ;;  %v2190_v60 = vld [vmem:[#allocation12 + $0x500] sm:$0xff] }
 0x479   : > { %v5982_v15 = vpop.f32.mrb[8].mxu1  ;;  %v2191_v49 = vld [vmem:[#allocation12 + $0x508] sm:$0xff] }
 0x47a   : > { %7745 = vrcp.f32 %v1492_v10  ;;  %v5126_v12 = vpop.f32.mrb[18].mxu0  ;;  %v1630_v16 = vadd.f32 %v5125_v11, %v4823_v8  ;;  %v1704_v19 = vpop.f32.mrb[9].mxu1  ;;  %v1982_v10 = vld [vmem:[#allocation9 + $0x548] sm:$0xff]  ;;  %v1995_v11 = vld [vmem:[#allocation9 + $0x5b0] sm:$0xff] }
 0x47b   : > { %v7742_v17 = vpop.eup %7741  ;;  %v5127_v18 = vpop.f32.mrb[19].mxu0  ;;  %7747 = vrcp.f32 %v1043_v9  ;;  %v1981_v9 = vld [vmem:[#allocation9 + $0x540] sm:$0xff] }
 0x47c   : > { %v1493_v21 = vadd.f32 1e-05, %v7742_v17  ;;  %v5128_v22 = vadd.f32 %v5127_v18, %v5126_v12  ;;  %v1705_v23 = vadd.f32 %v1704_v19, %v1630_v16  ;;  %v7744_v27 = vpop.eup %7743  ;;  %v1996_v12 = vld [vmem:[#allocation9 + $0x5b8] sm:$0xff]  ;;  %v6857_v16 = vpack.c.bf16 %v1982_v10, %v1981_v9  ;;  %v1966_v17 = vld [vmem:[#allocation9 + $0x4c8] sm:$0xff]  ;;  %v1983_v19 = vld [vmem:[#allocation9 + $0x550] sm:$0xff] }
 0x47d   : > { %v1045_v38 = vmul.f32 %v7744_v27, %v8763_v44  ;;  %v6885_v18 = vpack.c.bf16 %v1996_v12, %v1995_v11  ;;  %v2195_v10 = vld [vmem:[#allocation12 + $0x528] sm:$0xff]  ;;  %v2208_v11 = vld [vmem:[#allocation12 + $0x590] sm:$0xff] }
 0x47e   : > { %7749 = vrcp.f32 %v1493_v21  ;;  %v1635_v24 = vadd.f32 %v5128_v22, %v4823_v8  ;;  %v8812_v20 = vsub.f32 %v8809_v25, %v1705_v23  ;;  %v1984_v21 = vld [vmem:[#allocation9 + $0x558] sm:$0xff]  ;;  %v1997_v22 = vld [vmem:[#allocation9 + $0x5c0] sm:$0xff]  ;;  %v1998_v23 = vld [vmem:[#allocation9 + $0x5c8] sm:$0xff] }
 0x47f   : > { %v6889_v27 = vpack.c.bf16 %v1998_v23, %v1997_v22  ;;  %v2210_v22 = vld [vmem:[#allocation12 + $0x5a0] sm:$0xff] }
 0x480   : > { %v1710_v26 = vadd.f32 %v5982_v15, %v1635_v24  ;;  %1715 = vst [vmem:[#allocation3 + $0x5] sm:$0xff] %v8812_v20  ;;  %1844 = vmatprep.mubr.f32.mxu0 %v8812_v20  ;;  %v6855_v15 = vpack.c.bf16 %v1964_v7, %v1963_v6  ;;  %v2207_v6 = vld [vmem:[#allocation12 + $0x588] sm:$0xff]  ;;  %v2176_v7 = vld [vmem:[#allocation12 + $0x490] sm:$0xff] }
 0x482   : > { %v8819_v29 = vsub.f32 %v8816_v28, %v1710_v26  ;;  %v1967_v26 = vld [vmem:[#allocation9 + $0x4d0] sm:$0xff] }
 0x484   : > { %v7746_v37 = vpop.eup %7745  ;;  %1716 = vst [vmem:[#allocation3 + $0xd] sm:$0xff] %v8819_v29 }
 0x485   : > { %v1495_v39 = vmul.f32 %v7746_v37, %v8782_v48  ;;  %v7748_v41 = vpop.eup %7747  ;;  %v6847_v48 = vpack.c.bf16 %v1960_v45, %v1959_v43  ;;  %v1988_v43 = vld [vmem:[#allocation9 + $0x578] sm:$0xff]  ;;  %v2001_v45 = vld [vmem:[#allocation9 + $0x5e0] sm:$0xff] }
 0x486   : > { %v1047_v58 = vmul.f32 %v7748_v41, %v8768_v47  ;;  %v1993_v47 = vld [vmem:[#allocation9 + $0x5a0] sm:$0xff]  ;;  %v6893_v41 = vpack.c.bf16 %v2000_v36, %v1999_v34  ;;  %v2212_v34 = vld [vmem:[#allocation12 + $0x5b0] sm:$0xff] }
 0x487   : > { %v8824_v46 = vadd.f32 %v1495_v39, %v1045_v38  ;;  %v1717_v50 = vld [vmem:[#allocation3 + $0x2] sm:$0xff]  ;;  %v6865_v38 = vpack.c.bf16 %v1986_v32, %v1985_v30  ;;  %v2199_v32 = vld [vmem:[#allocation12 + $0x548] sm:$0xff] }
 0x488   : > { %v7750_v55 = vpop.eup %7749  ;;  %1845 = vmatmul.mubr.f32.vlgmr.msra.gmra.mrb[20].mxu0 %v1717_v50  ;;  %v1969_v39 = vld [vmem:[#allocation9 + $0x4e0] sm:$0xff]  ;;  %v2002_v50 = vld [vmem:[#allocation9 + $0x5e8] sm:$0xff] }
 0x489   : > { %v1497_v44 = vmul.f32 %v7750_v55, %v8787_v52  ;;  %6844 = vmatpush3.bf16.msra.mxu0 %v6843_v40  ;;  %1849 = vmatprep.mubr.f32.mxu0 %v8819_v29  ;;  %v1994_v52 = vld [vmem:[#allocation9 + $0x5a8] sm:$0xff]  ;;  %v1971_v55 = vld [vmem:[#allocation9 + $0x4f0] sm:$0xff]  ;;  %v6897_v57 = vpack.c.bf16 %v2002_v50, %v2001_v45 }
 0x48a   : > { %6846 = vmatprep.subr.bf16.mxu0 %v6845_v42  ;;  %v6881_v8 = vpack.c.bf16 %v1994_v52, %v1993_v47  ;;  %v1970_v40 = vld [vmem:[#allocation9 + $0x4e8] sm:$0xff]  ;;  %v1987_v42 = vld [vmem:[#allocation9 + $0x570] sm:$0xff]  ;;  %v2192_v47 = vld [vmem:[#allocation12 + $0x510] sm:$0xff] }
 0x48b   : > { %v8829_v61 = vadd.f32 %v1497_v44, %v1047_v58  ;;  %v1721_v62 = vld [vmem:[#allocation3 + $0x8] sm:$0xff]  ;;  %v1722_v1 = vld [vmem:[#allocation3 + $0x10] sm:$0xff]  ;;  %v6867_v53 = vpack.c.bf16 %v1970_v40, %v1969_v39  ;;  %v6869_v54 = vpack.c.bf16 %v1988_v43, %v1987_v42  ;;  %v2004_v44 = vld [vmem:[#allocation9 + $0x5f8] sm:$0xff] }
 0x48c   : > { %v1718_v63 = vld [vmem:[#allocation3 + $0xa] sm:$0xff]  ;;  %6015 = vmatprep.mubr.f32.mxu1 %v1721_v62  ;;  %v6905_v62 = vpack.c.bf16 %v2191_v49, %v2190_v60  ;;  %v2193_v52 = vld [vmem:[#allocation12 + $0x518] sm:$0xff]  ;;  %v2200_v42 = vld [vmem:[#allocation12 + $0x550] sm:$0xff] }
 0x48d   : > { %1850 = vmatmul.mubr.f32.gmra.mrb[22].mxu0 %v1718_v63  ;;  %6016 = vmatmul.mubr.f32.vlgmr.msra.gmra.mrb[10].mxu1 %v1722_v1  ;;  %v2003_v58 = vld [vmem:[#allocation9 + $0x5f0] sm:$0xff]  ;;  %v2174_v63 = vld [vmem:[#allocation12 + $0x480] sm:$0xff]  ;;  %v2201_v43 = vld [vmem:[#allocation12 + $0x558] sm:$0xff] }
 0x48e   : > { %6848 = vmatpush3.bf16.msra.mxu0 %v6847_v48  ;;  %6876 = vmatpush3.bf16.msra.mxu1 %v8804_v35  ;;  %v1965_v35 = vld [vmem:[#allocation9 + $0x4c0] sm:$0xff]  ;;  %v6871_v48 = vpack.c.bf16 %v1972_v56, %v1971_v55  ;;  %v6901_v31 = vpack.c.bf16 %v2004_v44, %v2003_v58  ;;  %v2175_v1 = vld [vmem:[#allocation12 + $0x488] sm:$0xff]  ;;  %v2198_v30 = vld [vmem:[#allocation12 + $0x540] sm:$0xff]  ;;  %v6925_v45 = vpack.c.bf16 %v2201_v43, %v2200_v42 }
 0x48f   : > { %6850 = vmatprep.subr.bf16.mxu0 %v6849_v33  ;;  %6878 = vmatprep.subr.bf16.mxu1 %v6877_v51  ;;  %v6859_v24 = vpack.c.bf16 %v1966_v17, %v1965_v35  ;;  %v1950_v33 = vld [vmem:[#allocation2] sm:$0xff]  ;;  %v2179_v35 = vld [vmem:[#allocation12 + $0x4a8] sm:$0xff]  ;;  %v6921_v36 = vpack.c.bf16 %v2199_v32, %v2198_v30  ;;  %v2214_v50 = vld [vmem:[#allocation12 + $0x5c0] sm:$0xff] }
 0x490   : > { %2077 = vmatprep.mubr.f32.mxu0 %v8791_v13  ;;  %6050 = vmatprep.mubr.f32.mxu1 %v8801_v5  ;;  %v6861_v13 = vpack.c.bf16 %v1984_v21, %v1983_v19  ;;  %v1968_v5 = vld [vmem:[#allocation9 + $0x4d8] sm:$0xff]  ;;  %v2197_v21 = vld [vmem:[#allocation12 + $0x538] sm:$0xff]  ;;  %v2183_v39 = vld [vmem:[#allocation12 + $0x4c8] sm:$0xff] }
 0x491   : > { %v6863_v37 = vpack.c.bf16 %v1968_v5, %v1967_v26  ;;  %v2196_v19 = vld [vmem:[#allocation12 + $0x530] sm:$0xff]  ;;  %v2181_v26 = vld [vmem:[#allocation12 + $0x4b8] sm:$0xff]  ;;  %v2202_v58 = vld [vmem:[#allocation12 + $0x560] sm:$0xff] }
 0x492   : > { %6852 = vmatpush3.bf16.msra.mxu0 %v6851_v2  ;;  %6880 = vmatpush3.bf16.msra.mxu1 %v6877_v51  ;;  %v6907_v51 = vpack.c.bf16 %v2175_v1, %v2174_v63  ;;  %v2206_v2 = vld [vmem:[#allocation12 + $0x580] sm:$0xff]  ;;  %v6917_v23 = vpack.c.bf16 %v2197_v21, %v2196_v19  ;;  %v2185_v56 = vld [vmem:[#allocation12 + $0x4d8] sm:$0xff]  ;;  %v2203_v44 = vld [vmem:[#allocation12 + $0x568] sm:$0xff] }
 0x493   : > { %6854 = vmatprep.subr.bf16.mxu0 %v6853_v3  ;;  %6882 = vmatprep.subr.bf16.mxu1 %v6881_v8  ;;  %v6909_v3 = vpack.c.bf16 %v2193_v52, %v2192_v47  ;;  %v2187_v60 = vld [vmem:[#allocation12 + $0x4e8] sm:$0xff]  ;;  %v2204_v63 = vld [vmem:[#allocation12 + $0x570] sm:$0xff]  ;;  %v2205_v1 = vld [vmem:[#allocation12 + $0x578] sm:$0xff] }
 0x494   : > { %v6933_v47 = vpack.c.bf16 %v2205_v1, %v2204_v63  ;;  %v2219_v52 = vld [vmem:[#allocation12 + $0x5e8] sm:$0xff]  ;;  %v4824_v21 = vld [vmem:[#allocation13 + $0x2] ss:$0 sm:$0xff]  ;;  %v2429_v1 = vld [vmem:[#allocation9 + $0x600] sm:$0xff] }
 0x496   : > { %6856 = vmatpush3.bf16.msra.mxu0 %v6855_v15  ;;  %6884 = vmatpush3.bf16.msra.mxu1 %v6881_v8  ;;  %v6937_v8 = vpack.c.bf16 %v2207_v6, %v2206_v2  ;;  %v2209_v15 = vld [vmem:[#allocation12 + $0x598] sm:$0xff]  ;;  %v2188_v2 = vld [vmem:[#allocation12 + $0x4f0] sm:$0xff] }
 0x497   : > { %6858 = vmatprep.subr.bf16.mxu0 %v6857_v16  ;;  %6886 = vmatprep.subr.bf16.mxu1 %v6885_v18  ;;  %v2178_v16 = vld [vmem:[#allocation12 + $0x4a0] sm:$0xff]  ;;  %v6941_v17 = vpack.c.bf16 %v2209_v15, %v2208_v11 }
 0x498   : > { %v2462_v15 = vld [vmem:[#allocation9 + $0x708] sm:$0xff] }
 0x49a   : > { %6860 = vmatpush3.bf16.msra.mxu0 %v6859_v24  ;;  %6888 = vmatpush3.bf16.msra.mxu1 %v6885_v18  ;;  %v6915_v18 = vpack.c.bf16 %v2179_v35, %v2178_v16  ;;  %v2211_v24 = vld [vmem:[#allocation12 + $0x5a8] sm:$0xff] }
 0x49b   : > { %6862 = vmatprep.subr.bf16.mxu0 %v6861_v13  ;;  %6890 = vmatprep.subr.bf16.mxu1 %v6889_v27  ;;  %v2180_v13 = vld [vmem:[#allocation12 + $0x4b0] sm:$0xff]  ;;  %v6945_v5 = vpack.c.bf16 %v2211_v24, %v2210_v22  ;;  %v8841_v35 = vld [vmem:[%s514_s17] sm:$0xff] }
 0x49c   : > { %2420 = vst [vmem:[#allocation2 + $0x5] sm:$0xff] %v8841_v35 }
 0x49e   : > { %6864 = vmatpush3.bf16.msra.mxu0 %v6863_v37  ;;  %6892 = vmatpush3.bf16.msra.mxu1 %v6889_v27  ;;  %v6919_v27 = vpack.c.bf16 %v2181_v26, %v2180_v13  ;;  %v2213_v37 = vld [vmem:[#allocation12 + $0x5b8] sm:$0xff] }
 0x49f   : > { %6866 = vmatprep.subr.bf16.mxu0 %v6865_v38  ;;  %6894 = vmatprep.subr.bf16.mxu1 %v6893_v41  ;;  %v2182_v38 = vld [vmem:[#allocation12 + $0x4c0] sm:$0xff]  ;;  %v6949_v40 = vpack.c.bf16 %v2213_v37, %v2212_v34 }
 0x4a2   : > { %6868 = vmatpush3.bf16.msra.mxu0 %v6867_v53  ;;  %6896 = vmatpush3.bf16.msra.mxu1 %v6893_v41  ;;  %v6923_v41 = vpack.c.bf16 %v2183_v39, %v2182_v38  ;;  %v2215_v53 = vld [vmem:[#allocation12 + $0x5c8] sm:$0xff] }
 0x4a3   : > { %6870 = vmatprep.subr.bf16.mxu0 %v6869_v54  ;;  %6898 = vmatprep.subr.bf16.mxu1 %v6897_v57  ;;  %v2184_v54 = vld [vmem:[#allocation12 + $0x4d0] sm:$0xff]  ;;  %v6953_v55 = vpack.c.bf16 %v2215_v53, %v2214_v50 }
 0x4a6   : > { %6872 = vmatpush3.bf16.msra.mxu0 %v6871_v48  ;;  %6900 = vmatpush3.bf16.msra.mxu1 %v6897_v57  ;;  %v6927_v57 = vpack.c.bf16 %v2185_v56, %v2184_v54  ;;  %v2216_v48 = vld [vmem:[#allocation12 + $0x5d0] sm:$0xff] }
 0x4a7   : > { %6902 = vmatprep.subr.bf16.mxu1 %v6901_v31  ;;  %6906 = vmatprep.subr.bf16.mxu0 %v6905_v62 }
 0x4a9   : > { %2078 = vmatmul.mubr.f32.vlgmr.msra.gmra.mrb[24].mxu0 %v1950_v33  ;;  %v2217_v33 = vld [vmem:[#allocation12 + $0x5d8] sm:$0xff] }
 0x4aa   : > { %2082 = vmatprep.mubr.f32.mxu0 %v8798_v4  ;;  %6904 = vmatpush3.bf16.msra.mxu1 %v6901_v31  ;;  %v2177_v4 = vld [vmem:[#allocation12 + $0x498] sm:$0xff]  ;;  %v6929_v31 = vpack.c.bf16 %v2203_v44, %v2202_v58  ;;  %v6957_v49 = vpack.c.bf16 %v2217_v33, %v2216_v48 }
 0x4ab   : > { %6908 = vmatpush3.bf16.msra.mxu0 %v6907_v51  ;;  %v6911_v9 = vpack.c.bf16 %v2177_v4, %v2176_v7  ;;  %6938 = vmatprep.subr.bf16.mxu1 %v6937_v8  ;;  %v2218_v51 = vld [vmem:[#allocation12 + $0x5e0] sm:$0xff]  ;;  %v2220_v4 = vld [vmem:[#allocation12 + $0x5f0] sm:$0xff] }
 0x4ac   : > { %6910 = vmatprep.subr.bf16.mxu0 %v6909_v3  ;;  %v2189_v3 = vld [vmem:[#allocation12 + $0x4f8] sm:$0xff]  ;;  %v6961_v6 = vpack.c.bf16 %v2219_v52, %v2218_v51  ;;  %v2430_v51 = vld [vmem:[#allocation9 + $0x608] sm:$0xff]  ;;  %v2448_v52 = vld [vmem:[#allocation9 + $0x698] sm:$0xff] }
 0x4ad   : > { %2083 = vmatmul.mubr.f32.gmra.mrb[26].mxu0 %v8793_v14  ;;  %6051 = vmatmul.mubr.f32.vlgmr.msra.gmra.mrb[12].mxu1 %v1955_v59  ;;  %v2194_v14 = vld [vmem:[#allocation12 + $0x520] sm:$0xff]  ;;  %v6935_v7 = vpack.c.bf16 %v2189_v3, %v2188_v2 }
 0x4ae   : > { %6940 = vmatpush3.bf16.msra.mxu1 %v6937_v8  ;;  %v6913_v12 = vpack.c.bf16 %v2195_v10, %v2194_v14  ;;  %v2186_v59 = vld [vmem:[#allocation12 + $0x4e0] sm:$0xff]  ;;  %v2221_v8 = vld [vmem:[#allocation12 + $0x5f8] sm:$0xff] }
 0x4af   : > { %6912 = vmatpush3.bf16.msra.mxu0 %v6911_v9  ;;  %6942 = vmatprep.subr.bf16.mxu1 %v6941_v17  ;;  %v6931_v62 = vpack.c.bf16 %v2187_v60, %v2186_v59  ;;  %v2445_v9 = vld [vmem:[#allocation9 + $0x680] sm:$0xff]  ;;  %v6965_v14 = vpack.c.bf16 %v2221_v8, %v2220_v4  ;;  %v2446_v10 = vld [vmem:[#allocation9 + $0x688] sm:$0xff]  ;;  %v2432_v8 = vld [vmem:[#allocation9 + $0x618] sm:$0xff] }
 0x4b0   : > { %6914 = vmatprep.subr.bf16.mxu0 %v6913_v12  ;;  %v6969_v11 = vpack.c.bf16 %v2446_v10, %v2445_v9  ;;  %v2461_v12 = vld [vmem:[#allocation9 + $0x700] sm:$0xff] }
 0x4b1   : > { %v8836_v16 = vpack.c.bf16 %v2462_v15, %v2461_v12  ;;  %v2449_v9 = vld [vmem:[#allocation9 + $0x6a0] sm:$0xff]  ;;  %v2463_v15 = vld [vmem:[#allocation9 + $0x710] sm:$0xff] }
 0x4b2   : > { %6944 = vmatpush3.bf16.msra.mxu1 %v6941_v17  ;;  %v8846_v17 = vld [vmem:[%s514_s17 + $0x8] sm:$0xff] }
 0x4b3   : > { %6916 = vmatpush3.bf16.msra.mxu0 %v6915_v18  ;;  %6946 = vmatprep.subr.bf16.mxu1 %v6945_v5  ;;  %2421 = vst [vmem:[#allocation2 + $0xd] sm:$0xff] %v8846_v17 }
 0x4b4   : > { %6918 = vmatprep.subr.bf16.mxu0 %v6917_v23 }
 0x4b6   : > { %6948 = vmatpush3.bf16.msra.mxu1 %v6945_v5 }
 0x4b7   : > { %6920 = vmatpush3.bf16.msra.mxu0 %v6919_v27  ;;  %6950 = vmatprep.subr.bf16.mxu1 %v6949_v40 }
 0x4b8   : > { %6922 = vmatprep.subr.bf16.mxu0 %v6921_v36 }
 0x4ba   : > { %6952 = vmatpush3.bf16.msra.mxu1 %v6949_v40 }
 0x4bb   : > { %6924 = vmatpush3.bf16.msra.mxu0 %v6923_v41  ;;  %6954 = vmatprep.subr.bf16.mxu1 %v6953_v55 }
 0x4bc   : > { %6926 = vmatprep.subr.bf16.mxu0 %v6925_v45  ;;  %v4827_v45 = vld [vmem:[#allocation10 + $0x3] ss:$0 sm:$0xff] }
 0x4be   : > { %6956 = vmatpush3.bf16.msra.mxu1 %v6953_v55 }
 0x4bf   : > { %6928 = vmatpush3.bf16.msra.mxu0 %v6927_v57  ;;  %6958 = vmatprep.subr.bf16.mxu1 %v6957_v49 }
 0x4c0   : > { %6930 = vmatprep.subr.bf16.mxu0 %v6929_v31 }
 0x4c2   : > { %6960 = vmatpush3.bf16.msra.mxu1 %v6957_v49 }
 0x4c3   : > { %6932 = vmatpush3.bf16.msra.mxu0 %v6931_v62  ;;  %6962 = vmatprep.subr.bf16.mxu1 %v6961_v6 }
 0x4c4   : > { %6934 = vmatprep.subr.bf16.mxu0 %v6933_v47  ;;  %v2447_v47 = vld [vmem:[#allocation9 + $0x690] sm:$0xff] }
 0x4c5   : > { %v6973_v4 = vpack.c.bf16 %v2448_v52, %v2447_v47 }
 0x4c6   : > { %6964 = vmatpush3.bf16.msra.mxu1 %v6961_v6  ;;  %v6971_v6 = vpack.c.bf16 %v2430_v51, %v2429_v1  ;;  %v2471_v1 = vld [vmem:[#allocation9 + $0x750] sm:$0xff]  ;;  %v2472_v51 = vld [vmem:[#allocation9 + $0x758] sm:$0xff] }
 0x4c7   : > { %6936 = vmatpush3.bf16.msra.mxu0 %v6935_v7  ;;  %6966 = vmatprep.subr.bf16.mxu1 %v6965_v14  ;;  %v2431_v7 = vld [vmem:[#allocation9 + $0x610] sm:$0xff] }
 0x4c8   : > { %6970 = vmatprep.subr.bf16.mxu0 %v6969_v11 }
 0x4ca   : > { %6968 = vmatpush3.bf16.msra.mxu1 %v6965_v14  ;;  %v2450_v14 = vld [vmem:[#allocation9 + $0x6a8] sm:$0xff] }
 0x4cb   : > { %7002 = vmatprep.subr.bf16.mxu1 %v8836_v16 }
 0x55b   : > { %v5179_v18 = vpop.f32.mrb[20].mxu0 }
 0x55c   : > { %v5180_v19 = vpop.f32.mrb[21].mxu0 }
 0x55d   : > { %v5181_v22 = vadd.f32 %v5180_v19, %v5179_v18  ;;  %v2464_v18 = vld [vmem:[#allocation9 + $0x718] sm:$0xff] }
 0x55f   : > { %v1847_v24 = vadd.f32 %v5181_v22, %v4824_v21  ;;  %v2434_v22 = vld [vmem:[#allocation9 + $0x628] sm:$0xff] }
 0x560   : > { %v5182_v23 = vpop.f32.mrb[22].mxu0  ;;  %v6017_v13 = vpop.f32.mrb[10].mxu1 }
 0x561   : > { %v5183_v26 = vpop.f32.mrb[23].mxu0  ;;  %v1921_v27 = vpop.f32.mrb[11].mxu1 }
 0x562   : > { %v5184_v5 = vadd.f32 %v5183_v26, %v5182_v23  ;;  %v1922_v30 = vadd.f32 %v1921_v27, %v1847_v24  ;;  %v2451_v23 = vld [vmem:[#allocation9 + $0x6b0] sm:$0xff]  ;;  %v7005_v27 = vpack.c.bf16 %v2464_v18, %v2463_v15  ;;  %v2444_v18 = vld [vmem:[#allocation9 + $0x678] sm:$0xff] }
 0x563   : > { %v2443_v15 = vld [vmem:[#allocation9 + $0x670] sm:$0xff] }
 0x564   : > { %v1852_v32 = vadd.f32 %v5184_v5, %v4824_v21  ;;  %v4825_v34 = vmul.f32 -1.442695, %v1922_v30  ;;  %v2433_v21 = vld [vmem:[#allocation9 + $0x620] sm:$0xff]  ;;  %v6977_v5 = vpack.c.bf16 %v2450_v14, %v2449_v9  ;;  %v2452_v30 = vld [vmem:[#allocation9 + $0x6b8] sm:$0xff]  ;;  %v2474_v9 = vld [vmem:[#allocation9 + $0x768] sm:$0xff] }
 0x566   : > { %v1927_v36 = vadd.f32 %v6017_v13, %v1852_v32  ;;  %7751 = vpow2.f32 %v4825_v34  ;;  %v2466_v32 = vld [vmem:[#allocation9 + $0x728] sm:$0xff] }
 0x567   : > { %v2426_v34 = vld [vmem:[#allocation2 + $0x6] sm:$0xff] }
 0x568   : > { %v4826_v37 = vmul.f32 -1.442695, %v1927_v36  ;;  %v6979_v36 = vpack.c.bf16 %v2434_v22, %v2433_v21  ;;  %v6999_v21 = vpack.c.bf16 %v2444_v18, %v2443_v15  ;;  %v2687_v15 = vld [vmem:[#allocation12 + $0x748] sm:$0xff] }
 0x56a   : > { %7753 = vpow2.f32 %v4826_v37 }
 0x570   : > { %v7752_v38 = vpop.eup %7751 }
 0x571   : > { %v1936_v39 = vadd.f32 1.0, %v7752_v38  ;;  %v2435_v38 = vld [vmem:[#allocation9 + $0x630] sm:$0xff] }
 0x573   : > { %7755 = vrcp.f32 %v1936_v39  ;;  %v2436_v39 = vld [vmem:[#allocation9 + $0x638] sm:$0xff] }
 0x574   : > { %v7754_v40 = vpop.eup %7753 }
 0x575   : > { %v1937_v41 = vadd.f32 1.0, %v7754_v40  ;;  %v2453_v40 = vld [vmem:[#allocation9 + $0x6c0] sm:$0xff] }
 0x577   : > { %7757 = vrcp.f32 %v1937_v41  ;;  %v2454_v41 = vld [vmem:[#allocation9 + $0x6c8] sm:$0xff] }
 0x57c   : > { %v5235_v42 = vpop.f32.mrb[24].mxu0 }
 0x57d   : > { %v5236_v43 = vpop.f32.mrb[25].mxu0  ;;  %v7756_v50 = vpop.eup %7755 }
 0x57e   : > { %v5237_v53 = vadd.f32 %v5236_v43, %v5235_v42  ;;  %v1942_v54 = vadd.f32 1e-05, %v7756_v50  ;;  %v2467_v42 = vld [vmem:[#allocation9 + $0x730] sm:$0xff]  ;;  %v2468_v43 = vld [vmem:[#allocation9 + $0x738] sm:$0xff] }
 0x57f   : > { %v7013_v50 = vpack.c.bf16 %v2468_v43, %v2467_v42  ;;  %v2666_v43 = vld [vmem:[#allocation12 + $0x6a0] sm:$0xff] }
 0x580   : > { %v5238_v55 = vpop.f32.mrb[26].mxu0  ;;  %v2080_v56 = vadd.f32 %v5237_v53, %v4827_v45  ;;  %7759 = vrcp.f32 %v1942_v54  ;;  %v6052_v58 = vpop.f32.mrb[12].mxu1  ;;  %v2437_v53 = vld [vmem:[#allocation9 + $0x640] sm:$0xff]  ;;  %v2438_v54 = vld [vmem:[#allocation9 + $0x648] sm:$0xff] }
 0x581   : > { %v7758_v57 = vpop.eup %7757  ;;  %v5239_v44 = vpop.f32.mrb[27].mxu0 }
 0x582   : > { %v1943_v48 = vadd.f32 1e-05, %v7758_v57  ;;  %v5240_v31 = vadd.f32 %v5239_v44, %v5238_v55  ;;  %v2154_v33 = vpop.f32.mrb[13].mxu1  ;;  %v2455_v55 = vld [vmem:[#allocation9 + $0x6d0] sm:$0xff]  ;;  %v2469_v57 = vld [vmem:[#allocation9 + $0x740] sm:$0xff]  ;;  %v6987_v44 = vpack.c.bf16 %v2438_v54, %v2437_v53  ;;  %v2650_v54 = vld [vmem:[#allocation12 + $0x620] sm:$0xff] }
 0x583   : > { %v2155_v59 = vadd.f32 %v2154_v33, %v2080_v56  ;;  %v2456_v56 = vld [vmem:[#allocation9 + $0x6d8] sm:$0xff]  ;;  %v2439_v33 = vld [vmem:[#allocation9 + $0x650] sm:$0xff]  ;;  %v2681_v53 = vld [vmem:[#allocation12 + $0x718] sm:$0xff] }
 0x584   : > { %7761 = vrcp.f32 %v1943_v48  ;;  %v2085_v60 = vadd.f32 %v5240_v31, %v4827_v45  ;;  %v6983_v45 = vpack.c.bf16 %v2436_v39, %v2435_v38  ;;  %v6989_v48 = vpack.c.bf16 %v2456_v56, %v2455_v55  ;;  %v2679_v38 = vld [vmem:[#allocation12 + $0x708] sm:$0xff]  ;;  %v2648_v39 = vld [vmem:[#allocation12 + $0x610] sm:$0xff] }
 0x585   : > { %v8850_v49 = vsub.f32 %v8809_v25, %v2155_v59  ;;  %v2440_v59 = vld [vmem:[#allocation9 + $0x658] sm:$0xff]  ;;  %v2651_v56 = vld [vmem:[#allocation12 + $0x628] sm:$0xff] }
 0x586   : > { %v2160_v62 = vadd.f32 %v6052_v58, %v2085_v60  ;;  %v2470_v58 = vld [vmem:[#allocation9 + $0x748] sm:$0xff]  ;;  %v2457_v60 = vld [vmem:[#allocation9 + $0x6e0] sm:$0xff]  ;;  %v6991_v47 = vpack.c.bf16 %v2440_v59, %v2439_v33  ;;  %v2683_v33 = vld [vmem:[#allocation12 + $0x728] sm:$0xff] }
 0x587   : > { %2165 = vst [vmem:[#allocation3 + $0x5] sm:$0xff] %v8850_v49  ;;  %2294 = vmatprep.mubr.f32.mxu0 %v8850_v49  ;;  %v7017_v31 = vpack.c.bf16 %v2470_v58, %v2469_v57  ;;  %v7043_v57 = vpack.c.bf16 %v2651_v56, %v2650_v54  ;;  %v2668_v58 = vld [vmem:[#allocation12 + $0x6b0] sm:$0xff]  ;;  %v2911_v54 = vld [vmem:[#allocation9 + $0x880] sm:$0xff] }
 0x588   : > { %v8855_v63 = vsub.f32 %v8816_v28, %v2160_v62  ;;  %v2458_v62 = vld [vmem:[#allocation9 + $0x6e8] sm:$0xff]  ;;  %v2652_v59 = vld [vmem:[#allocation12 + $0x630] sm:$0xff] }
 0x589   : > { %v6993_v52 = vpack.c.bf16 %v2458_v62, %v2457_v60  ;;  %v2653_v62 = vld [vmem:[#allocation12 + $0x638] sm:$0xff] }
 0x58a   : > { %2166 = vst [vmem:[#allocation3 + $0xd] sm:$0xff] %v8855_v63  ;;  %v7760_v2 = vpop.eup %7759 }
 0x58b   : > { %v1945_v3 = vmul.f32 %v7760_v2, %v8812_v20  ;;  %v6975_v20 = vpack.c.bf16 %v2432_v8, %v2431_v7  ;;  %v7021_v2 = vpack.c.bf16 %v2472_v51, %v2471_v1  ;;  %v2459_v7 = vld [vmem:[#allocation9 + $0x6f0] sm:$0xff]  ;;  %v2473_v8 = vld [vmem:[#allocation9 + $0x760] sm:$0xff]  ;;  %v7047_v1 = vpack.c.bf16 %v2653_v62, %v2652_v59  ;;  %v2670_v51 = vld [vmem:[#allocation12 + $0x6c0] sm:$0xff] }
 0x58d   : > { %v8860_v11 = vadd.f32 %v1945_v3, %v8824_v46  ;;  %v2441_v3 = vld [vmem:[#allocation9 + $0x660] sm:$0xff] }
 0x58e   : > { %v7762_v10 = vpop.eup %7761  ;;  %v2167_v12 = vld [vmem:[#allocation3] sm:$0xff] }
 0x58f   : > { %v1947_v19 = vmul.f32 %v7762_v10, %v8819_v29  ;;  %2295 = vmatmul.mubr.f32.vlgmr.msra.gmra.mrb[28].mxu0 %v2167_v12  ;;  %v2465_v29 = vld [vmem:[#allocation9 + $0x720] sm:$0xff]  ;;  %v7025_v12 = vpack.c.bf16 %v2474_v9, %v2473_v8  ;;  %v2672_v9 = vld [vmem:[#allocation12 + $0x6d0] sm:$0xff] }
 0x590   : > { %6972 = vmatpush3.bf16.msra.mxu0 %v6971_v6  ;;  %2299 = vmatprep.mubr.f32.mxu0 %v8855_v63  ;;  %v7009_v37 = vpack.c.bf16 %v2466_v32, %v2465_v29  ;;  %v2442_v6 = vld [vmem:[#allocation9 + $0x668] sm:$0xff]  ;;  %v2647_v29 = vld [vmem:[#allocation12 + $0x608] sm:$0xff] }
 0x591   : > { %v8865_v24 = vadd.f32 %v1947_v19, %v8829_v61  ;;  %v2171_v13 = vld [vmem:[#allocation3 + $0xa] sm:$0xff]  ;;  %6974 = vmatprep.subr.bf16.mxu0 %v6973_v4  ;;  %v2172_v26 = vld [vmem:[#allocation3 + $0x12] sm:$0xff]  ;;  %v6981_v61 = vpack.c.bf16 %v2452_v30, %v2451_v23  ;;  %v6995_v14 = vpack.c.bf16 %v2442_v6, %v2441_v3  ;;  %v2685_v3 = vld [vmem:[#allocation12 + $0x738] sm:$0xff] }
 0x592   : > { %v2168_v46 = vld [vmem:[#allocation3 + $0x8] sm:$0xff]  ;;  %6085 = vmatprep.mubr.f32.mxu1 %v2171_v13  ;;  %v2460_v4 = vld [vmem:[#allocation9 + $0x6f8] sm:$0xff]  ;;  %v2475_v19 = vld [vmem:[#allocation9 + $0x770] sm:$0xff] }
 0x593   : > { %2300 = vmatmul.mubr.f32.gmra.mrb[30].mxu0 %v2168_v46  ;;  %6086 = vmatmul.mubr.f32.vlgmr.msra.gmra.mrb[14].mxu1 %v2172_v26  ;;  %v6997_v10 = vpack.c.bf16 %v2460_v4, %v2459_v7  ;;  %v2422_v23 = vld [vmem:[#allocation2 + $0x4] sm:$0xff]  ;;  %v2423_v13 = vld [vmem:[#allocation2 + $0xc] sm:$0xff] }
 0x594   : > { %6976 = vmatpush3.bf16.msra.mxu0 %v6975_v20  ;;  %7004 = vmatpush3.bf16.msra.mxu1 %v8836_v16  ;;  %v6985_v16 = vpack.c.bf16 %v2454_v41, %v2453_v40  ;;  %v2476_v20 = vld [vmem:[#allocation9 + $0x778] sm:$0xff]  ;;  %v2427_v46 = vld [vmem:[#allocation2 + $0xe] sm:$0xff]  ;;  %v2649_v41 = vld [vmem:[#allocation12 + $0x618] sm:$0xff] }
 0x595   : > { %6978 = vmatprep.subr.bf16.mxu0 %v6977_v5  ;;  %7006 = vmatprep.subr.bf16.mxu1 %v7005_v27  ;;  %v7029_v22 = vpack.c.bf16 %v2476_v20, %v2475_v19  ;;  %v2662_v26 = vld [vmem:[#allocation12 + $0x680] sm:$0xff]  ;;  %v2663_v5 = vld [vmem:[#allocation12 + $0x688] sm:$0xff]  ;;  %v7039_v42 = vpack.c.bf16 %v2649_v41, %v2648_v39  ;;  %v2656_v19 = vld [vmem:[#allocation12 + $0x650] sm:$0xff] }
 0x596   : > { %2549 = vmatprep.mubr.f32.mxu0 %v8841_v35  ;;  %6120 = vmatprep.mubr.f32.mxu1 %v2426_v34  ;;  %v2646_v30 = vld [vmem:[#allocation12 + $0x600] sm:$0xff]  ;;  %v2664_v34 = vld [vmem:[#allocation12 + $0x690] sm:$0xff]  ;;  %v2655_v4 = vld [vmem:[#allocation12 + $0x648] sm:$0xff] }
 0x597   : > { %v7035_v32 = vpack.c.bf16 %v2647_v29, %v2646_v30  ;;  %v2654_v6 = vld [vmem:[#allocation12 + $0x640] sm:$0xff]  ;;  %v2657_v20 = vld [vmem:[#allocation12 + $0x658] sm:$0xff]  ;;  %v2659_v30 = vld [vmem:[#allocation12 + $0x668] sm:$0xff] }
 0x598   : > { %6980 = vmatpush3.bf16.msra.mxu0 %v6979_v36  ;;  %7008 = vmatpush3.bf16.msra.mxu1 %v7005_v27  ;;  %v7033_v27 = vpack.c.bf16 %v2663_v5, %v2662_v26  ;;  %v2665_v36 = vld [vmem:[#allocation12 + $0x698] sm:$0xff]  ;;  %v7051_v8 = vpack.c.bf16 %v2655_v4, %v2654_v6  ;;  %v2658_v5 = vld [vmem:[#allocation12 + $0x660] sm:$0xff] }
 0x599   : > { %6982 = vmatprep.subr.bf16.mxu0 %v6981_v61  ;;  %7010 = vmatprep.subr.bf16.mxu1 %v7009_v37  ;;  %v7037_v61 = vpack.c.bf16 %v2665_v36, %v2664_v34  ;;  %v2689_v26 = vld [vmem:[#allocation12 + $0x758] sm:$0xff]  ;;  %v7059_v29 = vpack.c.bf16 %v2659_v30, %v2658_v5 }
 0x59a   : > { %v2677_v34 = vld [vmem:[#allocation12 + $0x6f8] sm:$0xff] }
 0x59c   : > { %6984 = vmatpush3.bf16.msra.mxu0 %v6983_v45  ;;  %7012 = vmatpush3.bf16.msra.mxu1 %v7009_v37  ;;  %v2678_v37 = vld [vmem:[#allocation12 + $0x700] sm:$0xff]  ;;  %v2667_v45 = vld [vmem:[#allocation12 + $0x6a8] sm:$0xff] }
 0x59d   : > { %6986 = vmatprep.subr.bf16.mxu0 %v6985_v16  ;;  %7014 = vmatprep.subr.bf16.mxu1 %v7013_v50  ;;  %v7065_v40 = vpack.c.bf16 %v2679_v38, %v2678_v37  ;;  %v7041_v16 = vpack.c.bf16 %v2667_v45, %v2666_v43  ;;  %v2691_v37 = vld [vmem:[#allocation12 + $0x768] sm:$0xff]  ;;  %v2660_v38 = vld [vmem:[#allocation12 + $0x670] sm:$0xff]  ;;  %v2896_v43 = vld [vmem:[#allocation9 + $0x808] sm:$0xff] }
 0x59e   : > { %v2692_v45 = vld [vmem:[#allocation12 + $0x770] sm:$0xff] }
 0x5a0   : > { %6988 = vmatpush3.bf16.msra.mxu0 %v6987_v44  ;;  %7016 = vmatpush3.bf16.msra.mxu1 %v7013_v50  ;;  %v2680_v50 = vld [vmem:[#allocation12 + $0x710] sm:$0xff]  ;;  %v2669_v44 = vld [vmem:[#allocation12 + $0x6b8] sm:$0xff] }
 0x5a1   : > { %6990 = vmatprep.subr.bf16.mxu0 %v6989_v48  ;;  %7018 = vmatprep.subr.bf16.mxu1 %v7017_v31  ;;  %v7069_v55 = vpack.c.bf16 %v2681_v53, %v2680_v50  ;;  %v7045_v48 = vpack.c.bf16 %v2669_v44, %v2668_v58  ;;  %v4828_v44 = vld [vmem:[#allocation13 + $0x3] ss:$0 sm:$0xff] }
 0x5a4   : > { %6992 = vmatpush3.bf16.msra.mxu0 %v6991_v47  ;;  %7020 = vmatpush3.bf16.msra.mxu1 %v7017_v31  ;;  %v2682_v31 = vld [vmem:[#allocation12 + $0x720] sm:$0xff]  ;;  %v2671_v47 = vld [vmem:[#allocation12 + $0x6c8] sm:$0xff] }
 0x5a5   : > { %6994 = vmatprep.subr.bf16.mxu0 %v6993_v52  ;;  %7022 = vmatprep.subr.bf16.mxu1 %v7021_v2  ;;  %v7073_v60 = vpack.c.bf16 %v2683_v33, %v2682_v31  ;;  %v7049_v52 = vpack.c.bf16 %v2671_v47, %v2670_v51 }
 0x5a8   : > { %6996 = vmatpush3.bf16.msra.mxu0 %v6995_v14  ;;  %7024 = vmatpush3.bf16.msra.mxu1 %v7021_v2  ;;  %v2684_v2 = vld [vmem:[#allocation12 + $0x730] sm:$0xff]  ;;  %v2673_v14 = vld [vmem:[#allocation12 + $0x6d8] sm:$0xff] }
 0x5a9   : > { %6998 = vmatprep.subr.bf16.mxu0 %v6997_v10  ;;  %7026 = vmatprep.subr.bf16.mxu1 %v7025_v12  ;;  %v7077_v7 = vpack.c.bf16 %v2685_v3, %v2684_v2  ;;  %v7053_v10 = vpack.c.bf16 %v2673_v14, %v2672_v9 }
 0x5ac   : > { %7000 = vmatpush3.bf16.msra.mxu0 %v6999_v21  ;;  %7028 = vmatpush3.bf16.msra.mxu1 %v7025_v12  ;;  %v2686_v12 = vld [vmem:[#allocation12 + $0x740] sm:$0xff]  ;;  %v7055_v21 = vpack.c.bf16 %v2657_v20, %v2656_v19 }
 0x5ad   : > { %7030 = vmatprep.subr.bf16.mxu1 %v7029_v22  ;;  %7034 = vmatprep.subr.bf16.mxu0 %v7033_v27  ;;  %v7081_v18 = vpack.c.bf16 %v2687_v15, %v2686_v12  ;;  %v4833_v12 = vld [vmem:[#allocation10 + $0x4] ss:$0 sm:$0xff] }
 0x5af   : > { %2550 = vmatmul.mubr.f32.vlgmr.msra.gmra.mrb[32].mxu0 %v2422_v23  ;;  %v2675_v23 = vld [vmem:[#allocation12 + $0x6e8] sm:$0xff] }
 0x5b0   : > { %7032 = vmatpush3.bf16.msra.mxu1 %v7029_v22  ;;  %2554 = vmatprep.mubr.f32.mxu0 %v8846_v17  ;;  %v2674_v22 = vld [vmem:[#allocation12 + $0x6e0] sm:$0xff] }
 0x5b1   : > { %7036 = vmatpush3.bf16.msra.mxu0 %v7035_v32  ;;  %7066 = vmatprep.subr.bf16.mxu1 %v7065_v40  ;;  %v2676_v32 = vld [vmem:[#allocation12 + $0x6f0] sm:$0xff] }
 0x5b2   : > { %7038 = vmatprep.subr.bf16.mxu0 %v7037_v61  ;;  %v7061_v36 = vpack.c.bf16 %v2677_v34, %v2676_v32  ;;  %v2690_v61 = vld [vmem:[#allocation12 + $0x760] sm:$0xff]  ;;  %v2879_v34 = vld [vmem:[#allocation9 + $0x780] sm:$0xff] }
 0x5b3   : > { %2555 = vmatmul.mubr.f32.gmra.mrb[34].mxu0 %v2423_v13  ;;  %6121 = vmatmul.mubr.f32.vlgmr.msra.gmra.mrb[16].mxu1 %v2427_v46  ;;  %v7057_v13 = vpack.c.bf16 %v2675_v23, %v2674_v22  ;;  %v2688_v46 = vld [vmem:[#allocation12 + $0x750] sm:$0xff]  ;;  %v7089_v39 = vpack.c.bf16 %v2691_v37, %v2690_v61  ;;  %v2897_v61 = vld [vmem:[#allocation9 + $0x810] sm:$0xff] }
 0x5b4   : > { %7068 = vmatpush3.bf16.msra.mxu1 %v7065_v40  ;;  %v7085_v27 = vpack.c.bf16 %v2689_v26, %v2688_v46  ;;  %v2661_v40 = vld [vmem:[#allocation12 + $0x678] sm:$0xff]  ;;  %v2898_v37 = vld [vmem:[#allocation9 + $0x818] sm:$0xff] }
 0x5b5   : > { %7040 = vmatpush3.bf16.msra.mxu0 %v7039_v42  ;;  %7070 = vmatprep.subr.bf16.mxu1 %v7069_v55  ;;  %v7063_v41 = vpack.c.bf16 %v2661_v40, %v2660_v38  ;;  %v2895_v42 = vld [vmem:[#allocation9 + $0x800] sm:$0xff] }
 0x5b6   : > { %7042 = vmatprep.subr.bf16.mxu0 %v7041_v16  ;;  %v2693_v16 = vld [vmem:[#allocation12 + $0x778] sm:$0xff]  ;;  %v7097_v50 = vpack.c.bf16 %v2896_v43, %v2895_v42  ;;  %v2881_v42 = vld [vmem:[#allocation9 + $0x790] sm:$0xff]  ;;  %v2882_v43 = vld [vmem:[#allocation9 + $0x798] sm:$0xff] }
 0x5b7   : > { %v7093_v53 = vpack.c.bf16 %v2693_v16, %v2692_v45 }
 0x5b8   : > { %7072 = vmatpush3.bf16.msra.mxu1 %v7069_v55  ;;  %v2912_v55 = vld [vmem:[#allocation9 + $0x888] sm:$0xff] }
 0x5b9   : > { %7044 = vmatpush3.bf16.msra.mxu0 %v7043_v57  ;;  %7074 = vmatprep.subr.bf16.mxu1 %v7073_v60  ;;  %v8870_v56 = vpack.c.bf16 %v2912_v55, %v2911_v54  ;;  %v2913_v55 = vld [vmem:[#allocation9 + $0x890] sm:$0xff] }
 0x5ba   : > { %7046 = vmatprep.subr.bf16.mxu0 %v7045_v48 }
 0x5bc   : > { %7076 = vmatpush3.bf16.msra.mxu1 %v7073_v60 }
 0x5bd   : > { %7048 = vmatpush3.bf16.msra.mxu0 %v7047_v1  ;;  %7078 = vmatprep.subr.bf16.mxu1 %v7077_v7 }
 0x5be   : > { %7050 = vmatprep.subr.bf16.mxu0 %v7049_v52 }
 0x5c0   : > { %7080 = vmatpush3.bf16.msra.mxu1 %v7077_v7 }
 0x5c1   : > { %7052 = vmatpush3.bf16.msra.mxu0 %v7051_v8  ;;  %7082 = vmatprep.subr.bf16.mxu1 %v7081_v18 }
 0x5c2   : > { %7054 = vmatprep.subr.bf16.mxu0 %v7053_v10 }
 0x5c4   : > { %7084 = vmatpush3.bf16.msra.mxu1 %v7081_v18 }
 0x5c5   : > { %7056 = vmatpush3.bf16.msra.mxu0 %v7055_v21  ;;  %7086 = vmatprep.subr.bf16.mxu1 %v7085_v27 }
 0x5c6   : > { %7058 = vmatprep.subr.bf16.mxu0 %v7057_v13 }
 0x5c8   : > { %7088 = vmatpush3.bf16.msra.mxu1 %v7085_v27 }
 0x5c9   : > { %7060 = vmatpush3.bf16.msra.mxu0 %v7059_v29  ;;  %7090 = vmatprep.subr.bf16.mxu1 %v7089_v39 }
 0x5ca   : > { %7062 = vmatprep.subr.bf16.mxu0 %v7061_v36  ;;  %v2880_v36 = vld [vmem:[#allocation9 + $0x788] sm:$0xff] }
 0x5cb   : > { %v7099_v40 = vpack.c.bf16 %v2880_v36, %v2879_v34  ;;  %v2922_v34 = vld [vmem:[#allocation9 + $0x8d8] sm:$0xff] }
 0x5cc   : > { %7092 = vmatpush3.bf16.msra.mxu1 %v7089_v39 }
 0x5cd   : > { %7064 = vmatpush3.bf16.msra.mxu0 %v7063_v41  ;;  %7094 = vmatprep.subr.bf16.mxu1 %v7093_v53  ;;  %v7101_v41 = vpack.c.bf16 %v2898_v37, %v2897_v61  ;;  %v2891_v37 = vld [vmem:[#allocation9 + $0x7e0] sm:$0xff] }
 0x5ce   : > { %7098 = vmatprep.subr.bf16.mxu0 %v7097_v50  ;;  %v2899_v50 = vld [vmem:[#allocation9 + $0x820] sm:$0xff] }
 0x5d0   : > { %7096 = vmatpush3.bf16.msra.mxu1 %v7093_v53  ;;  %v2900_v53 = vld [vmem:[#allocation9 + $0x828] sm:$0xff] }
 0x5d1   : > { %7130 = vmatprep.subr.bf16.mxu1 %v8870_v56 }
 0x662   : > { %v5291_v57 = vpop.f32.mrb[28].mxu0 }
 0x663   : > { %v5292_v58 = vpop.f32.mrb[29].mxu0 }
 0x664   : > { %v5293_v48 = vadd.f32 %v5292_v58, %v5291_v57  ;;  %v2914_v57 = vld [vmem:[#allocation9 + $0x898] sm:$0xff] }
 0x666   : > { %v5294_v31 = vpop.f32.mrb[30].mxu0  ;;  %v6087_v33 = vpop.f32.mrb[14].mxu1  ;;  %v2297_v59 = vadd.f32 %v5293_v48, %v4828_v44  ;;  %v7105_v48 = vpack.c.bf16 %v2900_v53, %v2899_v50  ;;  %v2893_v53 = vld [vmem:[#allocation9 + $0x7f0] sm:$0xff] }
 0x667   : > { %v5295_v60 = vpop.f32.mrb[31].mxu0  ;;  %v2371_v62 = vpop.f32.mrb[15].mxu1 }
 0x668   : > { %v5296_v1 = vadd.f32 %v5295_v60, %v5294_v31  ;;  %v2372_v51 = vadd.f32 %v2371_v62, %v2297_v59  ;;  %v2884_v31 = vld [vmem:[#allocation9 + $0x7a8] sm:$0xff] }
 0x66a   : > { %v2302_v47 = vadd.f32 %v5296_v1, %v4828_v44  ;;  %v4829_v52 = vmul.f32 -1.442695, %v2372_v51  ;;  %v2883_v44 = vld [vmem:[#allocation9 + $0x7a0] sm:$0xff]  ;;  %v7133_v51 = vpack.c.bf16 %v2914_v57, %v2913_v55  ;;  %v2925_v57 = vld [vmem:[#allocation9 + $0x8f0] sm:$0xff] }
 0x66c   : > { %v2377_v2 = vadd.f32 %v6087_v33, %v2302_v47  ;;  %7763 = vpow2.f32 %v4829_v52  ;;  %v2901_v33 = vld [vmem:[#allocation9 + $0x830] sm:$0xff]  ;;  %v2916_v47 = vld [vmem:[#allocation9 + $0x8a8] sm:$0xff]  ;;  %v7107_v52 = vpack.c.bf16 %v2884_v31, %v2883_v44 }
 0x66d   : > { %v2873_v31 = vld [vmem:[#allocation2 + $0xb] sm:$0xff] }
 0x66e   : > { %v4830_v3 = vmul.f32 -1.442695, %v2377_v2  ;;  %v2876_v2 = vld [vmem:[#allocation2 + $0x7] sm:$0xff] }
 0x670   : > { %7765 = vpow2.f32 %v4830_v3 }
 0x676   : > { %v7764_v6 = vpop.eup %7763 }
 0x677   : > { %v2386_v7 = vadd.f32 1.0, %v7764_v6  ;;  %v2885_v6 = vld [vmem:[#allocation9 + $0x7b0] sm:$0xff] }
 0x679   : > { %7767 = vrcp.f32 %v2386_v7  ;;  %v2886_v7 = vld [vmem:[#allocation9 + $0x7b8] sm:$0xff] }
 0x67a   : > { %v7766_v4 = vpop.eup %7765 }
 0x67b   : > { %v2387_v8 = vadd.f32 1.0, %v7766_v4  ;;  %v2903_v4 = vld [vmem:[#allocation9 + $0x840] sm:$0xff] }
 0x67d   : > { %7769 = vrcp.f32 %v2387_v8  ;;  %v2904_v8 = vld [vmem:[#allocation9 + $0x848] sm:$0xff] }
 0x682   : > { %v5347_v9 = vpop.f32.mrb[32].mxu0 }
 0x683   : > { %v7768_v14 = vpop.eup %7767  ;;  %v5348_v10 = vpop.f32.mrb[33].mxu0 }
 0x684   : > { %v2392_v15 = vadd.f32 1e-05, %v7768_v14  ;;  %v5349_v18 = vadd.f32 %v5348_v10, %v5347_v9  ;;  %v2917_v9 = vld [vmem:[#allocation9 + $0x8b0] sm:$0xff]  ;;  %v2918_v14 = vld [vmem:[#allocation9 + $0x8b8] sm:$0xff]  ;;  %v7111_v10 = vpack.c.bf16 %v2886_v7, %v2885_v6 }
 0x685   : > { %v3129_v6 = vld [vmem:[#allocation12 + $0x888] sm:$0xff]  ;;  %v3098_v7 = vld [vmem:[#allocation12 + $0x790] sm:$0xff] }
 0x686   : > { %7771 = vrcp.f32 %v2392_v15  ;;  %v5350_v19 = vpop.f32.mrb[34].mxu0  ;;  %v6122_v20 = vpop.f32.mrb[16].mxu1  ;;  %v2552_v21 = vadd.f32 %v5349_v18, %v4833_v12  ;;  %v2887_v15 = vld [vmem:[#allocation9 + $0x7c0] sm:$0xff]  ;;  %v7141_v18 = vpack.c.bf16 %v2918_v14, %v2917_v9  ;;  %v3117_v9 = vld [vmem:[#allocation12 + $0x828] sm:$0xff]  ;;  %v3130_v14 = vld [vmem:[#allocation12 + $0x890] sm:$0xff] }
 0x687   : > { %v7770_v22 = vpop.eup %7769  ;;  %v5351_v23 = vpop.f32.mrb[35].mxu0 }
 0x688   : > { %v2626_v13 = vpop.f32.mrb[17].mxu1  ;;  %v2393_v46 = vadd.f32 1e-05, %v7770_v22  ;;  %v5352_v26 = vadd.f32 %v5351_v23, %v5350_v19  ;;  %v2905_v19 = vld [vmem:[#allocation9 + $0x850] sm:$0xff]  ;;  %v2920_v22 = vld [vmem:[#allocation9 + $0x8c8] sm:$0xff] }
 0x689   : > { %v2627_v5 = vadd.f32 %v2626_v13, %v2552_v21  ;;  %v2919_v21 = vld [vmem:[#allocation9 + $0x8c0] sm:$0xff]  ;;  %v2889_v13 = vld [vmem:[#allocation9 + $0x7d0] sm:$0xff] }
 0x68a   : > { %7773 = vrcp.f32 %v2393_v46  ;;  %v2557_v27 = vadd.f32 %v5352_v26, %v4833_v12  ;;  %v7113_v12 = vpack.c.bf16 %v2904_v8, %v2903_v4  ;;  %v2890_v46 = vld [vmem:[#allocation9 + $0x7d8] sm:$0xff]  ;;  %v7145_v26 = vpack.c.bf16 %v2920_v22, %v2919_v21  ;;  %v3116_v8 = vld [vmem:[#allocation12 + $0x820] sm:$0xff]  ;;  %v3119_v21 = vld [vmem:[#allocation12 + $0x838] sm:$0xff] }
 0x68b   : > { %v8874_v30 = vsub.f32 %v8841_v35, %v2627_v5  ;;  %v2907_v5 = vld [vmem:[#allocation9 + $0x860] sm:$0xff]  ;;  %v7119_v36 = vpack.c.bf16 %v2890_v46, %v2889_v13  ;;  %v3132_v22 = vld [vmem:[#allocation12 + $0x8a0] sm:$0xff]  ;;  %v3102_v13 = vld [vmem:[#allocation12 + $0x7b0] sm:$0xff] }
 0x68c   : > { %v2632_v29 = vadd.f32 %v6122_v20, %v2557_v27  ;;  %v2906_v20 = vld [vmem:[#allocation9 + $0x858] sm:$0xff]  ;;  %v2908_v27 = vld [vmem:[#allocation9 + $0x868] sm:$0xff]  ;;  %v3103_v46 = vld [vmem:[#allocation12 + $0x7b8] sm:$0xff] }
 0x68d   : > { %2637 = vst [vmem:[#allocation3 + $0x5] sm:$0xff] %v8874_v30  ;;  %2766 = vmatprep.mubr.f32.mxu0 %v8874_v30  ;;  %v7121_v61 = vpack.c.bf16 %v2908_v27, %v2907_v5  ;;  %v7175_v5 = vpack.c.bf16 %v3103_v46, %v3102_v13  ;;  %v3120_v27 = vld [vmem:[#allocation12 + $0x840] sm:$0xff] }
 0x68e   : > { %v8879_v32 = vsub.f32 %v8846_v17, %v2632_v29  ;;  %v2921_v29 = vld [vmem:[#allocation9 + $0x8d0] sm:$0xff] }
 0x690   : > { %v7772_v38 = vpop.eup %7771  ;;  %2638 = vst [vmem:[#allocation3 + $0xd] sm:$0xff] %v8879_v32 }
 0x691   : > { %v2395_v39 = vmul.f32 %v7772_v38, %v8850_v49  ;;  %v7103_v49 = vpack.c.bf16 %v2882_v43, %v2881_v42  ;;  %v2892_v38 = vld [vmem:[#allocation9 + $0x7e8] sm:$0xff]  ;;  %v2923_v42 = vld [vmem:[#allocation9 + $0x8e0] sm:$0xff] }
 0x692   : > { %v2924_v43 = vld [vmem:[#allocation9 + $0x8e8] sm:$0xff] }
 0x693   : > { %v8884_v45 = vadd.f32 %v2395_v39, %v8860_v11  ;;  %v2902_v11 = vld [vmem:[#allocation9 + $0x838] sm:$0xff]  ;;  %v7149_v39 = vpack.c.bf16 %v2922_v34, %v2921_v29  ;;  %v7153_v55 = vpack.c.bf16 %v2924_v43, %v2923_v42  ;;  %v3121_v29 = vld [vmem:[#allocation12 + $0x848] sm:$0xff]  ;;  %v3123_v42 = vld [vmem:[#allocation12 + $0x858] sm:$0xff] }
 0x694   : > { %v2639_v16 = vld [vmem:[#allocation3 + $0x4] sm:$0xff]  ;;  %v7774_v54 = vpop.eup %7773  ;;  %v7109_v3 = vpack.c.bf16 %v2902_v11, %v2901_v33  ;;  %v2877_v33 = vld [vmem:[#allocation2 + $0xf] sm:$0xff]  ;;  %v3134_v34 = vld [vmem:[#allocation12 + $0x8b0] sm:$0xff] }
 0x695   : > { %2767 = vmatmul.mubr.f32.vlgmr.msra.gmra.mrb[36].mxu0 %v2639_v16  ;;  %v2397_v58 = vmul.f32 %v7774_v54, %v8855_v63  ;;  %v2915_v63 = vld [vmem:[#allocation9 + $0x8a0] sm:$0xff]  ;;  %v7123_v16 = vpack.c.bf16 %v2892_v38, %v2891_v37  ;;  %v2894_v54 = vld [vmem:[#allocation9 + $0x7f8] sm:$0xff]  ;;  %v3112_v11 = vld [vmem:[#allocation12 + $0x800] sm:$0xff] }
 0x696   : > { %7100 = vmatpush3.bf16.msra.mxu0 %v7099_v40  ;;  %2771 = vmatprep.mubr.f32.mxu0 %v8879_v32  ;;  %v2909_v40 = vld [vmem:[#allocation9 + $0x870] sm:$0xff]  ;;  %v3104_v37 = vld [vmem:[#allocation12 + $0x7c0] sm:$0xff] }
 0x697   : > { %7102 = vmatprep.subr.bf16.mxu0 %v7101_v41  ;;  %v8889_v59 = vadd.f32 %v2397_v58, %v8865_v24  ;;  %v2643_v60 = vld [vmem:[#allocation3 + $0x6] sm:$0xff]  ;;  %v2644_v1 = vld [vmem:[#allocation3 + $0xe] sm:$0xff]  ;;  %v7137_v24 = vpack.c.bf16 %v2916_v47, %v2915_v63  ;;  %v2910_v41 = vld [vmem:[#allocation9 + $0x878] sm:$0xff] }
 0x698   : > { %v2640_v62 = vld [vmem:[#allocation3 + $0xc] sm:$0xff]  ;;  %6155 = vmatprep.mubr.f32.mxu1 %v2643_v60  ;;  %v7125_v50 = vpack.c.bf16 %v2910_v41, %v2909_v40  ;;  %v2926_v58 = vld [vmem:[#allocation9 + $0x8f8] sm:$0xff] }
 0x699   : > { %2772 = vmatmul.mubr.f32.gmra.mrb[38].mxu0 %v2640_v62  ;;  %6156 = vmatmul.mubr.f32.vlgmr.msra.gmra.mrb[18].mxu1 %v2644_v1  ;;  %v7157_v44 = vpack.c.bf16 %v2926_v58, %v2925_v57  ;;  %v3113_v60 = vld [vmem:[#allocation12 + $0x808] sm:$0xff]  ;;  %v3096_v1 = vld [vmem:[#allocation12 + $0x780] sm:$0xff]  ;;  %v3114_v47 = vld [vmem:[#allocation12 + $0x810] sm:$0xff] }
 0x69a   : > { %7104 = vmatpush3.bf16.msra.mxu0 %v7103_v49  ;;  %7132 = vmatpush3.bf16.msra.mxu1 %v8870_v56  ;;  %v2888_v56 = vld [vmem:[#allocation9 + $0x7c8] sm:$0xff]  ;;  %v7127_v49 = vpack.c.bf16 %v2894_v54, %v2893_v53  ;;  %v7161_v62 = vpack.c.bf16 %v3113_v60, %v3112_v11  ;;  %v3105_v38 = vld [vmem:[#allocation12 + $0x7c8] sm:$0xff]  ;;  %v3122_v41 = vld [vmem:[#allocation12 + $0x850] sm:$0xff] }
 0x69b   : > { %7106 = vmatprep.subr.bf16.mxu0 %v7105_v48  ;;  %7134 = vmatprep.subr.bf16.mxu1 %v7133_v51  ;;  %v7115_v23 = vpack.c.bf16 %v2888_v56, %v2887_v15  ;;  %v2872_v48 = vld [vmem:[#allocation2 + $0x3] sm:$0xff]  ;;  %v3101_v56 = vld [vmem:[#allocation12 + $0x7a8] sm:$0xff]  ;;  %v7179_v40 = vpack.c.bf16 %v3105_v38, %v3104_v37  ;;  %v7181_v43 = vpack.c.bf16 %v3123_v42, %v3122_v41  ;;  %v3106_v53 = vld [vmem:[#allocation12 + $0x7d0] sm:$0xff] }
 0x69c   : > { %2999 = vmatprep.mubr.f32.mxu0 %v8841_v35  ;;  %6190 = vmatprep.mubr.f32.mxu1 %v2876_v2  ;;  %v7117_v35 = vpack.c.bf16 %v2906_v20, %v2905_v19  ;;  %v3128_v2 = vld [vmem:[#allocation12 + $0x880] sm:$0xff]  ;;  %v3118_v20 = vld [vmem:[#allocation12 + $0x830] sm:$0xff]  ;;  %v3109_v11 = vld [vmem:[#allocation12 + $0x7e8] sm:$0xff] }
 0x69d   : > { %v3100_v15 = vld [vmem:[#allocation12 + $0x7a0] sm:$0xff] }
 0x69e   : > { %7108 = vmatpush3.bf16.msra.mxu0 %v7107_v52  ;;  %7136 = vmatpush3.bf16.msra.mxu1 %v7133_v51  ;;  %v3097_v51 = vld [vmem:[#allocation12 + $0x788] sm:$0xff]  ;;  %v3115_v52 = vld [vmem:[#allocation12 + $0x818] sm:$0xff]  ;;  %v7171_v19 = vpack.c.bf16 %v3101_v56, %v3100_v15  ;;  %v3124_v58 = vld [vmem:[#allocation12 + $0x860] sm:$0xff] }
 0x69f   : > { %7110 = vmatprep.subr.bf16.mxu0 %v7109_v3  ;;  %7138 = vmatprep.subr.bf16.mxu1 %v7137_v24  ;;  %v7163_v63 = vpack.c.bf16 %v3097_v51, %v3096_v1  ;;  %v7165_v3 = vpack.c.bf16 %v3115_v52, %v3114_v47  ;;  %v3126_v1 = vld [vmem:[#allocation12 + $0x870] sm:$0xff]  ;;  %v3127_v51 = vld [vmem:[#allocation12 + $0x878] sm:$0xff]  ;;  %v3141_v52 = vld [vmem:[#allocation12 + $0x8e8] sm:$0xff] }
 0x6a0   : > { %v7189_v47 = vpack.c.bf16 %v3127_v51, %v3126_v1  ;;  %v3350_v1 = vld [vmem:[#allocation9 + $0x9a8] sm:$0xff] }
 0x6a2   : > { %7112 = vmatpush3.bf16.msra.mxu0 %v7111_v10  ;;  %7140 = vmatpush3.bf16.msra.mxu1 %v7137_v24  ;;  %v7193_v24 = vpack.c.bf16 %v3129_v6, %v3128_v2  ;;  %v7169_v10 = vpack.c.bf16 %v3117_v9, %v3116_v8  ;;  %v3110_v2 = vld [vmem:[#allocation12 + $0x7f0] sm:$0xff]  ;;  %v3346_v9 = vld [vmem:[#allocation9 + $0x988] sm:$0xff] }
 0x6a3   : > { %7114 = vmatprep.subr.bf16.mxu0 %v7113_v12  ;;  %7142 = vmatprep.subr.bf16.mxu1 %v7141_v18  ;;  %v3131_v12 = vld [vmem:[#allocation12 + $0x898] sm:$0xff] }
 0x6a6   : > { %7116 = vmatpush3.bf16.msra.mxu0 %v7115_v23  ;;  %7144 = vmatpush3.bf16.msra.mxu1 %v7141_v18  ;;  %v7197_v18 = vpack.c.bf16 %v3131_v12, %v3130_v14  ;;  %v7173_v23 = vpack.c.bf16 %v3119_v21, %v3118_v20  ;;  %v3362_v12 = vld [vmem:[#allocation9 + $0xa08] sm:$0xff] }
 0x6a7   : > { %7118 = vmatprep.subr.bf16.mxu0 %v7117_v35  ;;  %7146 = vmatprep.subr.bf16.mxu1 %v7145_v26  ;;  %v3133_v35 = vld [vmem:[#allocation12 + $0x8a8] sm:$0xff] }
 0x6aa   : > { %7120 = vmatpush3.bf16.msra.mxu0 %v7119_v36  ;;  %7148 = vmatpush3.bf16.msra.mxu1 %v7145_v26  ;;  %v7201_v26 = vpack.c.bf16 %v3133_v35, %v3132_v22  ;;  %v7177_v36 = vpack.c.bf16 %v3121_v29, %v3120_v27 }
 0x6ab   : > { %7122 = vmatprep.subr.bf16.mxu0 %v7121_v61  ;;  %7150 = vmatprep.subr.bf16.mxu1 %v7149_v39  ;;  %v3135_v61 = vld [vmem:[#allocation12 + $0x8b8] sm:$0xff] }
 0x6ae   : > { %7124 = vmatpush3.bf16.msra.mxu0 %v7123_v16  ;;  %7152 = vmatpush3.bf16.msra.mxu1 %v7149_v39  ;;  %v7205_v39 = vpack.c.bf16 %v3135_v61, %v3134_v34  ;;  %v3136_v16 = vld [vmem:[#allocation12 + $0x8c0] sm:$0xff] }
 0x6af   : > { %7126 = vmatprep.subr.bf16.mxu0 %v7125_v50  ;;  %7154 = vmatprep.subr.bf16.mxu1 %v7153_v55  ;;  %v3137_v50 = vld [vmem:[#allocation12 + $0x8c8] sm:$0xff] }
 0x6b0   : > { %v7209_v54 = vpack.c.bf16 %v3137_v50, %v3136_v16  ;;  %v8901_v50 = vld [vmem:[#allocation2 + $0x5] sm:$0xff] }
 0x6b2   : > { %7128 = vmatpush3.bf16.msra.mxu0 %v7127_v49  ;;  %7156 = vmatpush3.bf16.msra.mxu1 %v7153_v55  ;;  %v3107_v55 = vld [vmem:[#allocation12 + $0x7d8] sm:$0xff]  ;;  %v3125_v49 = vld [vmem:[#allocation12 + $0x868] sm:$0xff] }
 0x6b3   : > { %7158 = vmatprep.subr.bf16.mxu1 %v7157_v44  ;;  %7162 = vmatprep.subr.bf16.mxu0 %v7161_v62  ;;  %v7183_v57 = vpack.c.bf16 %v3107_v55, %v3106_v53  ;;  %v8908_v55 = vld [vmem:[#allocation2 + $0xd] sm:$0xff] }
 0x6b5   : > { %3000 = vmatmul.mubr.f32.vlgmr.msra.gmra.mrb[40].mxu0 %v2872_v48  ;;  %v7185_v48 = vpack.c.bf16 %v3125_v49, %v3124_v58  ;;  %v3329_v58 = vld [vmem:[#allocation9 + $0x900] sm:$0xff]  ;;  %v3330_v49 = vld [vmem:[#allocation9 + $0x908] sm:$0xff] }
 0x6b6   : > { %3004 = vmatprep.mubr.f32.mxu0 %v8846_v17  ;;  %7160 = vmatpush3.bf16.msra.mxu1 %v7157_v44  ;;  %v3099_v17 = vld [vmem:[#allocation12 + $0x798] sm:$0xff]  ;;  %v3138_v44 = vld [vmem:[#allocation12 + $0x8d0] sm:$0xff] }
 0x6b7   : > { %7164 = vmatpush3.bf16.msra.mxu0 %v7163_v63  ;;  %v7167_v4 = vpack.c.bf16 %v3099_v17, %v3098_v7  ;;  %7194 = vmatprep.subr.bf16.mxu1 %v7193_v24  ;;  %v3140_v63 = vld [vmem:[#allocation12 + $0x8e0] sm:$0xff]  ;;  %v3142_v17 = vld [vmem:[#allocation12 + $0x8f0] sm:$0xff] }
 0x6b8   : > { %7166 = vmatprep.subr.bf16.mxu0 %v7165_v3  ;;  %v3111_v3 = vld [vmem:[#allocation12 + $0x7f8] sm:$0xff]  ;;  %v7217_v6 = vpack.c.bf16 %v3141_v52, %v3140_v63  ;;  %v3363_v63 = vld [vmem:[#allocation9 + $0xa10] sm:$0xff] }
 0x6b9   : > { %3005 = vmatmul.mubr.f32.gmra.mrb[42].mxu0 %v2873_v31  ;;  %6191 = vmatmul.mubr.f32.vlgmr.msra.gmra.mrb[20].mxu1 %v2877_v33  ;;  %v3139_v31 = vld [vmem:[#allocation12 + $0x8d8] sm:$0xff]  ;;  %v3108_v33 = vld [vmem:[#allocation12 + $0x7e0] sm:$0xff]  ;;  %v7191_v7 = vpack.c.bf16 %v3111_v3, %v3110_v2 }
 0x6ba   : > { %7196 = vmatpush3.bf16.msra.mxu1 %v7193_v24  ;;  %v7213_v60 = vpack.c.bf16 %v3139_v31, %v3138_v44  ;;  %v7187_v62 = vpack.c.bf16 %v3109_v11, %v3108_v33  ;;  %v3143_v24 = vld [vmem:[#allocation12 + $0x8f8] sm:$0xff]  ;;  %v3347_v44 = vld [vmem:[#allocation9 + $0x990] sm:$0xff]  ;;  %v7227_v31 = vpack.c.bf16 %v3330_v49, %v3329_v58  ;;  %v3334_v3 = vld [vmem:[#allocation9 + $0x928] sm:$0xff] }
 0x6bb   : > { %7168 = vmatpush3.bf16.msra.mxu0 %v7167_v4  ;;  %7198 = vmatprep.subr.bf16.mxu1 %v7197_v18  ;;  %v3345_v4 = vld [vmem:[#allocation9 + $0x980] sm:$0xff]  ;;  %v7221_v8 = vpack.c.bf16 %v3143_v24, %v3142_v17  ;;  %v3331_v33 = vld [vmem:[#allocation9 + $0x910] sm:$0xff]  ;;  %v3358_v58 = vld [vmem:[#allocation9 + $0x9e8] sm:$0xff] }
 0x6bc   : > { %7170 = vmatprep.subr.bf16.mxu0 %v7169_v10  ;;  %v7225_v14 = vpack.c.bf16 %v3346_v9, %v3345_v4  ;;  %v3361_v10 = vld [vmem:[#allocation9 + $0xa00] sm:$0xff]  ;;  %v3352_v9 = vld [vmem:[#allocation9 + $0x9b8] sm:$0xff]  ;;  %v3371_v49 = vld [vmem:[#allocation9 + $0xa50] sm:$0xff] }
 0x6bd   : > { %v8894_v15 = vpack.c.bf16 %v3362_v12, %v3361_v10  ;;  %v3333_v2 = vld [vmem:[#allocation9 + $0x920] sm:$0xff]  ;;  %v3366_v10 = vld [vmem:[#allocation9 + $0xa28] sm:$0xff] }
 0x6be   : > { %7200 = vmatpush3.bf16.msra.mxu1 %v7197_v18  ;;  %v8915_v12 = vld [vmem:[#allocation2 + $0x5] sm:$0xff] }
 0x6bf   : > { %7172 = vmatpush3.bf16.msra.mxu0 %v7171_v19  ;;  %7202 = vmatprep.subr.bf16.mxu1 %v7201_v26  ;;  %v4834_v19 = vld [vmem:[#allocation13 + $0x4] ss:$0 sm:$0xff] }
 0x6c0   : > { %7174 = vmatprep.subr.bf16.mxu0 %v7173_v23 }
 0x6c2   : > { %7204 = vmatpush3.bf16.msra.mxu1 %v7201_v26 }
 0x6c3   : > { %7176 = vmatpush3.bf16.msra.mxu0 %v7175_v5  ;;  %7206 = vmatprep.subr.bf16.mxu1 %v7205_v39 }
 0x6c4   : > { %7178 = vmatprep.subr.bf16.mxu0 %v7177_v36  ;;  %v4837_v36 = vld [vmem:[#allocation10 + $0x5] ss:$0 sm:$0xff] }
 0x6c6   : > { %7208 = vmatpush3.bf16.msra.mxu1 %v7205_v39 }
 0x6c7   : > { %7180 = vmatpush3.bf16.msra.mxu0 %v7179_v40  ;;  %7210 = vmatprep.subr.bf16.mxu1 %v7209_v54 }
 0x6c8   : > { %7182 = vmatprep.subr.bf16.mxu0 %v7181_v43 }
 0x6ca   : > { %7212 = vmatpush3.bf16.msra.mxu1 %v7209_v54 }
 0x6cb   : > { %7184 = vmatpush3.bf16.msra.mxu0 %v7183_v57  ;;  %7214 = vmatprep.subr.bf16.mxu1 %v7213_v60 }
 0x6cc   : > { %7186 = vmatprep.subr.bf16.mxu0 %v7185_v48  ;;  %v3348_v48 = vld [vmem:[#allocation9 + $0x998] sm:$0xff] }
 0x6cd   : > { %v7229_v11 = vpack.c.bf16 %v3348_v48, %v3347_v44  ;;  %v3372_v44 = vld [vmem:[#allocation9 + $0xa58] sm:$0xff] }
 0x6ce   : > { %7216 = vmatpush3.bf16.msra.mxu1 %v7213_v60  ;;  %v3332_v60 = vld [vmem:[#allocation9 + $0x918] sm:$0xff] }
 0x6cf   : > { %7188 = vmatpush3.bf16.msra.mxu0 %v7187_v62  ;;  %7218 = vmatprep.subr.bf16.mxu1 %v7217_v6  ;;  %v3349_v62 = vld [vmem:[#allocation9 + $0x9a0] sm:$0xff]  ;;  %v7231_v52 = vpack.c.bf16 %v3332_v60, %v3331_v33  ;;  %v7277_v33 = vpack.c.bf16 %v3372_v44, %v3371_v49  ;;  %v3342_v60 = vld [vmem:[#allocation9 + $0x968] sm:$0xff] }
 0x6d0   : > { %7190 = vmatprep.subr.bf16.mxu0 %v7189_v47  ;;  %v3364_v47 = vld [vmem:[#allocation9 + $0xa18] sm:$0xff]  ;;  %v7233_v4 = vpack.c.bf16 %v3350_v1, %v3349_v62  ;;  %v3359_v62 = vld [vmem:[#allocation9 + $0x9f0] sm:$0xff]  ;;  %v3569_v49 = vld [vmem:[#allocation12 + $0x9b8] sm:$0xff] }
 0x6d1   : > { %v3360_v1 = vld [vmem:[#allocation9 + $0x9f8] sm:$0xff] }
 0x6d2   : > { %7220 = vmatpush3.bf16.msra.mxu1 %v7217_v6  ;;  %v3351_v6 = vld [vmem:[#allocation9 + $0x9b0] sm:$0xff] }
 0x6d3   : > { %7192 = vmatpush3.bf16.msra.mxu0 %v7191_v7  ;;  %7222 = vmatprep.subr.bf16.mxu1 %v7221_v8 }
 0x6d4   : > { %7226 = vmatprep.subr.bf16.mxu0 %v7225_v14  ;;  %v3365_v14 = vld [vmem:[#allocation9 + $0xa20] sm:$0xff] }
 0x6d6   : > { %7224 = vmatpush3.bf16.msra.mxu1 %v7221_v8  ;;  %v7261_v8 = vpack.c.bf16 %v3364_v47, %v3363_v63  ;;  %v3374_v63 = vld [vmem:[#allocation9 + $0xa68] sm:$0xff] }
 0x6d7   : > { %7258 = vmatprep.subr.bf16.mxu1 %v8894_v15 }
 0x768   : > { %v5403_v56 = vpop.f32.mrb[36].mxu0 }
 0x769   : > { %v5404_v18 = vpop.f32.mrb[37].mxu0 }
 0x76a   : > { %v5405_v20 = vadd.f32 %v5404_v18, %v5403_v56  ;;  %v8917_v56 = vld [vmem:[#allocation2 + $0x8] sm:$0xff]  ;;  %v7235_v18 = vpack.c.bf16 %v3334_v3, %v3333_v2  ;;  %v3343_v3 = vld [vmem:[#allocation9 + $0x970] sm:$0xff] }
 0x76c   : > { %v5406_v21 = vpop.f32.mrb[38].mxu0  ;;  %v2769_v22 = vadd.f32 %v5405_v20, %v4834_v19  ;;  %v6157_v23 = vpop.f32.mrb[18].mxu1  ;;  %v7265_v20 = vpack.c.bf16 %v3366_v10, %v3365_v14  ;;  %v8925_v14 = vld [vmem:[#allocation2 + $0xa] sm:$0xff] }
 0x76d   : > { %v5407_v35 = vpop.f32.mrb[39].mxu0  ;;  %v2843_v46 = vpop.f32.mrb[19].mxu1  ;;  %v3327_v10 = vld [vmem:[#allocation2 + $0x10] sm:$0xff] }
 0x76e   : > { %v5408_v13 = vadd.f32 %v5407_v35, %v5406_v21  ;;  %v8897_v26 = vadd.f32 %v2843_v46, %v2769_v22  ;;  %v3335_v21 = vld [vmem:[#allocation9 + $0x930] sm:$0xff]  ;;  %v3336_v22 = vld [vmem:[#allocation9 + $0x938] sm:$0xff]  ;;  %v3354_v35 = vld [vmem:[#allocation9 + $0x9c8] sm:$0xff] }
 0x76f   : > { %v3368_v46 = vld [vmem:[#allocation9 + $0xa38] sm:$0xff] }
 0x770   : > { %v2774_v5 = vadd.f32 %v5408_v13, %v4834_v19  ;;  %v7237_v19 = vpack.c.bf16 %v3352_v9, %v3351_v6  ;;  %v3367_v13 = vld [vmem:[#allocation9 + $0xa30] sm:$0xff]  ;;  %v3344_v6 = vld [vmem:[#allocation9 + $0x978] sm:$0xff] }
 0x771   : > { %v8922_v9 = vld [vmem:[#allocation2 + $0xd] sm:$0xff] }
 0x772   : > { %v8899_v27 = vadd.f32 %v6157_v23, %v2774_v5  ;;  %v3353_v23 = vld [vmem:[#allocation9 + $0x9c0] sm:$0xff]  ;;  %v7239_v5 = vpack.c.bf16 %v3336_v22, %v3335_v21  ;;  %v3546_v21 = vld [vmem:[#allocation12 + $0x900] sm:$0xff]  ;;  %v3547_v22 = vld [vmem:[#allocation12 + $0x908] sm:$0xff] }
 0x788   : > { %v5459_v29 = vpop.f32.mrb[40].mxu0 }
 0x789   : > { %v5460_v34 = vpop.f32.mrb[41].mxu0 }
 0x78a   : > { %v5461_v61 = vadd.f32 %v5460_v34, %v5459_v29  ;;  %v7269_v29 = vpack.c.bf16 %v3368_v46, %v3367_v13  ;;  %v3337_v34 = vld [vmem:[#allocation9 + $0x940] sm:$0xff] }
 0x78b   : > { %v3565_v13 = vld [vmem:[#allocation12 + $0x998] sm:$0xff] }
 0x78c   : > { %v5462_v37 = vpop.f32.mrb[42].mxu0  ;;  %v3002_v38 = vadd.f32 %v5461_v61, %v4837_v36  ;;  %v6192_v39 = vpop.f32.mrb[20].mxu1  ;;  %v3355_v61 = vld [vmem:[#allocation9 + $0x9d0] sm:$0xff] }
 0x78d   : > { %v5463_v40 = vpop.f32.mrb[43].mxu0  ;;  %v3076_v42 = vpop.f32.mrb[21].mxu1 }
 0x78e   : > { %v5464_v41 = vadd.f32 %v5463_v40, %v5462_v37  ;;  %v3077_v43 = vadd.f32 %v3076_v42, %v3002_v38  ;;  %v3356_v37 = vld [vmem:[#allocation9 + $0x9d8] sm:$0xff]  ;;  %v3369_v38 = vld [vmem:[#allocation9 + $0xa40] sm:$0xff] }
 0x790   : > { %v3007_v16 = vadd.f32 %v5464_v41, %v4837_v36  ;;  %v8904_v53 = vsub.f32 %v8901_v50, %v3077_v43  ;;  %v3338_v36 = vld [vmem:[#allocation9 + $0x948] sm:$0xff]  ;;  %v7245_v41 = vpack.c.bf16 %v3356_v37, %v3355_v61  ;;  %v3339_v43 = vld [vmem:[#allocation9 + $0x950] sm:$0xff] }
 0x791   : > { %v7243_v40 = vpack.c.bf16 %v3338_v36, %v3337_v34  ;;  %v3549_v36 = vld [vmem:[#allocation12 + $0x918] sm:$0xff]  ;;  %v3566_v37 = vld [vmem:[#allocation12 + $0x9a0] sm:$0xff] }
 0x792   : > { %v3082_v54 = vadd.f32 %v6192_v39, %v3007_v16  ;;  %3087 = vst [vmem:[#allocation3 + $0x5] sm:$0xff] %v8904_v53  ;;  %3216 = vmatprep.mubr.f32.mxu0 %v8904_v53  ;;  %v3370_v39 = vld [vmem:[#allocation9 + $0xa48] sm:$0xff]  ;;  %v3340_v16 = vld [vmem:[#allocation9 + $0x958] sm:$0xff] }
 0x793   : > { %v7273_v42 = vpack.c.bf16 %v3370_v39, %v3369_v38  ;;  %v7247_v48 = vpack.c.bf16 %v3340_v16, %v3339_v43  ;;  %v3567_v38 = vld [vmem:[#allocation12 + $0x9a8] sm:$0xff] }
 0x794   : > { %v8911_v57 = vsub.f32 %v8908_v55, %v3082_v54  ;;  %v3357_v54 = vld [vmem:[#allocation9 + $0x9e0] sm:$0xff]  ;;  %v7297_v39 = vpack.c.bf16 %v3567_v38, %v3566_v37  ;;  %v3551_v16 = vld [vmem:[#allocation12 + $0x928] sm:$0xff]  ;;  %v3590_v38 = vld [vmem:[#allocation12 + $0xa60] sm:$0xff] }
 0x796   : > { %3088 = vst [vmem:[#allocation3 + $0xd] sm:$0xff] %v8911_v57 }
 0x799   : > { %v3089_v51 = vld [vmem:[#allocation3 + $0x3] sm:$0xff] }
 0x79a   : > { %3217 = vmatmul.mubr.f32.vlgmr.msra.gmra.mrb[44].mxu0 %v3089_v51  ;;  %v3373_v51 = vld [vmem:[#allocation9 + $0xa60] sm:$0xff] }
 0x79b   : > { %7228 = vmatpush3.bf16.msra.mxu0 %v7227_v31  ;;  %3221 = vmatprep.mubr.f32.mxu0 %v8911_v57  ;;  %v7249_v31 = vpack.c.bf16 %v3358_v58, %v3357_v54  ;;  %v7281_v2 = vpack.c.bf16 %v3374_v63, %v3373_v51  ;;  %v3568_v58 = vld [vmem:[#allocation12 + $0x9b0] sm:$0xff]  ;;  %v3571_v51 = vld [vmem:[#allocation12 + $0x9c8] sm:$0xff] }
 0x79c   : > { %7230 = vmatprep.subr.bf16.mxu0 %v7229_v11  ;;  %v3341_v11 = vld [vmem:[#allocation9 + $0x960] sm:$0xff]  ;;  %v7301_v44 = vpack.c.bf16 %v3569_v49, %v3568_v58  ;;  %v3592_v58 = vld [vmem:[#allocation12 + $0xa70] sm:$0xff] }
 0x79d   : > { %v3093_v7 = vld [vmem:[#allocation3 + $0x7] sm:$0xff]  ;;  %v3094_v24 = vld [vmem:[#allocation3 + $0xf] sm:$0xff]  ;;  %v7251_v47 = vpack.c.bf16 %v3342_v60, %v3341_v11 }
 0x79e   : > { %v3090_v17 = vld [vmem:[#allocation3 + $0xb] sm:$0xff]  ;;  %6225 = vmatprep.mubr.f32.mxu1 %v3093_v7  ;;  %v3553_v60 = vld [vmem:[#allocation12 + $0x938] sm:$0xff] }
 0x79f   : > { %3222 = vmatmul.mubr.f32.gmra.mrb[46].mxu0 %v3090_v17  ;;  %6226 = vmatmul.mubr.f32.vlgmr.msra.gmra.mrb[22].mxu1 %v3094_v24  ;;  %v3375_v7 = vld [vmem:[#allocation9 + $0xa70] sm:$0xff]  ;;  %v3376_v17 = vld [vmem:[#allocation9 + $0xa78] sm:$0xff]  ;;  %v7255_v24 = vpack.c.bf16 %v3344_v6, %v3343_v3  ;;  %v3593_v49 = vld [vmem:[#allocation12 + $0xa78] sm:$0xff] }
 0x7a0   : > { %7232 = vmatpush3.bf16.msra.mxu0 %v7231_v52  ;;  %7260 = vmatpush3.bf16.msra.mxu1 %v8894_v15  ;;  %v7241_v15 = vpack.c.bf16 %v3354_v35, %v3353_v23  ;;  %v7253_v52 = vpack.c.bf16 %v3360_v1, %v3359_v62  ;;  %v7291_v23 = vpack.c.bf16 %v3547_v22, %v3546_v21  ;;  %v3564_v35 = vld [vmem:[#allocation12 + $0x990] sm:$0xff]  ;;  %v3570_v1 = vld [vmem:[#allocation12 + $0x9c0] sm:$0xff]  ;;  %v3555_v6 = vld [vmem:[#allocation12 + $0x948] sm:$0xff] }
 0x7a1   : > { %7234 = vmatprep.subr.bf16.mxu0 %v7233_v4  ;;  %7262 = vmatprep.subr.bf16.mxu1 %v7261_v8  ;;  %v7285_v4 = vpack.c.bf16 %v3376_v17, %v3375_v7  ;;  %v7293_v46 = vpack.c.bf16 %v3565_v13, %v3564_v35  ;;  %v7305_v63 = vpack.c.bf16 %v3571_v51, %v3570_v1  ;;  %v3572_v17 = vld [vmem:[#allocation12 + $0x9d0] sm:$0xff]  ;;  %v3574_v22 = vld [vmem:[#allocation12 + $0x9e0] sm:$0xff] }
 0x7a2   : > { %3449 = vmatprep.mubr.f32.mxu0 %v8915_v12  ;;  %6260 = vmatprep.mubr.f32.mxu1 %v8917_v56  ;;  %v3588_v13 = vld [vmem:[#allocation12 + $0xa50] sm:$0xff] }
 0x7a4   : > { %7236 = vmatpush3.bf16.msra.mxu0 %v7235_v18  ;;  %7264 = vmatpush3.bf16.msra.mxu1 %v7261_v8  ;;  %v3322_v8 = vld [vmem:[#allocation2 + $0x2] sm:$0xff] }
 0x7a5   : > { %7238 = vmatprep.subr.bf16.mxu0 %v7237_v19  ;;  %7266 = vmatprep.subr.bf16.mxu1 %v7265_v20  ;;  %v3562_v18 = vld [vmem:[#allocation12 + $0x980] sm:$0xff]  ;;  %v3563_v19 = vld [vmem:[#allocation12 + $0x988] sm:$0xff] }
 0x7a8   : > { %7240 = vmatpush3.bf16.msra.mxu0 %v7239_v5  ;;  %7268 = vmatpush3.bf16.msra.mxu1 %v7265_v20  ;;  %v7289_v20 = vpack.c.bf16 %v3563_v19, %v3562_v18  ;;  %v3578_v5 = vld [vmem:[#allocation12 + $0xa00] sm:$0xff]  ;;  %v3556_v19 = vld [vmem:[#allocation12 + $0x950] sm:$0xff] }
 0x7a9   : > { %7242 = vmatprep.subr.bf16.mxu0 %v7241_v15  ;;  %7270 = vmatprep.subr.bf16.mxu1 %v7269_v29  ;;  %v3579_v15 = vld [vmem:[#allocation12 + $0xa08] sm:$0xff] }
 0x7aa   : > { %v7321_v34 = vpack.c.bf16 %v3579_v15, %v3578_v5  ;;  %v3558_v5 = vld [vmem:[#allocation12 + $0x960] sm:$0xff] }
 0x7ac   : > { %7244 = vmatpush3.bf16.msra.mxu0 %v7243_v40  ;;  %7272 = vmatpush3.bf16.msra.mxu1 %v7269_v29  ;;  %v3548_v29 = vld [vmem:[#allocation12 + $0x910] sm:$0xff] }
 0x7ad   : > { %7246 = vmatprep.subr.bf16.mxu0 %v7245_v41  ;;  %7274 = vmatprep.subr.bf16.mxu1 %v7273_v42  ;;  %v7295_v61 = vpack.c.bf16 %v3549_v36, %v3548_v29  ;;  %v3580_v40 = vld [vmem:[#allocation12 + $0xa10] sm:$0xff]  ;;  %v3581_v41 = vld [vmem:[#allocation12 + $0xa18] sm:$0xff]  ;;  %v3559_v29 = vld [vmem:[#allocation12 + $0x968] sm:$0xff] }
 0x7ae   : > { %v7325_v43 = vpack.c.bf16 %v3581_v41, %v3580_v40  ;;  %v3576_v36 = vld [vmem:[#allocation12 + $0x9f0] sm:$0xff] }
 0x7af   : > { %v3560_v40 = vld [vmem:[#allocation12 + $0x970] sm:$0xff] }
 0x7b0   : > { %7248 = vmatpush3.bf16.msra.mxu0 %v7247_v48  ;;  %7276 = vmatpush3.bf16.msra.mxu1 %v7273_v42  ;;  %v3550_v42 = vld [vmem:[#allocation12 + $0x920] sm:$0xff] }
 0x7b1   : > { %7250 = vmatprep.subr.bf16.mxu0 %v7249_v31  ;;  %7278 = vmatprep.subr.bf16.mxu1 %v7277_v33  ;;  %v7299_v54 = vpack.c.bf16 %v3551_v16, %v3550_v42  ;;  %v3582_v48 = vld [vmem:[#allocation12 + $0xa20] sm:$0xff]  ;;  %v3583_v31 = vld [vmem:[#allocation12 + $0xa28] sm:$0xff]  ;;  %v3561_v42 = vld [vmem:[#allocation12 + $0x978] sm:$0xff] }
 0x7b2   : > { %v7329_v11 = vpack.c.bf16 %v3583_v31, %v3582_v48  ;;  %v3795_v16 = vld [vmem:[#allocation9 + $0xb00] sm:$0xff]  ;;  %v7349_v48 = vpack.c.bf16 %v3593_v49, %v3592_v58 }
 0x7b3   : > { %v3811_v31 = vld [vmem:[#allocation9 + $0xb80] sm:$0xff] }
 0x7b4   : > { %7252 = vmatpush3.bf16.msra.mxu0 %v7251_v47  ;;  %7280 = vmatpush3.bf16.msra.mxu1 %v7277_v33  ;;  %v3552_v33 = vld [vmem:[#allocation12 + $0x930] sm:$0xff] }
 0x7b5   : > { %7254 = vmatprep.subr.bf16.mxu0 %v7253_v52  ;;  %7282 = vmatprep.subr.bf16.mxu1 %v7281_v2  ;;  %v7303_v62 = vpack.c.bf16 %v3553_v60, %v3552_v33  ;;  %v3584_v47 = vld [vmem:[#allocation12 + $0xa30] sm:$0xff]  ;;  %v3585_v52 = vld [vmem:[#allocation12 + $0xa38] sm:$0xff]  ;;  %v3812_v33 = vld [vmem:[#allocation9 + $0xb88] sm:$0xff]  ;;  %v4835_v60 = vmul.f32 -1.442695, %v8897_v26 }
 0x7b6   : > { %v7333_v3 = vpack.c.bf16 %v3585_v52, %v3584_v47 }
 0x7b7   : > { %7775 = vpow2.f32 %v4835_v60 }
 0x7b8   : > { %7256 = vmatpush3.bf16.msra.mxu0 %v7255_v24  ;;  %7284 = vmatpush3.bf16.msra.mxu1 %v7281_v2  ;;  %v3554_v2 = vld [vmem:[#allocation12 + $0x940] sm:$0xff]  ;;  %v3573_v24 = vld [vmem:[#allocation12 + $0x9d8] sm:$0xff] }
 0x7b9   : > { %7286 = vmatprep.subr.bf16.mxu1 %v7285_v4  ;;  %7290 = vmatprep.subr.bf16.mxu0 %v7289_v20  ;;  %v7307_v7 = vpack.c.bf16 %v3555_v6, %v3554_v2  ;;  %v3557_v20 = vld [vmem:[#allocation12 + $0x958] sm:$0xff] }
 0x7ba   : > { %v7311_v21 = vpack.c.bf16 %v3557_v20, %v3556_v19 }
 0x7bb   : > { %3450 = vmatmul.mubr.f32.vlgmr.msra.gmra.mrb[48].mxu0 %v3322_v8  ;;  %v3586_v8 = vld [vmem:[#allocation12 + $0xa40] sm:$0xff] }
 0x7bc   : > { %7288 = vmatpush3.bf16.msra.mxu1 %v7285_v4  ;;  %3454 = vmatprep.mubr.f32.mxu0 %v8922_v9  ;;  %v7309_v4 = vpack.c.bf16 %v3573_v24, %v3572_v17 }
 0x7bd   : > { %7292 = vmatpush3.bf16.msra.mxu0 %v7291_v23  ;;  %7322 = vmatprep.subr.bf16.mxu1 %v7321_v34  ;;  %v3575_v23 = vld [vmem:[#allocation12 + $0x9e8] sm:$0xff] }
 0x7be   : > { %7294 = vmatprep.subr.bf16.mxu0 %v7293_v46  ;;  %v7313_v35 = vpack.c.bf16 %v3575_v23, %v3574_v22  ;;  %v3589_v46 = vld [vmem:[#allocation12 + $0xa58] sm:$0xff] }
 0x7bf   : > { %3455 = vmatmul.mubr.f32.gmra.mrb[50].mxu0 %v8925_v14  ;;  %6261 = vmatmul.mubr.f32.vlgmr.msra.gmra.mrb[24].mxu1 %v3327_v10  ;;  %v3587_v10 = vld [vmem:[#allocation12 + $0xa48] sm:$0xff]  ;;  %v7341_v15 = vpack.c.bf16 %v3589_v46, %v3588_v13 }
 0x7c0   : > { %7324 = vmatpush3.bf16.msra.mxu1 %v7321_v34  ;;  %v7337_v18 = vpack.c.bf16 %v3587_v10, %v3586_v8  ;;  %v7315_v34 = vpack.c.bf16 %v3559_v29, %v3558_v5 }
 0x7c1   : > { %7296 = vmatpush3.bf16.msra.mxu0 %v7295_v61  ;;  %7326 = vmatprep.subr.bf16.mxu1 %v7325_v43  ;;  %v3577_v61 = vld [vmem:[#allocation12 + $0x9f8] sm:$0xff]  ;;  %v7776_v10 = vpop.eup %7775 }
 0x7c2   : > { %7298 = vmatprep.subr.bf16.mxu0 %v7297_v39  ;;  %v7317_v37 = vpack.c.bf16 %v3577_v61, %v3576_v36  ;;  %v3591_v39 = vld [vmem:[#allocation12 + $0xa68] sm:$0xff]  ;;  %v4841_v36 = vld [vmem:[#allocation10 + $0x6] ss:$0 sm:$0xff] }
 0x7c3   : > { %v7345_v41 = vpack.c.bf16 %v3591_v39, %v3590_v38 }
 0x7c4   : > { %7328 = vmatpush3.bf16.msra.mxu1 %v7325_v43  ;;  %v7319_v43 = vpack.c.bf16 %v3561_v42, %v3560_v40 }
 0x7c5   : > { %7300 = vmatpush3.bf16.msra.mxu0 %v7299_v54  ;;  %7330 = vmatprep.subr.bf16.mxu1 %v7329_v11  ;;  %v3796_v54 = vld [vmem:[#allocation9 + $0xb08] sm:$0xff] }
 0x7c6   : > { %7302 = vmatprep.subr.bf16.mxu0 %v7301_v44  ;;  %v7353_v44 = vpack.c.bf16 %v3796_v54, %v3795_v16 }
 0x7c8   : > { %7332 = vmatpush3.bf16.msra.mxu1 %v7329_v11  ;;  %v8928_v11 = vpack.c.bf16 %v3812_v33, %v3811_v31 }
 0x7c9   : > { %7304 = vmatpush3.bf16.msra.mxu0 %v7303_v62  ;;  %7334 = vmatprep.subr.bf16.mxu1 %v7333_v3  ;;  %v4836_v62 = vmul.f32 -1.442695, %v8899_v27  ;;  %v2858_v27 = vadd.f32 1.0, %v7776_v10 }
 0x7ca   : > { %7306 = vmatprep.subr.bf16.mxu0 %v7305_v63  ;;  %v4838_v63 = vld [vmem:[#allocation13 + $0x5] ss:$0 sm:$0xff] }
 0x7cb   : > { %7777 = vpow2.f32 %v4836_v62  ;;  %v3779_v62 = vld [vmem:[#allocation9 + $0xa80] sm:$0xff] }
 0x7cc   : > { %7336 = vmatpush3.bf16.msra.mxu1 %v7333_v3 }
 0x7cd   : > { %7308 = vmatpush3.bf16.msra.mxu0 %v7307_v7  ;;  %7338 = vmatprep.subr.bf16.mxu1 %v7337_v18 }
 0x7ce   : > { %7310 = vmatprep.subr.bf16.mxu0 %v7309_v4 }
 0x7d0   : > { %7340 = vmatpush3.bf16.msra.mxu1 %v7337_v18 }
 0x7d1   : > { %7312 = vmatpush3.bf16.msra.mxu0 %v7311_v21  ;;  %7342 = vmatprep.subr.bf16.mxu1 %v7341_v15 }
 0x7d2   : > { %7314 = vmatprep.subr.bf16.mxu0 %v7313_v35 }
 0x7d4   : > { %7344 = vmatpush3.bf16.msra.mxu1 %v7341_v15 }
 0x7d5   : > { %7316 = vmatpush3.bf16.msra.mxu0 %v7315_v34  ;;  %7346 = vmatprep.subr.bf16.mxu1 %v7345_v41  ;;  %v7778_v19 = vpop.eup %7777 }
 0x7d6   : > { %7318 = vmatprep.subr.bf16.mxu0 %v7317_v37  ;;  %v2859_v20 = vadd.f32 1.0, %v7778_v19  ;;  %v3783_v19 = vld [vmem:[#allocation9 + $0xaa0] sm:$0xff] }
 0x7d8   : > { %7348 = vmatpush3.bf16.msra.mxu1 %v7345_v41 }
 0x7d9   : > { %7320 = vmatpush3.bf16.msra.mxu0 %v7319_v43  ;;  %7350 = vmatprep.subr.bf16.mxu1 %v7349_v48 }
 0x7da   : > { %7354 = vmatprep.subr.bf16.mxu0 %v7353_v44 }
 0x7dc   : > { %7352 = vmatpush3.bf16.msra.mxu1 %v7349_v48 }
 0x7dd   : > { %7386 = vmatprep.subr.bf16.mxu1 %v8928_v11 }
 0x86d   : > { %v5515_v1 = vpop.f32.mrb[44].mxu0 }
 0x86e   : > { %v5516_v51 = vpop.f32.mrb[45].mxu0 }
 0x86f   : > { %v5517_v47 = vadd.f32 %v5516_v51, %v5515_v1  ;;  %v3780_v1 = vld [vmem:[#allocation9 + $0xa88] sm:$0xff]  ;;  %v3797_v51 = vld [vmem:[#allocation9 + $0xb10] sm:$0xff] }
 0x871   : > { %v3219_v3 = vadd.f32 %v5517_v47, %v4838_v63 }
 0x872   : > { %v5518_v52 = vpop.f32.mrb[46].mxu0  ;;  %v6227_v2 = vpop.f32.mrb[22].mxu1 }
 0x873   : > { %v5519_v6 = vpop.f32.mrb[47].mxu0  ;;  %v3293_v7 = vpop.f32.mrb[23].mxu1 }
 0x874   : > { %v5520_v17 = vadd.f32 %v5519_v6, %v5518_v52  ;;  %v3294_v24 = vadd.f32 %v3293_v7, %v3219_v3  ;;  %v3781_v7 = vld [vmem:[#allocation9 + $0xa90] sm:$0xff] }
 0x876   : > { %v3224_v4 = vadd.f32 %v5520_v17, %v4838_v63  ;;  %v4839_v8 = vmul.f32 -1.442695, %v3294_v24  ;;  %v3798_v63 = vld [vmem:[#allocation9 + $0xb18] sm:$0xff] }
 0x877   : > { %v7357_v6 = vpack.c.bf16 %v3798_v63, %v3797_v51  ;;  %v3782_v17 = vld [vmem:[#allocation9 + $0xa98] sm:$0xff]  ;;  %v3807_v51 = vld [vmem:[#allocation9 + $0xb60] sm:$0xff]  ;;  %v3808_v63 = vld [vmem:[#allocation9 + $0xb68] sm:$0xff] }
 0x878   : > { %v3299_v18 = vadd.f32 %v6227_v2, %v3224_v4  ;;  %7779 = vpow2.f32 %v4839_v8  ;;  %v7355_v2 = vpack.c.bf16 %v3780_v1, %v3779_v62  ;;  %v3799_v4 = vld [vmem:[#allocation9 + $0xb20] sm:$0xff]  ;;  %v3800_v8 = vld [vmem:[#allocation9 + $0xb28] sm:$0xff]  ;;  %v3789_v62 = vld [vmem:[#allocation9 + $0xad0] sm:$0xff] }
 0x87a   : > { %v4840_v26 = vmul.f32 -1.442695, %v3299_v18  ;;  %v3813_v18 = vld [vmem:[#allocation9 + $0xb90] sm:$0xff] }
 0x87c   : > { %7781 = vpow2.f32 %v4840_v26  ;;  %v3814_v26 = vld [vmem:[#allocation9 + $0xb98] sm:$0xff] }
 0x87d   : > { %7783 = vrcp.f32 %v2858_v27 }
 0x87e   : > { %7785 = vrcp.f32 %v2859_v20  ;;  %v7361_v20 = vpack.c.bf16 %v3800_v8, %v3799_v4  ;;  %v3823_v4 = vld [vmem:[#allocation9 + $0xbe0] sm:$0xff]  ;;  %v3824_v8 = vld [vmem:[#allocation9 + $0xbe8] sm:$0xff] }
 0x882   : > { %v7780_v21 = vpop.eup %7779 }
 0x883   : > { %v3308_v22 = vadd.f32 1.0, %v7780_v21  ;;  %v3784_v21 = vld [vmem:[#allocation9 + $0xaa8] sm:$0xff] }
 0x885   : > { %7787 = vrcp.f32 %v3308_v22  ;;  %v3801_v22 = vld [vmem:[#allocation9 + $0xb30] sm:$0xff] }
 0x886   : > { %v7782_v23 = vpop.eup %7781 }
 0x887   : > { %v3309_v35 = vadd.f32 1.0, %v7782_v23  ;;  %v7784_v13 = vpop.eup %7783  ;;  %v3802_v23 = vld [vmem:[#allocation9 + $0xb38] sm:$0xff] }
 0x888   : > { %v2864_v46 = vadd.f32 1e-05, %v7784_v13  ;;  %v7786_v5 = vpop.eup %7785 }
 0x889   : > { %7789 = vrcp.f32 %v3309_v35  ;;  %v2865_v61 = vadd.f32 1e-05, %v7786_v5 }
 0x88a   : > { %7791 = vrcp.f32 %v2864_v46 }
 0x88e   : > { %v5571_v15 = vpop.f32.mrb[48].mxu0 }
 0x88f   : > { %v7788_v29 = vpop.eup %7787  ;;  %v5572_v34 = vpop.f32.mrb[49].mxu0 }
 0x890   : > { %v3314_v37 = vadd.f32 1e-05, %v7788_v29  ;;  %v5573_v38 = vadd.f32 %v5572_v34, %v5571_v15  ;;  %v7389_v15 = vpack.c.bf16 %v3814_v26, %v3813_v18  ;;  %v7363_v29 = vpack.c.bf16 %v3784_v21, %v3783_v19  ;;  %v3793_v26 = vld [vmem:[#allocation9 + $0xaf0] sm:$0xff]  ;;  %v3826_v19 = vld [vmem:[#allocation9 + $0xbf8] sm:$0xff] }
 0x891   : > { %v7365_v34 = vpack.c.bf16 %v3802_v23, %v3801_v22  ;;  %v3772_v22 = vld [vmem:[#allocation2] sm:$0xff]  ;;  %v3777_v23 = vld [vmem:[#allocation2 + $0x12] sm:$0xff] }
 0x892   : > { %7793 = vrcp.f32 %v3314_v37  ;;  %v5574_v39 = vpop.f32.mrb[50].mxu0  ;;  %v6262_v40 = vpop.f32.mrb[24].mxu1  ;;  %v3452_v41 = vadd.f32 %v5573_v38, %v4841_v36  ;;  %v3803_v38 = vld [vmem:[#allocation9 + $0xb40] sm:$0xff] }
 0x893   : > { %v7790_v42 = vpop.eup %7789  ;;  %v5575_v43 = vpop.f32.mrb[51].mxu0  ;;  %7795 = vrcp.f32 %v2865_v61  ;;  %v3786_v61 = vld [vmem:[#allocation9 + $0xab8] sm:$0xff] }
 0x894   : > { %v3526_v16 = vpop.f32.mrb[25].mxu1  ;;  %v3315_v54 = vadd.f32 1e-05, %v7790_v42  ;;  %v5576_v58 = vadd.f32 %v5575_v43, %v5574_v39  ;;  %v7792_v33 = vpop.eup %7791  ;;  %v3804_v39 = vld [vmem:[#allocation9 + $0xb48] sm:$0xff] }
 0x895   : > { %v3527_v49 = vadd.f32 %v3526_v16, %v3452_v41  ;;  %v2867_v52 = vmul.f32 %v7792_v33, %v8874_v30  ;;  %v3818_v41 = vld [vmem:[#allocation9 + $0xbb8] sm:$0xff]  ;;  %v7369_v43 = vpack.c.bf16 %v3804_v39, %v3803_v38  ;;  %v3788_v16 = vld [vmem:[#allocation9 + $0xac8] sm:$0xff]  ;;  %v4029_v39 = vld [vmem:[#allocation12 + $0xb88] sm:$0xff] }
 0x896   : > { %7797 = vrcp.f32 %v3315_v54  ;;  %v3457_v44 = vadd.f32 %v5576_v58, %v4841_v36  ;;  %v3785_v36 = vld [vmem:[#allocation9 + $0xab0] sm:$0xff]  ;;  %v4028_v38 = vld [vmem:[#allocation12 + $0xb80] sm:$0xff] }
 0x897   : > { %v8934_v48 = vsub.f32 %v8901_v50, %v3527_v49  ;;  %v7367_v42 = vpack.c.bf16 %v3786_v61, %v3785_v36  ;;  %v3805_v58 = vld [vmem:[#allocation9 + $0xb50] sm:$0xff]  ;;  %v3806_v49 = vld [vmem:[#allocation9 + $0xb58] sm:$0xff] }
 0x898   : > { %v3532_v31 = vadd.f32 %v6262_v40, %v3457_v44  ;;  %v3817_v40 = vld [vmem:[#allocation9 + $0xbb0] sm:$0xff]  ;;  %v3819_v44 = vld [vmem:[#allocation9 + $0xbc0] sm:$0xff]  ;;  %v3998_v61 = vld [vmem:[#allocation12 + $0xa90] sm:$0xff] }
 0x899   : > { %3537 = vst [vmem:[#allocation3 + $0x5] sm:$0xff] %v8934_v48  ;;  %3666 = vmatprep.mubr.f32.mxu0 %v8934_v48  ;;  %v7397_v54 = vpack.c.bf16 %v3818_v41, %v3817_v40  ;;  %v7449_v40 = vpack.c.bf16 %v4029_v39, %v4028_v38  ;;  %v4017_v41 = vld [vmem:[#allocation12 + $0xb28] sm:$0xff] }
 0x89a   : > { %v8939_v60 = vsub.f32 %v8908_v55, %v3532_v31  ;;  %v3820_v31 = vld [vmem:[#allocation9 + $0xbc8] sm:$0xff] }
 0x89b   : > { %v7401_v1 = vpack.c.bf16 %v3820_v31, %v3819_v44  ;;  %v4018_v44 = vld [vmem:[#allocation12 + $0xb30] sm:$0xff]  ;;  %v4019_v31 = vld [vmem:[#allocation12 + $0xb38] sm:$0xff] }
 0x89c   : > { %v7794_v47 = vpop.eup %7793  ;;  %3538 = vst [vmem:[#allocation3 + $0xd] sm:$0xff] %v8939_v60 }
 0x89d   : > { %v3317_v50 = vmul.f32 %v7794_v47, %v8904_v53  ;;  %v7796_v3 = vpop.eup %7795  ;;  %v7359_v53 = vpack.c.bf16 %v3782_v17, %v3781_v7  ;;  %v3821_v47 = vld [vmem:[#allocation9 + $0xbd0] sm:$0xff] }
 0x89e   : > { %v2869_v27 = vmul.f32 %v7796_v3, %v8879_v32  ;;  %v3815_v32 = vld [vmem:[#allocation9 + $0xba0] sm:$0xff]  ;;  %v3809_v17 = vld [vmem:[#allocation9 + $0xb70] sm:$0xff] }
 0x89f   : > { %v8944_v24 = vadd.f32 %v3317_v50, %v2867_v52  ;;  %v3822_v52 = vld [vmem:[#allocation9 + $0xbd8] sm:$0xff]  ;;  %v3791_v3 = vld [vmem:[#allocation9 + $0xae0] sm:$0xff] }
 0x8a0   : > { %v3539_v55 = vld [vmem:[#allocation3 + $0x2] sm:$0xff]  ;;  %v7798_v10 = vpop.eup %7797  ;;  %v7405_v7 = vpack.c.bf16 %v3822_v52, %v3821_v47  ;;  %v4021_v52 = vld [vmem:[#allocation12 + $0xb48] sm:$0xff] }
 0x8a1   : > { %3667 = vmatmul.mubr.f32.vlgmr.msra.gmra.mrb[52].mxu0 %v3539_v55  ;;  %v3319_v30 = vmul.f32 %v7798_v10, %v8911_v57  ;;  %v3816_v57 = vld [vmem:[#allocation9 + $0xba8] sm:$0xff]  ;;  %v3810_v55 = vld [vmem:[#allocation9 + $0xb78] sm:$0xff] }
 0x8a2   : > { %7356 = vmatpush3.bf16.msra.mxu0 %v7355_v2  ;;  %3671 = vmatprep.mubr.f32.mxu0 %v8939_v60  ;;  %v7393_v37 = vpack.c.bf16 %v3816_v57, %v3815_v32  ;;  %v7377_v2 = vpack.c.bf16 %v3808_v63, %v3807_v51  ;;  %v7381_v18 = vpack.c.bf16 %v3810_v55, %v3809_v17  ;;  %v3997_v32 = vld [vmem:[#allocation12 + $0xa88] sm:$0xff]  ;;  %v4020_v47 = vld [vmem:[#allocation12 + $0xb40] sm:$0xff]  ;;  %v4035_v17 = vld [vmem:[#allocation12 + $0xbb8] sm:$0xff] }
 0x8a3   : > { %7358 = vmatprep.subr.bf16.mxu0 %v7357_v6  ;;  %v8949_v35 = vadd.f32 %v3319_v30, %v2869_v27  ;;  %v3543_v13 = vld [vmem:[#allocation3 + $0x8] sm:$0xff]  ;;  %v3544_v5 = vld [vmem:[#allocation3 + $0x10] sm:$0xff]  ;;  %v3794_v27 = vld [vmem:[#allocation9 + $0xaf8] sm:$0xff]  ;;  %v7409_v30 = vpack.c.bf16 %v3824_v8, %v3823_v4 }
 0x8a4   : > { %v3540_v46 = vld [vmem:[#allocation3 + $0xa] sm:$0xff]  ;;  %6295 = vmatprep.mubr.f32.mxu1 %v3543_v13  ;;  %v4022_v4 = vld [vmem:[#allocation12 + $0xb50] sm:$0xff]  ;;  %v4023_v8 = vld [vmem:[#allocation12 + $0xb58] sm:$0xff] }
 0x8a5   : > { %3672 = vmatmul.mubr.f32.gmra.mrb[54].mxu0 %v3540_v46  ;;  %6296 = vmatmul.mubr.f32.vlgmr.msra.gmra.mrb[26].mxu1 %v3544_v5  ;;  %v3792_v6 = vld [vmem:[#allocation9 + $0xae8] sm:$0xff]  ;;  %v4013_v46 = vld [vmem:[#allocation12 + $0xb08] sm:$0xff] }
 0x8a6   : > { %7360 = vmatpush3.bf16.msra.mxu0 %v7359_v53  ;;  %7388 = vmatpush3.bf16.msra.mxu1 %v8928_v11  ;;  %v3787_v11 = vld [vmem:[#allocation9 + $0xac0] sm:$0xff]  ;;  %v7379_v10 = vpack.c.bf16 %v3792_v6, %v3791_v3  ;;  %v3825_v53 = vld [vmem:[#allocation9 + $0xbf0] sm:$0xff]  ;;  %v4012_v13 = vld [vmem:[#allocation12 + $0xb00] sm:$0xff] }
 0x8a7   : > { %7362 = vmatprep.subr.bf16.mxu0 %v7361_v20  ;;  %7390 = vmatprep.subr.bf16.mxu1 %v7389_v15  ;;  %v7371_v33 = vpack.c.bf16 %v3788_v16, %v3787_v11  ;;  %v7383_v20 = vpack.c.bf16 %v3794_v27, %v3793_v26  ;;  %v7413_v21 = vpack.c.bf16 %v3826_v19, %v3825_v53  ;;  %v4001_v11 = vld [vmem:[#allocation12 + $0xaa8] sm:$0xff]  ;;  %v4030_v16 = vld [vmem:[#allocation12 + $0xb90] sm:$0xff]  ;;  %v4007_v26 = vld [vmem:[#allocation12 + $0xad8] sm:$0xff] }
 0x8a8   : > { %3899 = vmatprep.mubr.f32.mxu0 %v8915_v12  ;;  %6330 = vmatprep.mubr.f32.mxu1 %v8925_v14  ;;  %v7373_v12 = vpack.c.bf16 %v3806_v49, %v3805_v58  ;;  %v3790_v14 = vld [vmem:[#allocation9 + $0xad8] sm:$0xff]  ;;  %v7417_v5 = vpack.c.bf16 %v4013_v46, %v4012_v13  ;;  %v4031_v58 = vld [vmem:[#allocation12 + $0xb98] sm:$0xff]  ;;  %v4033_v51 = vld [vmem:[#allocation12 + $0xba8] sm:$0xff] }
 0x8a9   : > { %v7375_v50 = vpack.c.bf16 %v3790_v14, %v3789_v62  ;;  %v7453_v49 = vpack.c.bf16 %v4031_v58, %v4030_v16  ;;  %v4003_v62 = vld [vmem:[#allocation12 + $0xab8] sm:$0xff]  ;;  %v4032_v14 = vld [vmem:[#allocation12 + $0xba0] sm:$0xff]  ;;  %v4005_v3 = vld [vmem:[#allocation12 + $0xac8] sm:$0xff] }
 0x8aa   : > { %7364 = vmatpush3.bf16.msra.mxu0 %v7363_v29  ;;  %7392 = vmatpush3.bf16.msra.mxu1 %v7389_v15  ;;  %v3996_v15 = vld [vmem:[#allocation12 + $0xa80] sm:$0xff]  ;;  %v4014_v29 = vld [vmem:[#allocation12 + $0xb10] sm:$0xff]  ;;  %v7457_v63 = vpack.c.bf16 %v4033_v51, %v4032_v14  ;;  %v4037_v53 = vld [vmem:[#allocation12 + $0xbc8] sm:$0xff] }
 0x8ab   : > { %7366 = vmatprep.subr.bf16.mxu0 %v7365_v34  ;;  %7394 = vmatprep.subr.bf16.mxu1 %v7393_v37  ;;  %v7419_v57 = vpack.c.bf16 %v3997_v32, %v3996_v15  ;;  %v4015_v34 = vld [vmem:[#allocation12 + $0xb18] sm:$0xff]  ;;  %v4034_v6 = vld [vmem:[#allocation12 + $0xbb0] sm:$0xff]  ;;  %v4036_v27 = vld [vmem:[#allocation12 + $0xbc0] sm:$0xff] }
 0x8ac   : > { %v7421_v36 = vpack.c.bf16 %v4015_v34, %v4014_v29  ;;  %v7461_v55 = vpack.c.bf16 %v4035_v17, %v4034_v6  ;;  %v7465_v19 = vpack.c.bf16 %v4037_v53, %v4036_v27  ;;  %v4009_v13 = vld [vmem:[#allocation12 + $0xae8] sm:$0xff]  ;;  %v4038_v46 = vld [vmem:[#allocation12 + $0xbd0] sm:$0xff]  ;;  %v4039_v15 = vld [vmem:[#allocation12 + $0xbd8] sm:$0xff] }
 0x8ad   : > { %v7469_v32 = vpack.c.bf16 %v4039_v15, %v4038_v46  ;;  %v4027_v29 = vld [vmem:[#allocation12 + $0xb78] sm:$0xff]  ;;  %v4842_v58 = vld [vmem:[#allocation13 + $0x6] ss:$0 sm:$0xff]  ;;  %v4832_v46 = vmul.f32 -0.25, %v8889_v59 }
 0x8ae   : > { %7368 = vmatpush3.bf16.msra.mxu0 %v7367_v42  ;;  %7396 = vmatpush3.bf16.msra.mxu1 %v7393_v37  ;;  %v3999_v37 = vld [vmem:[#allocation12 + $0xa98] sm:$0xff] }
 0x8af   : > { %7370 = vmatprep.subr.bf16.mxu0 %v7369_v43  ;;  %7398 = vmatprep.subr.bf16.mxu1 %v7397_v54  ;;  %v4000_v43 = vld [vmem:[#allocation12 + $0xaa0] sm:$0xff] }
 0x8b2   : > { %7372 = vmatpush3.bf16.msra.mxu0 %v7371_v33  ;;  %7400 = vmatpush3.bf16.msra.mxu1 %v7397_v54  ;;  %v7427_v54 = vpack.c.bf16 %v4001_v11, %v4000_v43  ;;  %v7429_v33 = vpack.c.bf16 %v4019_v31, %v4018_v44  ;;  %v4043_v43 = vld [vmem:[#allocation12 + $0xbf8] sm:$0xff] }
 0x8b3   : > { %7374 = vmatprep.subr.bf16.mxu0 %v7373_v12  ;;  %7402 = vmatprep.subr.bf16.mxu1 %v7401_v1  ;;  %v4002_v12 = vld [vmem:[#allocation12 + $0xab0] sm:$0xff] }
 0x8b6   : > { %7376 = vmatpush3.bf16.msra.mxu0 %v7375_v50  ;;  %7404 = vmatpush3.bf16.msra.mxu1 %v7401_v1  ;;  %v7431_v1 = vpack.c.bf16 %v4003_v62, %v4002_v12  ;;  %v7433_v50 = vpack.c.bf16 %v4021_v52, %v4020_v47  ;;  %v4831_v52 = vmul.f32 -0.25, %v8884_v45 }
 0x8b7   : > { %7378 = vmatprep.subr.bf16.mxu0 %v7377_v2  ;;  %7406 = vmatprep.subr.bf16.mxu1 %v7405_v7  ;;  %v4004_v2 = vld [vmem:[#allocation12 + $0xac0] sm:$0xff] }
 0x8ba   : > { %7380 = vmatpush3.bf16.msra.mxu0 %v7379_v10  ;;  %7408 = vmatpush3.bf16.msra.mxu1 %v7405_v7  ;;  %v7435_v7 = vpack.c.bf16 %v4005_v3, %v4004_v2  ;;  %v7437_v10 = vpack.c.bf16 %v4023_v8, %v4022_v4  ;;  %v2404_v2 = vmul.f32 1.442695, %v4831_v52  ;;  %v4252_v52 = vld [vmem:[%s9181_s29 + $0x60] sm:$0xff] }
 0x8bb   : > { %7382 = vmatprep.subr.bf16.mxu0 %v7381_v18  ;;  %7410 = vmatprep.subr.bf16.mxu1 %v7409_v30  ;;  %v4006_v18 = vld [vmem:[#allocation12 + $0xad0] sm:$0xff] }
 0x8be   : > { %7384 = vmatpush3.bf16.msra.mxu0 %v7383_v20  ;;  %7412 = vmatpush3.bf16.msra.mxu1 %v7409_v30  ;;  %v7439_v30 = vpack.c.bf16 %v4007_v26, %v4006_v18  ;;  %v4024_v20 = vld [vmem:[#allocation12 + $0xb60] sm:$0xff]  ;;  %v4845_v18 = vld [vmem:[#allocation10 + $0x7] ss:$0 sm:$0xff] }
 0x8bf   : > { %7414 = vmatprep.subr.bf16.mxu1 %v7413_v21  ;;  %7418 = vmatprep.subr.bf16.mxu0 %v7417_v5 }
 0x8c1   : > { %3900 = vmatmul.mubr.f32.vlgmr.msra.gmra.mrb[56].mxu0 %v3772_v22 }
 0x8c2   : > { %3904 = vmatprep.mubr.f32.mxu0 %v8922_v9  ;;  %7416 = vmatpush3.bf16.msra.mxu1 %v7413_v21  ;;  %v7423_v9 = vpack.c.bf16 %v3999_v37, %v3998_v61  ;;  %v4025_v21 = vld [vmem:[#allocation12 + $0xb68] sm:$0xff]  ;;  %v4011_v61 = vld [vmem:[#allocation12 + $0xaf8] sm:$0xff]  ;;  %v4040_v37 = vld [vmem:[#allocation12 + $0xbe0] sm:$0xff] }
 0x8c3   : > { %7420 = vmatpush3.bf16.msra.mxu0 %v7419_v57  ;;  %7450 = vmatprep.subr.bf16.mxu1 %v7449_v40  ;;  %v7441_v22 = vpack.c.bf16 %v4025_v21, %v4024_v20  ;;  %v4026_v57 = vld [vmem:[#allocation12 + $0xb70] sm:$0xff] }
 0x8c4   : > { %7422 = vmatprep.subr.bf16.mxu0 %v7421_v36  ;;  %v7445_v34 = vpack.c.bf16 %v4027_v29, %v4026_v57  ;;  %v4010_v36 = vld [vmem:[#allocation12 + $0xaf0] sm:$0xff] }
 0x8c5   : > { %3905 = vmatmul.mubr.f32.gmra.mrb[58].mxu0 %v8917_v56  ;;  %6331 = vmatmul.mubr.f32.vlgmr.msra.gmra.mrb[28].mxu1 %v3777_v23  ;;  %v4016_v56 = vld [vmem:[#allocation12 + $0xb20] sm:$0xff]  ;;  %v7447_v38 = vpack.c.bf16 %v4011_v61, %v4010_v36 }
 0x8c6   : > { %v7425_v42 = vpack.c.bf16 %v4017_v41, %v4016_v56  ;;  %7452 = vmatpush3.bf16.msra.mxu1 %v7449_v40  ;;  %v4008_v23 = vld [vmem:[#allocation12 + $0xae0] sm:$0xff]  ;;  %v4240_v40 = vld [vmem:[%s9181_s29] sm:$0xff] }
 0x8c7   : > { %7424 = vmatpush3.bf16.msra.mxu0 %v7423_v9  ;;  %7454 = vmatprep.subr.bf16.mxu1 %v7453_v49  ;;  %v7443_v5 = vpack.c.bf16 %v4009_v13, %v4008_v23  ;;  %v4041_v9 = vld [vmem:[#allocation12 + $0xbe8] sm:$0xff]  ;;  %v4241_v56 = vld [vmem:[%s9181_s29 + $0x8] sm:$0xff] }
 0x8c8   : > { %7426 = vmatprep.subr.bf16.mxu0 %v7425_v42  ;;  %v7473_v39 = vpack.c.bf16 %v4041_v9, %v4040_v37  ;;  %v8962_v41 = vpack.c.bf16 %v4241_v56, %v4240_v40  ;;  %v4042_v42 = vld [vmem:[#allocation12 + $0xbf0] sm:$0xff]  ;;  %v8974_v36 = vld [vmem:[#allocation2 + $0xd] sm:$0xff] }
 0x8c9   : > { %v7477_v11 = vpack.c.bf16 %v4043_v43, %v4042_v42  ;;  %v4242_v37 = vld [vmem:[%s9181_s29 + $0x10] sm:$0xff] }
 0x8ca   : > { %7456 = vmatpush3.bf16.msra.mxu1 %v7453_v49 }
 0x8cb   : > { %7428 = vmatpush3.bf16.msra.mxu0 %v7427_v54  ;;  %7458 = vmatprep.subr.bf16.mxu1 %v7457_v63 }
 0x8cc   : > { %7430 = vmatprep.subr.bf16.mxu0 %v7429_v33 }
 0x8ce   : > { %7460 = vmatpush3.bf16.msra.mxu1 %v7457_v63 }
 0x8cf   : > { %7432 = vmatpush3.bf16.msra.mxu0 %v7431_v1  ;;  %7462 = vmatprep.subr.bf16.mxu1 %v7461_v55 }
 0x8d0   : > { %7434 = vmatprep.subr.bf16.mxu0 %v7433_v50 }
 0x8d2   : > { %7464 = vmatpush3.bf16.msra.mxu1 %v7461_v55 }
 0x8d3   : > { %7436 = vmatpush3.bf16.msra.mxu0 %v7435_v7  ;;  %7466 = vmatprep.subr.bf16.mxu1 %v7465_v19 }
 0x8d4   : > { %7438 = vmatprep.subr.bf16.mxu0 %v7437_v10 }
 0x8d6   : > { %7468 = vmatpush3.bf16.msra.mxu1 %v7465_v19 }
 0x8d7   : > { %7440 = vmatpush3.bf16.msra.mxu0 %v7439_v30  ;;  %7470 = vmatprep.subr.bf16.mxu1 %v7469_v32 }
 0x8d8   : > { %7442 = vmatprep.subr.bf16.mxu0 %v7441_v22 }
 0x8da   : > { %7472 = vmatpush3.bf16.msra.mxu1 %v7469_v32  ;;  %v8967_v32 = vld [vmem:[#allocation2 + $0x5] sm:$0xff] }
 0x8db   : > { %7444 = vmatpush3.bf16.msra.mxu0 %v7443_v5  ;;  %7474 = vmatprep.subr.bf16.mxu1 %v7473_v39 }
 0x8dc   : > { %7446 = vmatprep.subr.bf16.mxu0 %v7445_v34  ;;  %v2406_v34 = vmul.f32 1.442695, %v4832_v46 }
 0x8de   : > { %7476 = vmatpush3.bf16.msra.mxu1 %v7473_v39 }
 0x8df   : > { %7448 = vmatpush3.bf16.msra.mxu0 %v7447_v38  ;;  %7478 = vmatprep.subr.bf16.mxu1 %v7477_v11  ;;  %v4243_v38 = vld [vmem:[%s9181_s29 + $0x18] sm:$0xff] }
 0x8e0   : > { %7482 = vmatprep.subr.bf16.mxu0 %v8962_v41  ;;  %v7485_v40 = vpack.c.bf16 %v4243_v38, %v4242_v37 }
 0x8e2   : > { %7480 = vmatpush3.bf16.msra.mxu1 %v7477_v11 }
 0x974   : > { %v5627_v16 = vpop.f32.mrb[52].mxu0 }
 0x975   : > { %v5628_v54 = vpop.f32.mrb[53].mxu0 }
 0x976   : > { %v5629_v49 = vadd.f32 %v5628_v54, %v5627_v16  ;;  %v4244_v16 = vld [vmem:[%s9181_s29 + $0x20] sm:$0xff]  ;;  %v4245_v54 = vld [vmem:[%s9181_s29 + $0x28] sm:$0xff] }
 0x978   : > { %v5630_v44 = vpop.f32.mrb[54].mxu0  ;;  %v3669_v31 = vadd.f32 %v5629_v49, %v4842_v58  ;;  %v6297_v33 = vpop.f32.mrb[26].mxu1 }
 0x979   : > { %v5631_v12 = vpop.f32.mrb[55].mxu0  ;;  %v3743_v14 = vpop.f32.mrb[27].mxu1 }
 0x97a   : > { %v5632_v62 = vadd.f32 %v5631_v12, %v5630_v44  ;;  %v3744_v1 = vadd.f32 %v3743_v14, %v3669_v31  ;;  %v7489_v31 = vpack.c.bf16 %v4245_v54, %v4244_v16 }
 0x97c   : > { %v3674_v51 = vadd.f32 %v5632_v62, %v4842_v58  ;;  %v4843_v63 = vmul.f32 -1.442695, %v3744_v1  ;;  %v4248_v62 = vld [vmem:[%s9181_s29 + $0x40] sm:$0xff] }
 0x97e   : > { %v3749_v47 = vadd.f32 %v6297_v33, %v3674_v51  ;;  %7799 = vpow2.f32 %v4843_v63  ;;  %v4250_v51 = vld [vmem:[%s9181_s29 + $0x50] sm:$0xff]  ;;  %v4251_v63 = vld [vmem:[%s9181_s29 + $0x58] sm:$0xff] }
 0x980   : > { %v4844_v50 = vmul.f32 -1.442695, %v3749_v47  ;;  %v7501_v47 = vpack.c.bf16 %v4251_v63, %v4250_v51 }
 0x982   : > { %7801 = vpow2.f32 %v4844_v50  ;;  %v4253_v50 = vld [vmem:[%s9181_s29 + $0x68] sm:$0xff] }
 0x983   : > { %7803 = vpow2.f32 %v2404_v2  ;;  %v7505_v2 = vpack.c.bf16 %v4253_v50, %v4252_v52 }
 0x988   : > { %v7800_v3 = vpop.eup %7799 }
 0x989   : > { %v3758_v6 = vadd.f32 1.0, %v7800_v3  ;;  %v4254_v3 = vld [vmem:[%s9181_s29 + $0x70] sm:$0xff] }
 0x98b   : > { %7805 = vrcp.f32 %v3758_v6  ;;  %v4255_v6 = vld [vmem:[%s9181_s29 + $0x78] sm:$0xff] }
 0x98c   : > { %v7802_v7 = vpop.eup %7801 }
 0x98d   : > { %v3759_v17 = vadd.f32 1.0, %v7802_v7  ;;  %v7804_v55 = vpop.eup %7803  ;;  %v7509_v7 = vpack.c.bf16 %v4255_v6, %v4254_v3 }
 0x98e   : > { %v2408_v8 = vadd.f32 1.0, %v7804_v55 }
 0x98f   : > { %7807 = vrcp.f32 %v3759_v17 }
 0x990   : > { %7809 = vrcp.f32 %v2408_v8  ;;  %v4338_v8 = vld [vmem:[#allocation16] sm:$0xff] }
 0x994   : > { %v5683_v4 = vpop.f32.mrb[56].mxu0 }
 0x995   : > { %v5684_v10 = vpop.f32.mrb[57].mxu0  ;;  %v7806_v26 = vpop.eup %7805 }
 0x996   : > { %v5685_v27 = vadd.f32 %v5684_v10, %v5683_v4  ;;  %v3764_v30 = vadd.f32 1e-05, %v7806_v26  ;;  %v4339_v10 = vld [vmem:[#allocation16 + $0x8] sm:$0xff]  ;;  %v4340_v26 = vld [vmem:[#allocation16 + $0x10] sm:$0xff] }
 0x998   : > { %v5686_v53 = vpop.f32.mrb[58].mxu0  ;;  %v3902_v45 = vadd.f32 %v5685_v27, %v4845_v18  ;;  %7811 = vrcp.f32 %v3764_v30  ;;  %v6332_v20 = vpop.f32.mrb[28].mxu1  ;;  %v4341_v27 = vld [vmem:[#allocation16 + $0x18] sm:$0xff] }
 0x999   : > { %v7808_v19 = vpop.eup %7807  ;;  %v5687_v21 = vpop.f32.mrb[59].mxu0  ;;  %v7517_v30 = vpack.c.bf16 %v4341_v27, %v4340_v26 }
 0x99a   : > { %v3765_v22 = vadd.f32 1e-05, %v7808_v19  ;;  %v5688_v23 = vadd.f32 %v5687_v21, %v5686_v53  ;;  %v3976_v13 = vpop.f32.mrb[29].mxu1  ;;  %v7810_v59 = vpop.eup %7809  ;;  %v4342_v53 = vld [vmem:[#allocation16 + $0x20] sm:$0xff]  ;;  %v4345_v21 = vld [vmem:[#allocation16 + $0x38] sm:$0xff] }
 0x99b   : > { %v3977_v5 = vadd.f32 %v3976_v13, %v3902_v45  ;;  %v2414_v11 = vmul.f32 %v8809_v25, %v7810_v59  ;;  %v4343_v45 = vld [vmem:[#allocation16 + $0x28] sm:$0xff]  ;;  %v4846_v13 = vld [vmem:[#allocation13 + $0x7] ss:$0 sm:$0xff] }
 0x99c   : > { %7813 = vrcp.f32 %v3765_v22  ;;  %v3907_v15 = vadd.f32 %v5688_v23, %v4845_v18  ;;  %v7513_v18 = vpack.c.bf16 %v4339_v10, %v4338_v8  ;;  %v7521_v19 = vpack.c.bf16 %v4343_v45, %v4342_v53 }
 0x99d   : > { %v8970_v57 = vsub.f32 %v8967_v32, %v3977_v5  ;;  %7815 = vpow2.f32 %v2406_v34  ;;  %v2416_v33 = vadd.f32 %v8809_v25, %v2414_v11  ;;  %v4249_v25 = vld [vmem:[%s9181_s29 + $0x48] sm:$0xff] }
 0x99e   : > { %v3982_v29 = vadd.f32 %v6332_v20, %v3907_v15  ;;  %v7497_v1 = vpack.c.bf16 %v4249_v25, %v4248_v62  ;;  %7514 = vmatprep.subr.bf16.mxu1 %v7513_v18  ;;  %v4344_v20 = vld [vmem:[#allocation16 + $0x30] sm:$0xff] }
 0x99f   : > { %3987 = vst [vmem:[#allocation3 + $0x5] sm:$0xff] %v8970_v57  ;;  %4116 = vmatprep.mubr.f32.mxu0 %v8970_v57  ;;  %v7525_v22 = vpack.c.bf16 %v4345_v21, %v4344_v20 }
 0x9a0   : > { %v8977_v61 = vsub.f32 %v8974_v36, %v3982_v29 }
 0x9a2   : > { %3988 = vst [vmem:[#allocation3 + $0xd] sm:$0xff] %v8977_v61  ;;  %v7812_v9 = vpop.eup %7811 }
 0x9a3   : > { %v3767_v39 = vmul.f32 %v7812_v9, %v8934_v48 }
 0x9a5   : > { %v8988_v42 = vadd.f32 %v3767_v39, %v8944_v24 }
 0x9a6   : > { %v7814_v56 = vpop.eup %7813  ;;  %v3989_v43 = vld [vmem:[#allocation3] sm:$0xff] }
 0x9a7   : > { %v3769_v58 = vmul.f32 %v7814_v56, %v8939_v60  ;;  %4117 = vmatmul.mubr.f32.vlgmr.msra.gmra.mrb[60].mxu0 %v3989_v43  ;;  %v4246_v60 = vld [vmem:[%s9181_s29 + $0x30] sm:$0xff] }
 0x9a8   : > { %7484 = vmatpush3.bf16.msra.mxu0 %v8962_v41  ;;  %4121 = vmatprep.mubr.f32.mxu0 %v8977_v61  ;;  %v4247_v41 = vld [vmem:[%s9181_s29 + $0x38] sm:$0xff] }
 0x9a9   : > { %v9001_v48 = vadd.f32 %v3769_v58, %v8949_v35  ;;  %v3993_v24 = vld [vmem:[#allocation3 + $0xa] sm:$0xff]  ;;  %7486 = vmatprep.subr.bf16.mxu0 %v7485_v40  ;;  %v3994_v44 = vld [vmem:[#allocation3 + $0x12] sm:$0xff]  ;;  %v7816_v35 = vpop.eup %7815  ;;  %v7493_v12 = vpack.c.bf16 %v4247_v41, %v4246_v60 }
 0x9aa   : > { %v3990_v49 = vld [vmem:[#allocation3 + $0x8] sm:$0xff]  ;;  %6365 = vmatprep.mubr.f32.mxu1 %v3993_v24  ;;  %v2409_v14 = vadd.f32 1.0, %v7816_v35  ;;  %v4851_v58 = vld [vmem:[#allocation15] ss:$0 sm:$0xff] }
 0x9ab   : > { %4122 = vmatmul.mubr.f32.gmra.mrb[62].mxu0 %v3990_v49  ;;  %6366 = vmatmul.mubr.f32.vlgmr.msra.gmra.mrb[30].mxu1 %v3994_v44 }
 0x9ac   : > { %7488 = vmatpush3.bf16.msra.mxu0 %v7485_v40  ;;  %6400 = vmatprep.mubr.f32.mxu0 %v2416_v33  ;;  %7817 = vrcp.f32 %v2409_v14 }
 0x9ad   : > { %7490 = vmatprep.subr.bf16.mxu0 %v7489_v31  ;;  %7516 = vmatpush3.bf16.msra.mxu1 %v7513_v18 }
 0x9ae   : > { %7518 = vmatprep.subr.bf16.mxu1 %v7517_v30 }
 0x9b0   : > { %7492 = vmatpush3.bf16.msra.mxu0 %v7489_v31 }
 0x9b1   : > { %7494 = vmatprep.subr.bf16.mxu0 %v7493_v12  ;;  %7520 = vmatpush3.bf16.msra.mxu1 %v7517_v30 }
 0x9b2   : > { %7522 = vmatprep.subr.bf16.mxu1 %v7521_v19 }
 0x9b4   : > { %7496 = vmatpush3.bf16.msra.mxu0 %v7493_v12 }
 0x9b5   : > { %7498 = vmatprep.subr.bf16.mxu0 %v7497_v1  ;;  %7524 = vmatpush3.bf16.msra.mxu1 %v7521_v19 }
 0x9b6   : > { %v7818_v17 = vpop.eup %7817  ;;  %7526 = vmatprep.subr.bf16.mxu1 %v7525_v22 }
 0x9b7   : > { %v2415_v55 = vmul.f32 %v8816_v28, %v7818_v17 }
 0x9b8   : > { %7500 = vmatpush3.bf16.msra.mxu0 %v7497_v1 }
 0x9b9   : > { %7502 = vmatprep.subr.bf16.mxu0 %v7501_v47  ;;  %v2417_v4 = vadd.f32 %v8816_v28, %v2415_v55  ;;  %7528 = vmatpush3.bf16.msra.mxu1 %v7525_v22 }
 0x9bc   : > { %7504 = vmatpush3.bf16.msra.mxu0 %v7501_v47 }
 0x9bd   : > { %7506 = vmatprep.subr.bf16.mxu0 %v7505_v2 }
 0x9c0   : > { %7508 = vmatpush3.bf16.msra.mxu0 %v7505_v2 }
 0x9c1   : > { %7510 = vmatprep.subr.bf16.mxu0 %v7509_v7 }
 0x9c4   : > { %7512 = vmatpush3.bf16.msra.mxu0 %v7509_v7 }
 0x9c7   : > { %6401 = vmatmul.mubr.f32.vlgmr.msra.gmra.mrb[64].mxu0 %v2417_v4 }
 0xa7a   : > { %v5739_v28 = vpop.f32.mrb[60].mxu0 }
 0xa7b   : > { %v5740_v23 = vpop.f32.mrb[61].mxu0 }
 0xa7c   : > { %v5741_v46 = vadd.f32 %v5740_v23, %v5739_v28 }
 0xa7e   : > { %v5742_v5 = vpop.f32.mrb[62].mxu0  ;;  %v6367_v15 = vpop.f32.mrb[30].mxu1  ;;  %v4119_v29 = vadd.f32 %v5741_v46, %v4846_v13  ;;  %v4490_v46 = vld [vmem:[#allocation19] sm:$0xff] }
 0xa7f   : > { %v5743_v34 = vpop.f32.mrb[63].mxu0  ;;  %v4193_v59 = vpop.f32.mrb[31].mxu1 }
 0xa80   : > { %v5744_v37 = vadd.f32 %v5743_v34, %v5742_v5  ;;  %v4194_v38 = vadd.f32 %v4193_v59, %v4119_v29  ;;  %v4491_v5 = vld [vmem:[#allocation19 + $0x8] sm:$0xff]  ;;  %v8283_v59 = vmov 0.0|0.0  }
 0xa81   : > { %7529 = vmatprep.subr.bf16.mxu1 %v8283_v59 }
 0xa82   : > { %v4124_v9 = vadd.f32 %v5744_v37, %v4846_v13  ;;  %v4847_v39 = vmul.f32 -1.442695, %v4194_v38  ;;  %v7530_v37 = vpack.c.bf16 %v4491_v5, %v4490_v46  ;;  %v4493_v38 = vld [vmem:[#allocation19 + $0x18] sm:$0xff] }
 0xa84   : > { %v4199_v40 = vadd.f32 %v6367_v15, %v4124_v9  ;;  %7819 = vpow2.f32 %v4847_v39  ;;  %v4492_v15 = vld [vmem:[#allocation19 + $0x10] sm:$0xff] }
 0xa86   : > { %v4848_v56 = vmul.f32 -1.442695, %v4199_v40  ;;  %v7533_v40 = vpack.c.bf16 %v4493_v38, %v4492_v15 }
 0xa88   : > { %7821 = vpow2.f32 %v4848_v56  ;;  %v4494_v56 = vld [vmem:[#allocation19 + $0x20] sm:$0xff] }
 0xa8e   : > { %v7820_v43 = vpop.eup %7819 }
 0xa8f   : > { %v4208_v11 = vadd.f32 1.0, %v7820_v43  ;;  %v4495_v43 = vld [vmem:[#allocation19 + $0x28] sm:$0xff] }
 0xa91   : > { %7823 = vrcp.f32 %v4208_v11 }
 0xa92   : > { %v7822_v16 = vpop.eup %7821 }
 0xa93   : > { %v4209_v54 = vadd.f32 1.0, %v7822_v16  ;;  %v7536_v16 = vpack.c.bf16 %v4495_v43, %v4494_v56 }
 0xa95   : > { %7825 = vrcp.f32 %v4209_v54  ;;  %v4496_v54 = vld [vmem:[#allocation19 + $0x30] sm:$0xff] }
 0xa9a   : > { %v6402_v24 = vpop.f32.mrb[64].mxu0 }
 0xa9b   : > { %v7824_v49 = vpop.eup %7823  ;;  %v4329_v44 = vpop.f32.mrb[65].mxu0  ;;  %v4335_v60 = vadd.f32 %v6402_v24, %v4851_v58 }
 0xa9c   : > { %v4214_v31 = vadd.f32 1e-05, %v7824_v49  ;;  %v4330_v33 = vadd.f32 %v4851_v58, %v4329_v44  ;;  %v4497_v58 = vld [vmem:[#allocation19 + $0x38] sm:$0xff]  ;;  %v4498_v49 = vld [vmem:[#allocation19 + $0x40] sm:$0xff]  ;;  %v4499_v44 = vld [vmem:[#allocation19 + $0x48] sm:$0xff] }
 0xa9d   : > { %v7539_v24 = vpack.c.bf16 %v4497_v58, %v4496_v54 }
 0xa9e   : > { %7827 = vrcp.f32 %v4214_v31  ;;  %6419 = vmatprep.mubr.msk.f32.mxu1 %vm4353_vm0, %v4330_v33  ;;  %v7542_v31 = vpack.c.bf16 %v4499_v44, %v4498_v49  ;;  %v4500_v33 = vld [vmem:[#allocation19 + $0x50] sm:$0xff] }
 0xa9f   : > { %v7826_v41 = vpop.eup %7825  ;;  %6420 = vmatmul.mubr.msk.f32.vlgmr.msra.gmra.mrb[32].mxu1 %vm4353_vm0, %v4335_v60  ;;  %v4501_v60 = vld [vmem:[#allocation19 + $0x58] sm:$0xff] }
 0xaa0   : > { %v4215_v35 = vadd.f32 1e-05, %v7826_v41  ;;  %7531 = vmatpush3.bf16.msra.mxu1 %v7530_v37  ;;  %6454 = vmatprep.mubr.msk.f32.mxu1 %vm8286_vm1, %v8280_v0 }
 0xaa1   : > { %7532 = vmatprep.subr.bf16.mxu1 %v8283_v59 }
 0xaa2   : > { %7829 = vrcp.f32 %v4215_v35  ;;  %v7545_v35 = vpack.c.bf16 %v4501_v60, %v4500_v33 }
 0xaa4   : > { %7534 = vmatpush3.bf16.msra.mxu1 %v7533_v40 }
 0xaa5   : > { %7535 = vmatprep.subr.bf16.mxu1 %v8283_v59 }
 0xaa8   : > { %v7828_v12 = vpop.eup %7827  ;;  %7537 = vmatpush3.bf16.msra.mxu1 %v7536_v16 }
 0xaa9   : > { %v4217_v62 = vmul.f32 %v7828_v12, %v8970_v57  ;;  %7538 = vmatprep.subr.bf16.mxu1 %v8283_v59 }
 0xaab   : > { %v4220_v25 = vadd.f32 %v4217_v62, %v8988_v42 }
 0xaac   : > { %v7830_v14 = vpop.eup %7829  ;;  %7540 = vmatpush3.bf16.msra.mxu1 %v7539_v24 }
 0xaad   : > { %v4219_v1 = vmul.f32 %v7830_v14, %v8977_v61  ;;  %v4849_v51 = vmul.f32 -0.25, %v4220_v25  ;;  %7541 = vmatprep.subr.bf16.mxu1 %v8283_v59 }
 0xaaf   : > { %v4221_v63 = vadd.f32 %v4219_v1, %v9001_v48  ;;  %v4226_v47 = vmul.f32 1.442695, %v4849_v51  ;;  %v4502_v1 = vld [vmem:[#allocation19 + $0x60] sm:$0xff]  ;;  %v4503_v51 = vld [vmem:[#allocation19 + $0x68] sm:$0xff] }
 0xab0   : > { %7543 = vmatpush3.bf16.msra.mxu1 %v7542_v31 }
 0xab1   : > { %v4850_v52 = vmul.f32 -0.25, %v4221_v63  ;;  %7831 = vpow2.f32 %v4226_v47  ;;  %7544 = vmatprep.subr.bf16.mxu1 %v8283_v59  ;;  %v7548_v63 = vpack.c.bf16 %v4503_v51, %v4502_v1 }
 0xab3   : > { %v4228_v50 = vmul.f32 1.442695, %v4850_v52  ;;  %v4504_v52 = vld [vmem:[#allocation19 + $0x70] sm:$0xff] }
 0xab4   : > { %7546 = vmatpush3.bf16.msra.mxu1 %v7545_v35 }
 0xab5   : > { %7833 = vpow2.f32 %v4228_v50  ;;  %7547 = vmatprep.subr.bf16.mxu1 %v8283_v59  ;;  %v4505_v50 = vld [vmem:[#allocation19 + $0x78] sm:$0xff] }
 0xab8   : > { %7549 = vmatpush3.bf16.msra.mxu1 %v7548_v63 }
 0xab9   : > { %7550 = vmatprep.subr.bf16.mxu1 %v8283_v59 }
 0xabb   : > { %v7832_v2 = vpop.eup %7831 }
 0xabc   : > { %v4230_v3 = vadd.f32 1.0, %v7832_v2  ;;  %v7551_v2 = vpack.c.bf16 %v4505_v50, %v4504_v52 }
 0xabe   : > { %7835 = vrcp.f32 %v4230_v3  ;;  %7552 = vmatpush3.bf16.msra.mxu1 %v7551_v2 }
 0xabf   : > { %v7834_v6 = vpop.eup %7833 }
 0xac0   : > { %v4231_v7 = vadd.f32 1.0, %v7834_v6 }
 0xac2   : > { %7837 = vrcp.f32 %v4231_v7 }
 0xac8   : > { %v7836_v57 = vpop.eup %7835 }
 0xac9   : > { %v4236_v42 = vmul.f32 %v8967_v32, %v7836_v57 }
 0xacb   : > { %v9042_v17 = vadd.f32 %v8967_v32, %v4236_v42 }
 0xacc   : > { %v7838_v61 = vpop.eup %7837 }
 0xacd   : > { %v4237_v48 = vmul.f32 %v8974_v36, %v7838_v61  ;;  %v4857_v55 = vmul.f32 -1.442695, %v9042_v17 }
 0xacf   : > { %v9047_v4 = vadd.f32 %v8974_v36, %v4237_v48  ;;  %7839 = vpow2.f32 %v4857_v55 }
 0xad1   : > { %v4858_v8 = vmul.f32 -1.442695, %v9047_v4 }
 0xad3   : > { %7841 = vpow2.f32 %v4858_v8 }
 0xad9   : > { %v7840_v10 = vpop.eup %7839 }
 0xada   : > { %v4453_v18 = vadd.f32 1.0, %v7840_v10 }
 0xadc   : > { %7843 = vrcp.f32 %v4453_v18 }
 0xadd   : > { %v7842_v26 = vpop.eup %7841 }
 0xade   : > { %v4454_v27 = vadd.f32 1.0, %v7842_v26 }
 0xae0   : > { %7845 = vrcp.f32 %v4454_v27  ;;  %v4852_v27 = vld [vmem:[#allocation18] ss:$0 sm:$0xff] }
 0xae6   : > { %v7844_v32 = vpop.eup %7843 }
 0xaea   : > { %v7846_v30 = vpop.eup %7845 }
 0xaeb   : > { %v7707_v53 = vpack.i.bf16 %v7846_v30, %v7844_v32 }
 0xaed   : > { %7708 = vrot.lane.b32.xlu0 %v7707_v53, %s8281_s12 }
 0xb5f   : > { %v7709_v45 = vpop.permute.xlu0 %7708 }
 0xb60   : > { %v7711_v19 = vunpack.i.h.bf16 %v7709_v45  ;;  %v7710_v36 = vunpack.i.l.bf16 %v7709_v45 }
 0xb62   : > { %v4464_v20 = vmax.f32 %v7846_v30, %v7711_v19  ;;  %v4463_v21 = vmax.f32 %v7844_v32, %v7710_v36 }
 0xb64   : > { %v7712_v22 = vpack.i.bf16 %v4464_v20, %v4463_v21 }
 0xb66   : > { %7713 = vrot.lane.b32.xlu0 %v7712_v22, %s8282_s8 }
 0xb72   : > { %v9051_v28 = vpop.f32.mrb[32].mxu1 }
 0xb73   : > { %v9053_v23 = vpop.f32.mrb[33].mxu1  ;;  %v4432_v32 = vadd.f32 %v9051_v28, %v4852_v27 }
 0xb74   : > { %v4427_v30 = vadd.f32 %v4852_v27, %v9053_v23 }
 0xb75   : > { %v4856_v0 = vmul.f32 -1.442695, %v4432_v32 }
 0xb76   : > { %v4855_v53 = vmul.f32 -1.442695, %v4427_v30 }
 0xb77   : > { %7847 = vpow2.f32 %v4856_v0 }
 0xb78   : > { %7849 = vpow2.f32 %v4855_v53 }
 0xb81   : > { %v7848_v45 = vpop.eup %7847 }
 0xb82   : > { %v7850_v19 = vpop.eup %7849  ;;  %v4442_v36 = vadd.f32 1.0, %v7848_v45 }
 0xb84   : > { %7851 = vrcp.f32 %v4442_v36 }
 0xbd8   : > { %v7714_v13 = vpop.permute.xlu0 %7713 }
 0xbd9   : > { %v7716_v29 = vunpack.i.h.bf16 %v7714_v13  ;;  %v7715_v34 = vunpack.i.l.bf16 %v7714_v13  ;;  %v4506_v13 = vld [vmem:[#allocation21] sm:$0x1] }
 0xbdb   : > { %v4470_v9 = vmax.f32 %v4464_v20, %v7716_v29  ;;  %v4469_v39 = vmax.f32 %v4463_v21, %v7715_v34  ;;  %v4577_v20 = vlaneseq  ;;  %v4441_v21 = vadd.f32 1.0, %v7850_v19  ;;  %v7852_v29 = vpop.eup %7851 }
 0xbdd   : > { %v7717_v11 = vpack.i.bf16 %v4470_v9, %v4469_v39  ;;  %v4578_v22 = vshrl.u32 %v4577_v20, 7  ;;  %7853 = vrcp.f32 %v4441_v21 }
 0xbdf   : > { %7718 = vrot.lane.b32.xlu1 %v7717_v11, %s8284_s3  ;;  %v4579_v46 = vsub.s32 0, %v4578_v22 }
 0xbe7   : > { %v7854_v37 = vpop.eup %7853 }
 0xc51   : > { %v7719_v41 = vpop.permute.xlu1 %7718 }
 0xc52   : > { %v7721_v12 = vunpack.i.h.bf16 %v7719_v41  ;;  %v7720_v62 = vunpack.i.l.bf16 %v7719_v41 }
 0xc54   : > { %v4476_v25 = vmax.f32 %v4470_v9, %v7721_v12  ;;  %v4475_v14 = vmax.f32 %v4469_v39, %v7720_v62 }
 0xc56   : > { %v7722_v47 = vpack.i.bf16 %v4476_v25, %v4475_v14 }
 0xc58   : > { %7723 = vrot.lane.b32.xlu1 %v7722_v47, %s8285_s7 }
 0xcca   : > { %v7724_v3 = vpop.permute.xlu1 %7723 }
 0xccb   : > { %v7726_v6 = vunpack.i.h.bf16 %v7724_v3  ;;  %v7725_v7 = vunpack.i.l.bf16 %v7724_v3 }
 0xccd   : > { %v4482_v57 = vmax.f32 %v4476_v25, %v7726_v6  ;;  %v4481_v42 = vmax.f32 %v4475_v14, %v7725_v7 }
 0xccf   : > { %v4483_v61 = vmax.f32 %v4481_v42, %v4482_v57 }
 0xcd1   : > { %v4484_v48 = vrot.slane %v4483_v61, 4 }
 0xcd3   : > { %v4485_v55 = vmax.f32 %v4483_v61, %v4484_v48 }
 0xcd5   : > { %v4486_v8 = vrot.slane %v4485_v55, 2 }
 0xcd7   : > { %v4487_v10 = vmax.f32 %v4485_v55, %v4486_v8 }
 0xcd9   : > { %v4488_v18 = vrot.slane %v4487_v10, 1 }
 0xcdb   : > { %v4489_v26 = vmax.f32 %v4487_v10, %v4488_v18 }
 0xcdd   : > { %6455 = vmatmul.mubr.f32.vlgmr.msra.gmra.mrb[34].mxu1 %v4489_v26 }
 0xdb0   : > { %v4573_v5 = vpop.f32.mrb[34].mxu1 }
 0xdb1   : > { %v4574_v28 = vadd.f32 %v4573_v5, %v4506_v13  ;;  %v6456_v15 = vpop.f32.mrb[35].mxu1 }
 0xdb3   : > { %v4580_v23 = vrot.slane %v4574_v28, %v4579_v46 }
 0xdb5   : > { %v4581_v34 = vmul.f32 %v4580_v23, %v9042_v17  ;;  %v4582_v59 = vmul.f32 %v4580_v23, %v9047_v4 }
 0xdb7   : > { %v4583_v38 = vmul.f32 %v7854_v37, %v4581_v34  ;;  %v4584_v9 = vmul.f32 %v7852_v29, %v4582_v59 }
 0xdb9   : > { %v4585_v39 = vadd.f32 %v4583_v38, %v9042_v17  ;;  %v4586_v40 = vadd.f32 %v4584_v9, %v9047_v4 }
 0xdbb   : > { %4587 = vst [vmem:[%s595_s9] sm:$0xff] %v4585_v39  ;;  %4588 = vst [vmem:[%s595_s9 + $0x8] sm:$0xff] %v4586_v40 }
 0xdbc   : > { %8186 = shalt.err (!%p8183_p1)
}
 0xdbd   : > { %s8187_s6 = scalar_lea.hbm %s9065_s5, 256  ;;  %s8191_s3 = scalar_lea.hbm %s9182_s28, 512 }
 0xdbe   : > { %p8188_p11 = scmp.ne.s32.totalorder %s9065_s5, %s8187_s6  ;;  %p8192_p13 = scmp.lt.u32.totalorder %s9065_s5, %s9182_s28 }
 0xdbf   : > { %p8193_p6 = scmp.lt.u32.totalorder %s8191_s3, %s8187_s6  ;;  %p8195_p0 = scmp.lt.u32.totalorder %s8187_s6, %s9065_s5 }
 0xdc0   : > { %p8189_p12 = pnand %p8188_p11, %p9183_p5 }
 0xdc1   : > { %p8194_p9 = por %p8193_p6, %p8192_p13 }
 0xdc2   : > { %p8190_p2 = pneg %p8189_p12 }
 0xdc3   : > { %p8196_p7 = por %p8195_p0, %p8194_p9 }
 0xdc5   : > { %p8197_p8 = pnand %p8196_p7, %p8190_p2 }
 0xdc7   : > { %8200 = shalt.err (!%p8197_p8)
}
 0xdc8   : > { %s8288_s9 = smov 128  }
 0xdc9   : > { %7593 = dma.vmem_to_hbm [thread:$0]  (%p9183_p5), %s9069_s1, 256, %s9065_s5, %s4590_s27, %s8288_s9, %s8288_s9, %s8281_s12  }
 0xdca PF: > { %s4618_s15 = sand.u32 1, %s8251_s21   ;;  %p9184_p4 = scmp.ne.s32.totalorder %s9166_s19, 0 }
 0xdcb   : > { %p9185_p3 = scmp.ge.s32.totalorder %s8263_s24, 2  ;;  %s4619_s25 = scalar_lea.sflag [#allocation6], %s4618_s15 }
 0xdcd   : > { %p7631_p10 = pnand %p9185_p3, %p9184_p4 }
 0xdcf   : > { %8246 = dma.done.wait (!%p7631_p10), %s4619_s25, 256  }
 0xdd0   : > { %8248 = vsyncadd (!%p7631_p10), %s4619_s25, 4294967040  ;;  %p32_p1 = scmp.ge.s32.totalorder %s8592_s13, 4   ;;  %s9186_s21 = smov %s8255_s22 }
 0xdd1   : > { %s9187_s22 = smov %s8259_s23  ;;  %s9188_s23 = smov %s8604_s26 }
 0xdd2   : > { %s9189_s24 = smov %s8592_s13  ;;  %34 = sbr.rel (!%p32_p1) target bundleno = 23 (0x17), region = 190 }
 0xdd9   :  { %4624 = vsyncpa [#allocation5], 1 }
 0xdda   :  { %4626 = vsyncpa [#allocation5 + $0x1], 1 }
 0xddb   :  { %4627 = vsyncpa [#allocation8], 1 }
 0xddc   :  { %4629 = vsyncpa [#allocation8 + $0x1], 1 }
 0xddd   :  { %4630 = vsyncpa [#allocation11], 1 }
 0xdde   :  { %4631 = vsyncpa [#allocation14], 1 }
 0xddf   :  { %4632 = vsyncpa [#allocation17], 1 }
 0xde0   :  { %4633 = vsyncpa [#allocation20], 1 }
 0xde1   :  { %4634 = vsyncpa [#allocation6], 1 }
 0xde2   :  { %4636 = vsyncpa [#allocation6 + $0x1], 1 }

</bundles_post_ra>
